<compile_context>
chip_gen: v6e
topology: v6e:2x2x1
jax: 0.10.0
libtpu: 0.0.40
codegen_flags: <defaults>
</compile_context>

<pallas_src>
import functools

import jax
import jax.numpy as jnp
from jax.experimental import pallas as pl
from jax.experimental.pallas import tpu as pltpu

LANE = 128


def _round_up(x, m):
    return (x + m - 1) // m * m


def _full_block(shape):
    """Full-array BlockSpec for a grid=() pallas_call."""
    nd = len(shape)
    return pl.BlockSpec(shape, lambda *_: (0,) * nd)


# ----------------------------------------------------------------------------
# Fused kernel: num_layers x GRU (PyTorch gate order r, z, n) + Linear(H -> 1).
#   gx = x @ W_ih + (b_ih + [b_hh_r, b_hh_z, 0])          (hoisted, per layer)
#   gh = h @ W_hh                                          (per timestep)
#   r  = sigmoid(gx_r + gh_r)
#   z  = sigmoid(gx_z + gh_z)
#   n  = tanh  (gx_n + r * (gh_n + b_hh_n))
#   h  = (1 - z) * n + z * h
# ----------------------------------------------------------------------------
def fused_gru_fc_kernel(num_layers, hidden_pad, batch, x_ref, *refs):
    L, Hp, B = num_layers, hidden_pad, batch
    layer_refs = refs[: 4 * L]
    w_fc_ref = refs[4 * L]
    b_fc_ref = refs[4 * L + 1]
    out_ref = refs[4 * L + 2]
    gx_buf = refs[4 * L + 3]          # (T*B, 3*Hp) f32 VMEM scratch
    seq_buf = refs[4 * L + 4]         # (T*B, Hp)   f32 VMEM scratch

    TB = gx_buf.shape[0]
    T = TB // B

    for layer in range(L):
        w_ih_ref, w_hh_ref, b_gx_ref, b_hn_ref = (
            layer_refs[4 * layer: 4 * layer + 4])

        # Hoisted, gate-fused input projection: one bf16 MXU matmul over the
        # whole sequence, materialized into VMEM scratch (flat vreg pressure).
        # Each layer fully consumes seq_buf here before rewriting it below.
        if layer == 0:
            xin = x_ref[...]                                  # (T*B, Din) bf16
        else:
            xin = seq_buf[...].astype(jnp.bfloat16)           # (T*B, Hp)
        gx_buf[...] = (jnp.dot(xin, w_ih_ref[...],
                               preferred_element_type=jnp.float32)
                       + b_gx_ref[...])                       # (T*B, 3Hp) f32

        # Hoisted loads / broadcasts (nothing re-broadcast inside the loop).
        w_hh = w_hh_ref[...]                                  # (Hp, 3Hp) bf16
        b_hn = jnp.broadcast_to(b_hn_ref[...], (B, Hp))       # (B, Hp)  f32

        # Serial recurrence: only h @ W_hh + gate math per step.  T is tiny &
        # static -> full unroll with purely static slices.
        # TODO(synk): use lax.fori_loop(..., unroll=4..8) once T gets large.
        h = jnp.zeros((B, Hp), jnp.float32)
        for t in range(T):
            gx_t = gx_buf[pl.ds(t * B, B), :]                 # (B, 3Hp) f32
            gh = jnp.dot(h.astype(jnp.bfloat16), w_hh,
                         preferred_element_type=jnp.float32)  # (B, 3Hp) f32
            r = jax.nn.sigmoid(gx_t[:, 0:Hp] + gh[:, 0:Hp])
            z = jax.nn.sigmoid(gx_t[:, Hp:2 * Hp] + gh[:, Hp:2 * Hp])
            n = jnp.tanh(gx_t[:, 2 * Hp:3 * Hp]
                         + r * (gh[:, 2 * Hp:3 * Hp] + b_hn))
            h = (1.0 - z) * n + z * h
            seq_buf[pl.ds(t * B, B), :] = h                   # (B, Hp) store

    # FC head: one small MXU matmul producing a lane-dense (1, T*B) output
    # slab directly (no narrow masked partial stores).
    h_seq = seq_buf[...]                                      # (T*B, Hp) f32
    out = jnp.dot(w_fc_ref[...], h_seq.T,
                  preferred_element_type=jnp.float32)         # (1, T*B)
    out_ref[...] = out + b_fc_ref[...]


# ----------------------------------------------------------------------------
# Parameter construction (PyTorch-style uniform(-1/sqrt(H), 1/sqrt(H))),
# weights stored gate-fused (r, z, n) and pre-transposed: W_ih (din, 3H),
# W_hh (H, 3H), biases (1, 3H); fc: (1, H), (1, 1).
# ----------------------------------------------------------------------------
def init_params(key, input_dim, hidden_dim, num_layers):
    H = hidden_dim
    bound = 1.0 / float(H) ** 0.5
    params = {"gru": [], "fc": None}
    for layer in range(num_layers):
        din = input_dim if layer == 0 else H
        key, k1, k2, k3, k4 = jax.random.split(key, 5)
        w_ih = jax.random.uniform(k1, (din, 3 * H), jnp.float32, -bound, bound)
        w_hh = jax.random.uniform(k2, (H, 3 * H), jnp.float32, -bound, bound)
        b_ih = jax.random.uniform(k3, (1, 3 * H), jnp.float32, -bound, bound)
        b_hh = jax.random.uniform(k4, (1, 3 * H), jnp.float32, -bound, bound)
        params["gru"].append((w_ih, w_hh, b_ih, b_hh))
    key, k5, k6 = jax.random.split(key, 3)
    w_fc = jax.random.uniform(k5, (1, H), jnp.float32, -bound, bound)
    b_fc = jax.random.uniform(k6, (1, 1), jnp.float32, -bound, bound)
    params["fc"] = (w_fc, b_fc)
    return params


# ----------------------------------------------------------------------------
# Operand preparation: gate-wise lane padding to Hp (multiple of 128), b_hh
# folding, bf16 weight casts.  Zero padding is exactly preserved by the GRU
# update, so padded lanes stay 0 and do not affect results.
# ----------------------------------------------------------------------------
def _pad_cols_per_gate(w, H, Hp):
    """(rows, 3H) -> (rows, 3Hp); gate g's real block at cols [g*Hp, g*Hp+H)."""
    rows = w.shape[0]
    out = jnp.zeros((rows, 3 * Hp), w.dtype)
    for g in range(3):
        out = out.at[:, g * Hp: g * Hp + H].set(w[:, g * H: (g + 1) * H])
    return out


def _pad_rows(w, rows_pad):
    return jnp.zeros((rows_pad, w.shape[1]), w.dtype).at[: w.shape[0], :].set(w)


def _prepare_operands(x_btd, params, num_layers):
    B, T, _ = x_btd.shape
    w_fc, b_fc = params["fc"]
    H = w_fc.shape[-1]
    Hp = _round_up(H, LANE)

    # (B, T, D) -> time-major flattened (T*B, D), bf16 MXU operand.
    # TODO(synk): at production sizes accept time-major input from the
    # producer to avoid this extra HBM transpose pass.
    x_tm = (jnp.transpose(x_btd, (1, 0, 2))
            .reshape(T * B, x_btd.shape[-1]).astype(jnp.bfloat16))

    operands = [x_tm]
    for layer in range(num_layers):
        w_ih, w_hh, b_ih, b_hh = params["gru"][layer]
        # Fold recurrent r/z-gate biases into the hoisted projection's bias;
        # only the n-gate recurrent bias stays on the per-timestep path.
        b_gx = b_ih + jnp.concatenate(
            [b_hh[:, : 2 * H], jnp.zeros((1, H), b_hh.dtype)], axis=1)
        b_hn = b_hh[:, 2 * H: 3 * H]

        w_ih_p = _pad_cols_per_gate(w_ih, H, Hp)
        if layer > 0:                         # rows are the (padded) hidden dim
            w_ih_p = _pad_rows(w_ih_p, Hp)
        w_hh_p = _pad_rows(_pad_cols_per_gate(w_hh, H, Hp), Hp)
        b_gx_p = _pad_cols_per_gate(b_gx, H, Hp).astype(jnp.float32)
        b_hn_p = jnp.zeros((1, Hp), jnp.float32).at[:, :H].set(b_hn)

        operands += [w_ih_p.astype(jnp.bfloat16),
                     w_hh_p.astype(jnp.bfloat16),
                     b_gx_p, b_hn_p]

    w_fc_p = jnp.zeros((1, Hp), jnp.float32).at[:, :H].set(w_fc)
    operands += [w_fc_p, b_fc.astype(jnp.float32)]
    return operands, Hp


# ----------------------------------------------------------------------------
# Forward pass (semantics of PostHocRNNPredictor.forward, batch_first).
# ----------------------------------------------------------------------------
@functools.partial(jax.jit, static_argnames=("num_layers",))
def posthoc_rnn_predictor(x_btd, params, num_layers):
    """x_btd: (B, T, input_dim) -> (B, T, 1)."""
    B, T, _ = x_btd.shape
    operands, Hp = _prepare_operands(x_btd, params, num_layers)

    kernel = functools.partial(fused_gru_fc_kernel, num_layers, Hp, B)
    out_row = pl.pallas_call(
        kernel,
        out_shape=jax.ShapeDtypeStruct((1, T * B), jnp.float32),
        grid=(),
        in_specs=[_full_block(op.shape) for op in operands],
        out_specs=_full_block((1, T * B)),
        scratch_shapes=[
            pltpu.VMEM((T * B, 3 * Hp), jnp.float32),  # hoisted gate acts gx
            pltpu.VMEM((T * B, Hp), jnp.float32),      # shared hidden sequence
        ],
        compiler_params=pltpu.CompilerParams(
            # Explicit VMEM budget (everything is resident with grid=()).
            # TODO(synk): stream layer weights per layer for large H*L.
            vmem_limit_bytes=32 * 1024 * 1024,
        ),
    )(*operands)

    # Lane-dense (1, T*B) time-major slab -> PyTorch (B, T, 1) convention.
    return jnp.transpose(out_row.reshape(T, B), (1, 0))[..., None]


# ----------------------------------------------------------------------------
# Pure-JAX f32 reference (lax.scan) for validation.
# ----------------------------------------------------------------------------
def reference_forward(x_btd, params, num_layers):
    B = x_btd.shape[0]
    h_seq = jnp.transpose(x_btd, (1, 0, 2)).astype(jnp.float32)  # (T, B, D)
    for layer in range(num_layers):
        w_ih, w_hh, b_ih, b_hh = params["gru"][layer]
        H = w_hh.shape[0]

        def step(h_prev, x_t, w_ih=w_ih, w_hh=w_hh, b_ih=b_ih, b_hh=b_hh, H=H):
            gx = x_t @ w_ih + b_ih
            gh = h_prev @ w_hh + b_hh
            r = jax.nn.sigmoid(gx[:, :H] + gh[:, :H])
            z = jax.nn.sigmoid(gx[:, H:2 * H] + gh[:, H:2 * H])
            n = jnp.tanh(gx[:, 2 * H:] + r * gh[:, 2 * H:])
            h_new = (1.0 - z) * n + z * h_prev
            return h_new, h_new

        h0 = jnp.zeros((B, H), jnp.float32)
        _, h_seq = jax.lax.scan(step, h0, h_seq)                 # (T, B, H)
    w_fc, b_fc = params["fc"]                                    # (1,H), (1,1)
    out = h_seq @ w_fc[0] + b_fc[0, 0]                           # (T, B)
    return jnp.transpose(out, (1, 0))[..., None]                 # (B, T, 1)


if __name__ == "__main__":
    input_dim, hidden_dim, num_layers = 4, 32, 2
    B, T = 2, 8

    key = jax.random.PRNGKey(0)
    key, kx, kp = jax.random.split(key, 3)
    x = jax.random.normal(kx, (B, T, input_dim), jnp.float32)
    params = init_params(kp, input_dim, hidden_dim, num_layers)

    out = posthoc_rnn_predictor(x, params, num_layers=num_layers)
    out = jax.block_until_ready(out)
    assert out.shape == (B, T, 1), out.shape

    ref = reference_forward(x, params, num_layers)
    max_err = float(jnp.max(jnp.abs(out - ref)))
    # bf16 MXU operands (f32 accumulation / f32 state) -> loosened tolerance
    # vs. the pure-f32 reference.
    assert max_err < 3e-2, max_err

    print("KERNEL_OK")
</pallas_src>

<mosaic_0001>
module attributes {stable_mosaic.version = 11 : i64} {
  func.func @fused_gru_fc_kernel(%arg0: memref<16x4xbf16, #tpu.memory_space<vmem>>, %arg1: memref<4x384xbf16, #tpu.memory_space<vmem>>, %arg2: memref<128x384xbf16, #tpu.memory_space<vmem>>, %arg3: memref<1x384xf32, #tpu.memory_space<vmem>>, %arg4: memref<1x128xf32, #tpu.memory_space<vmem>>, %arg5: memref<128x384xbf16, #tpu.memory_space<vmem>>, %arg6: memref<128x384xbf16, #tpu.memory_space<vmem>>, %arg7: memref<1x384xf32, #tpu.memory_space<vmem>>, %arg8: memref<1x128xf32, #tpu.memory_space<vmem>>, %arg9: memref<1x128xf32, #tpu.memory_space<vmem>>, %arg10: memref<1x1xf32, #tpu.memory_space<vmem>>, %arg11: memref<1x16xf32, #tpu.memory_space<vmem>>, %arg12: memref<16x384xf32, #tpu.memory_space<vmem>>, %arg13: memref<16x128xf32, #tpu.memory_space<vmem>>) attributes {dimension_semantics = [], scalar_prefetch = 0 : i64, scratch_operands = 2 : i64, tpu.core_type = #tpu.core_type<tc>} {
    %c0 = arith.constant 0 : index
    %c0_0 = arith.constant 0 : index
    %0 = vector.load %arg0[%c0, %c0_0] : memref<16x4xbf16, #tpu.memory_space<vmem>>, vector<16x4xbf16>
    %c0_1 = arith.constant 0 : index
    %c0_2 = arith.constant 0 : index
    %1 = vector.load %arg1[%c0_1, %c0_2] : memref<4x384xbf16, #tpu.memory_space<vmem>>, vector<4x384xbf16>
    %cst = arith.constant dense<0.000000e+00> : vector<16x384xf32>
    %2 = tpu.matmul %0, %1, %cst {dimension_numbers = #tpu.dot_dimension_numbers<[1], [0], [0], [1], [0, 0, 1, 1], [], []>} : vector<16x4xbf16>, vector<4x384xbf16>, vector<16x384xf32> -> vector<16x384xf32>
    %c0_3 = arith.constant 0 : index
    %c0_4 = arith.constant 0 : index
    %3 = vector.load %arg3[%c0_3, %c0_4] : memref<1x384xf32, #tpu.memory_space<vmem>>, vector<1x384xf32>
    %4 = vector.broadcast %3 : vector<1x384xf32> to vector<16x384xf32>
    %5 = arith.addf %2, %4 : vector<16x384xf32>
    %c0_5 = arith.constant 0 : index
    %c0_6 = arith.constant 0 : index
    %6 = vector.load %arg12[%c0_5, %c0_6] : memref<16x384xf32, #tpu.memory_space<vmem>>, vector<16x384xf32>
    tpu.vector_store %arg12[%c0_5, %c0_6], %5 {strides = array<i32>} : memref<16x384xf32, #tpu.memory_space<vmem>>, vector<16x384xf32>,
    %c0_7 = arith.constant 0 : index
    %c0_8 = arith.constant 0 : index
    %7 = vector.load %arg2[%c0_7, %c0_8] : memref<128x384xbf16, #tpu.memory_space<vmem>>, vector<128x384xbf16>
    %c0_9 = arith.constant 0 : index
    %c0_10 = arith.constant 0 : index
    %8 = vector.load %arg4[%c0_9, %c0_10] : memref<1x128xf32, #tpu.memory_space<vmem>>, vector<1x128xf32>
    %9 = vector.shape_cast %8 : vector<1x128xf32> to vector<1x128xf32>
    %10 = vector.broadcast %9 : vector<1x128xf32> to vector<2x128xf32>
    %cst_11 = arith.constant 0.000000e+00 : f32
    %11 = vector.broadcast %cst_11 : f32 to vector<2x128xf32>
    %c0_12 = arith.constant 0 : index
    %c0_13 = arith.constant 0 : index
    %12 = vector.load %arg12[%c0_12, %c0_13] : memref<16x384xf32, #tpu.memory_space<vmem>>, vector<2x384xf32>
    %13 = arith.truncf %11 : vector<2x128xf32> to vector<2x128xbf16>
    %cst_14 = arith.constant dense<0.000000e+00> : vector<2x384xf32>
    %14 = tpu.matmul %13, %7, %cst_14 {dimension_numbers = #tpu.dot_dimension_numbers<[1], [0], [0], [1], [0, 0, 1, 1], [], []>} : vector<2x128xbf16>, vector<128x384xbf16>, vector<2x384xf32> -> vector<2x384xf32>
    %15 = vector.extract_strided_slice %12 {offsets = [0, 0], sizes = [2, 128], strides = [1, 1]} : vector<2x384xf32> to vector<2x128xf32>
    %16 = vector.extract_strided_slice %14 {offsets = [0, 0], sizes = [2, 128], strides = [1, 1]} : vector<2x384xf32> to vector<2x128xf32>
    %17 = arith.addf %15, %16 : vector<2x128xf32>
    %18 = arith.negf %17 : vector<2x128xf32>
    %19 = math.exp %18 : vector<2x128xf32>
    %cst_15 = arith.constant 1.000000e+00 : f32
    %20 = vector.broadcast %cst_15 : f32 to vector<2x128xf32>
    %21 = arith.addf %20, %19 : vector<2x128xf32>
    %22 = arith.divf %20, %21 : vector<2x128xf32>
    %23 = vector.extract_strided_slice %12 {offsets = [0, 128], sizes = [2, 128], strides = [1, 1]} : vector<2x384xf32> to vector<2x128xf32>
    %24 = vector.extract_strided_slice %14 {offsets = [0, 128], sizes = [2, 128], strides = [1, 1]} : vector<2x384xf32> to vector<2x128xf32>
    %25 = arith.addf %23, %24 : vector<2x128xf32>
    %26 = arith.negf %25 : vector<2x128xf32>
    %27 = math.exp %26 : vector<2x128xf32>
    %cst_16 = arith.constant 1.000000e+00 : f32
    %28 = vector.broadcast %cst_16 : f32 to vector<2x128xf32>
    %29 = arith.addf %28, %27 : vector<2x128xf32>
    %30 = arith.divf %28, %29 : vector<2x128xf32>
    %31 = vector.extract_strided_slice %12 {offsets = [0, 256], sizes = [2, 128], strides = [1, 1]} : vector<2x384xf32> to vector<2x128xf32>
    %32 = vector.extract_strided_slice %14 {offsets = [0, 256], sizes = [2, 128], strides = [1, 1]} : vector<2x384xf32> to vector<2x128xf32>
    %33 = arith.addf %32, %10 : vector<2x128xf32>
    %34 = arith.mulf %22, %33 : vector<2x128xf32>
    %35 = arith.addf %31, %34 : vector<2x128xf32>
    %36 = math.tanh %35 : vector<2x128xf32>
    %cst_17 = arith.constant 1.000000e+00 : f32
    %37 = vector.broadcast %cst_17 : f32 to vector<2x128xf32>
    %38 = arith.subf %37, %30 : vector<2x128xf32>
    %39 = arith.mulf %38, %36 : vector<2x128xf32>
    %40 = arith.mulf %30, %11 : vector<2x128xf32>
    %41 = arith.addf %39, %40 : vector<2x128xf32>
    %c0_18 = arith.constant 0 : index
    %c0_19 = arith.constant 0 : index
    %42 = vector.load %arg13[%c0_18, %c0_19] : memref<16x128xf32, #tpu.memory_space<vmem>>, vector<2x128xf32>
    tpu.vector_store %arg13[%c0_18, %c0_19], %41 {strides = array<i32>} : memref<16x128xf32, #tpu.memory_space<vmem>>, vector<2x128xf32>,
    %c2 = arith.constant 2 : index
    %c0_20 = arith.constant 0 : index
    %43 = vector.load %arg12[%c2, %c0_20] : memref<16x384xf32, #tpu.memory_space<vmem>>, vector<2x384xf32>
    %44 = arith.truncf %41 : vector<2x128xf32> to vector<2x128xbf16>
    %cst_21 = arith.constant dense<0.000000e+00> : vector<2x384xf32>
    %45 = tpu.matmul %44, %7, %cst_21 {dimension_numbers = #tpu.dot_dimension_numbers<[1], [0], [0], [1], [0, 0, 1, 1], [], []>} : vector<2x128xbf16>, vector<128x384xbf16>, vector<2x384xf32> -> vector<2x384xf32>
    %46 = vector.extract_strided_slice %43 {offsets = [0, 0], sizes = [2, 128], strides = [1, 1]} : vector<2x384xf32> to vector<2x128xf32>
    %47 = vector.extract_strided_slice %45 {offsets = [0, 0], sizes = [2, 128], strides = [1, 1]} : vector<2x384xf32> to vector<2x128xf32>
    %48 = arith.addf %46, %47 : vector<2x128xf32>
    %49 = arith.negf %48 : vector<2x128xf32>
    %50 = math.exp %49 : vector<2x128xf32>
    %cst_22 = arith.constant 1.000000e+00 : f32
    %51 = vector.broadcast %cst_22 : f32 to vector<2x128xf32>
    %52 = arith.addf %51, %50 : vector<2x128xf32>
    %53 = arith.divf %51, %52 : vector<2x128xf32>
    %54 = vector.extract_strided_slice %43 {offsets = [0, 128], sizes = [2, 128], strides = [1, 1]} : vector<2x384xf32> to vector<2x128xf32>
    %55 = vector.extract_strided_slice %45 {offsets = [0, 128], sizes = [2, 128], strides = [1, 1]} : vector<2x384xf32> to vector<2x128xf32>
    %56 = arith.addf %54, %55 : vector<2x128xf32>
    %57 = arith.negf %56 : vector<2x128xf32>
    %58 = math.exp %57 : vector<2x128xf32>
    %cst_23 = arith.constant 1.000000e+00 : f32
    %59 = vector.broadcast %cst_23 : f32 to vector<2x128xf32>
    %60 = arith.addf %59, %58 : vector<2x128xf32>
    %61 = arith.divf %59, %60 : vector<2x128xf32>
    %62 = vector.extract_strided_slice %43 {offsets = [0, 256], sizes = [2, 128], strides = [1, 1]} : vector<2x384xf32> to vector<2x128xf32>
    %63 = vector.extract_strided_slice %45 {offsets = [0, 256], sizes = [2, 128], strides = [1, 1]} : vector<2x384xf32> to vector<2x128xf32>
    %64 = arith.addf %63, %10 : vector<2x128xf32>
    %65 = arith.mulf %53, %64 : vector<2x128xf32>
    %66 = arith.addf %62, %65 : vector<2x128xf32>
    %67 = math.tanh %66 : vector<2x128xf32>
    %cst_24 = arith.constant 1.000000e+00 : f32
    %68 = vector.broadcast %cst_24 : f32 to vector<2x128xf32>
    %69 = arith.subf %68, %61 : vector<2x128xf32>
    %70 = arith.mulf %69, %67 : vector<2x128xf32>
    %71 = arith.mulf %61, %41 : vector<2x128xf32>
    %72 = arith.addf %70, %71 : vector<2x128xf32>
    %c2_25 = arith.constant 2 : index
    %c0_26 = arith.constant 0 : index
    %73 = vector.load %arg13[%c2_25, %c0_26] : memref<16x128xf32, #tpu.memory_space<vmem>>, vector<2x128xf32>
    tpu.vector_store %arg13[%c2_25, %c0_26], %72 {strides = array<i32>} : memref<16x128xf32, #tpu.memory_space<vmem>>, vector<2x128xf32>,
    %c4 = arith.constant 4 : index
    %c0_27 = arith.constant 0 : index
    %74 = vector.load %arg12[%c4, %c0_27] : memref<16x384xf32, #tpu.memory_space<vmem>>, vector<2x384xf32>
    %75 = arith.truncf %72 : vector<2x128xf32> to vector<2x128xbf16>
    %cst_28 = arith.constant dense<0.000000e+00> : vector<2x384xf32>
    %76 = tpu.matmul %75, %7, %cst_28 {dimension_numbers = #tpu.dot_dimension_numbers<[1], [0], [0], [1], [0, 0, 1, 1], [], []>} : vector<2x128xbf16>, vector<128x384xbf16>, vector<2x384xf32> -> vector<2x384xf32>
    %77 = vector.extract_strided_slice %74 {offsets = [0, 0], sizes = [2, 128], strides = [1, 1]} : vector<2x384xf32> to vector<2x128xf32>
    %78 = vector.extract_strided_slice %76 {offsets = [0, 0], sizes = [2, 128], strides = [1, 1]} : vector<2x384xf32> to vector<2x128xf32>
    %79 = arith.addf %77, %78 : vector<2x128xf32>
    %80 = arith.negf %79 : vector<2x128xf32>
    %81 = math.exp %80 : vector<2x128xf32>
    %cst_29 = arith.constant 1.000000e+00 : f32
    %82 = vector.broadcast %cst_29 : f32 to vector<2x128xf32>
    %83 = arith.addf %82, %81 : vector<2x128xf32>
    %84 = arith.divf %82, %83 : vector<2x128xf32>
    %85 = vector.extract_strided_slice %74 {offsets = [0, 128], sizes = [2, 128], strides = [1, 1]} : vector<2x384xf32> to vector<2x128xf32>
    %86 = vector.extract_strided_slice %76 {offsets = [0, 128], sizes = [2, 128], strides = [1, 1]} : vector<2x384xf32> to vector<2x128xf32>
    %87 = arith.addf %85, %86 : vector<2x128xf32>
    %88 = arith.negf %87 : vector<2x128xf32>
    %89 = math.exp %88 : vector<2x128xf32>
    %cst_30 = arith.constant 1.000000e+00 : f32
    %90 = vector.broadcast %cst_30 : f32 to vector<2x128xf32>
    %91 = arith.addf %90, %89 : vector<2x128xf32>
    %92 = arith.divf %90, %91 : vector<2x128xf32>
    %93 = vector.extract_strided_slice %74 {offsets = [0, 256], sizes = [2, 128], strides = [1, 1]} : vector<2x384xf32> to vector<2x128xf32>
    %94 = vector.extract_strided_slice %76 {offsets = [0, 256], sizes = [2, 128], strides = [1, 1]} : vector<2x384xf32> to vector<2x128xf32>
    %95 = arith.addf %94, %10 : vector<2x128xf32>
    %96 = arith.mulf %84, %95 : vector<2x128xf32>
    %97 = arith.addf %93, %96 : vector<2x128xf32>
    %98 = math.tanh %97 : vector<2x128xf32>
    %cst_31 = arith.constant 1.000000e+00 : f32
    %99 = vector.broadcast %cst_31 : f32 to vector<2x128xf32>
    %100 = arith.subf %99, %92 : vector<2x128xf32>
    %101 = arith.mulf %100, %98 : vector<2x128xf32>
    %102 = arith.mulf %92, %72 : vector<2x128xf32>
    %103 = arith.addf %101, %102 : vector<2x128xf32>
    %c4_32 = arith.constant 4 : index
    %c0_33 = arith.constant 0 : index
    %104 = vector.load %arg13[%c4_32, %c0_33] : memref<16x128xf32, #tpu.memory_space<vmem>>, vector<2x128xf32>
    tpu.vector_store %arg13[%c4_32, %c0_33], %103 {strides = array<i32>} : memref<16x128xf32, #tpu.memory_space<vmem>>, vector<2x128xf32>,
    %c6 = arith.constant 6 : index
    %c0_34 = arith.constant 0 : index
    %105 = vector.load %arg12[%c6, %c0_34] : memref<16x384xf32, #tpu.memory_space<vmem>>, vector<2x384xf32>
    %106 = arith.truncf %103 : vector<2x128xf32> to vector<2x128xbf16>
    %cst_35 = arith.constant dense<0.000000e+00> : vector<2x384xf32>
    %107 = tpu.matmul %106, %7, %cst_35 {dimension_numbers = #tpu.dot_dimension_numbers<[1], [0], [0], [1], [0, 0, 1, 1], [], []>} : vector<2x128xbf16>, vector<128x384xbf16>, vector<2x384xf32> -> vector<2x384xf32>
    %108 = vector.extract_strided_slice %105 {offsets = [0, 0], sizes = [2, 128], strides = [1, 1]} : vector<2x384xf32> to vector<2x128xf32>
    %109 = vector.extract_strided_slice %107 {offsets = [0, 0], sizes = [2, 128], strides = [1, 1]} : vector<2x384xf32> to vector<2x128xf32>
    %110 = arith.addf %108, %109 : vector<2x128xf32>
    %111 = arith.negf %110 : vector<2x128xf32>
    %112 = math.exp %111 : vector<2x128xf32>
    %cst_36 = arith.constant 1.000000e+00 : f32
    %113 = vector.broadcast %cst_36 : f32 to vector<2x128xf32>
    %114 = arith.addf %113, %112 : vector<2x128xf32>
    %115 = arith.divf %113, %114 : vector<2x128xf32>
    %116 = vector.extract_strided_slice %105 {offsets = [0, 128], sizes = [2, 128], strides = [1, 1]} : vector<2x384xf32> to vector<2x128xf32>
    %117 = vector.extract_strided_slice %107 {offsets = [0, 128], sizes = [2, 128], strides = [1, 1]} : vector<2x384xf32> to vector<2x128xf32>
    %118 = arith.addf %116, %117 : vector<2x128xf32>
    %119 = arith.negf %118 : vector<2x128xf32>
    %120 = math.exp %119 : vector<2x128xf32>
    %cst_37 = arith.constant 1.000000e+00 : f32
    %121 = vector.broadcast %cst_37 : f32 to vector<2x128xf32>
    %122 = arith.addf %121, %120 : vector<2x128xf32>
    %123 = arith.divf %121, %122 : vector<2x128xf32>
    %124 = vector.extract_strided_slice %105 {offsets = [0, 256], sizes = [2, 128], strides = [1, 1]} : vector<2x384xf32> to vector<2x128xf32>
    %125 = vector.extract_strided_slice %107 {offsets = [0, 256], sizes = [2, 128], strides = [1, 1]} : vector<2x384xf32> to vector<2x128xf32>
    %126 = arith.addf %125, %10 : vector<2x128xf32>
    %127 = arith.mulf %115, %126 : vector<2x128xf32>
    %128 = arith.addf %124, %127 : vector<2x128xf32>
    %129 = math.tanh %128 : vector<2x128xf32>
    %cst_38 = arith.constant 1.000000e+00 : f32
    %130 = vector.broadcast %cst_38 : f32 to vector<2x128xf32>
    %131 = arith.subf %130, %123 : vector<2x128xf32>
    %132 = arith.mulf %131, %129 : vector<2x128xf32>
    %133 = arith.mulf %123, %103 : vector<2x128xf32>
    %134 = arith.addf %132, %133 : vector<2x128xf32>
    %c6_39 = arith.constant 6 : index
    %c0_40 = arith.constant 0 : index
    %135 = vector.load %arg13[%c6_39, %c0_40] : memref<16x128xf32, #tpu.memory_space<vmem>>, vector<2x128xf32>
    tpu.vector_store %arg13[%c6_39, %c0_40], %134 {strides = array<i32>} : memref<16x128xf32, #tpu.memory_space<vmem>>, vector<2x128xf32>,
    %c8 = arith.constant 8 : index
    %c0_41 = arith.constant 0 : index
    %136 = vector.load %arg12[%c8, %c0_41] : memref<16x384xf32, #tpu.memory_space<vmem>>, vector<2x384xf32>
    %137 = arith.truncf %134 : vector<2x128xf32> to vector<2x128xbf16>
    %cst_42 = arith.constant dense<0.000000e+00> : vector<2x384xf32>
    %138 = tpu.matmul %137, %7, %cst_42 {dimension_numbers = #tpu.dot_dimension_numbers<[1], [0], [0], [1], [0, 0, 1, 1], [], []>} : vector<2x128xbf16>, vector<128x384xbf16>, vector<2x384xf32> -> vector<2x384xf32>
    %139 = vector.extract_strided_slice %136 {offsets = [0, 0], sizes = [2, 128], strides = [1, 1]} : vector<2x384xf32> to vector<2x128xf32>
    %140 = vector.extract_strided_slice %138 {offsets = [0, 0], sizes = [2, 128], strides = [1, 1]} : vector<2x384xf32> to vector<2x128xf32>
    %141 = arith.addf %139, %140 : vector<2x128xf32>
    %142 = arith.negf %141 : vector<2x128xf32>
    %143 = math.exp %142 : vector<2x128xf32>
    %cst_43 = arith.constant 1.000000e+00 : f32
    %144 = vector.broadcast %cst_43 : f32 to vector<2x128xf32>
    %145 = arith.addf %144, %143 : vector<2x128xf32>
    %146 = arith.divf %144, %145 : vector<2x128xf32>
    %147 = vector.extract_strided_slice %136 {offsets = [0, 128], sizes = [2, 128], strides = [1, 1]} : vector<2x384xf32> to vector<2x128xf32>
    %148 = vector.extract_strided_slice %138 {offsets = [0, 128], sizes = [2, 128], strides = [1, 1]} : vector<2x384xf32> to vector<2x128xf32>
    %149 = arith.addf %147, %148 : vector<2x128xf32>
    %150 = arith.negf %149 : vector<2x128xf32>
    %151 = math.exp %150 : vector<2x128xf32>
    %cst_44 = arith.constant 1.000000e+00 : f32
    %152 = vector.broadcast %cst_44 : f32 to vector<2x128xf32>
    %153 = arith.addf %152, %151 : vector<2x128xf32>
    %154 = arith.divf %152, %153 : vector<2x128xf32>
    %155 = vector.extract_strided_slice %136 {offsets = [0, 256], sizes = [2, 128], strides = [1, 1]} : vector<2x384xf32> to vector<2x128xf32>
    %156 = vector.extract_strided_slice %138 {offsets = [0, 256], sizes = [2, 128], strides = [1, 1]} : vector<2x384xf32> to vector<2x128xf32>
    %157 = arith.addf %156, %10 : vector<2x128xf32>
    %158 = arith.mulf %146, %157 : vector<2x128xf32>
    %159 = arith.addf %155, %158 : vector<2x128xf32>
    %160 = math.tanh %159 : vector<2x128xf32>
    %cst_45 = arith.constant 1.000000e+00 : f32
    %161 = vector.broadcast %cst_45 : f32 to vector<2x128xf32>
    %162 = arith.subf %161, %154 : vector<2x128xf32>
    %163 = arith.mulf %162, %160 : vector<2x128xf32>
    %164 = arith.mulf %154, %134 : vector<2x128xf32>
    %165 = arith.addf %163, %164 : vector<2x128xf32>
    %c8_46 = arith.constant 8 : index
    %c0_47 = arith.constant 0 : index
    %166 = vector.load %arg13[%c8_46, %c0_47] : memref<16x128xf32, #tpu.memory_space<vmem>>, vector<2x128xf32>
    tpu.vector_store %arg13[%c8_46, %c0_47], %165 {strides = array<i32>} : memref<16x128xf32, #tpu.memory_space<vmem>>, vector<2x128xf32>,
    %c10 = arith.constant 10 : index
    %c0_48 = arith.constant 0 : index
    %167 = vector.load %arg12[%c10, %c0_48] : memref<16x384xf32, #tpu.memory_space<vmem>>, vector<2x384xf32>
    %168 = arith.truncf %165 : vector<2x128xf32> to vector<2x128xbf16>
    %cst_49 = arith.constant dense<0.000000e+00> : vector<2x384xf32>
    %169 = tpu.matmul %168, %7, %cst_49 {dimension_numbers = #tpu.dot_dimension_numbers<[1], [0], [0], [1], [0, 0, 1, 1], [], []>} : vector<2x128xbf16>, vector<128x384xbf16>, vector<2x384xf32> -> vector<2x384xf32>
    %170 = vector.extract_strided_slice %167 {offsets = [0, 0], sizes = [2, 128], strides = [1, 1]} : vector<2x384xf32> to vector<2x128xf32>
    %171 = vector.extract_strided_slice %169 {offsets = [0, 0], sizes = [2, 128], strides = [1, 1]} : vector<2x384xf32> to vector<2x128xf32>
    %172 = arith.addf %170, %171 : vector<2x128xf32>
    %173 = arith.negf %172 : vector<2x128xf32>
    %174 = math.exp %173 : vector<2x128xf32>
    %cst_50 = arith.constant 1.000000e+00 : f32
    %175 = vector.broadcast %cst_50 : f32 to vector<2x128xf32>
    %176 = arith.addf %175, %174 : vector<2x128xf32>
    %177 = arith.divf %175, %176 : vector<2x128xf32>
    %178 = vector.extract_strided_slice %167 {offsets = [0, 128], sizes = [2, 128], strides = [1, 1]} : vector<2x384xf32> to vector<2x128xf32>
    %179 = vector.extract_strided_slice %169 {offsets = [0, 128], sizes = [2, 128], strides = [1, 1]} : vector<2x384xf32> to vector<2x128xf32>
    %180 = arith.addf %178, %179 : vector<2x128xf32>
    %181 = arith.negf %180 : vector<2x128xf32>
    %182 = math.exp %181 : vector<2x128xf32>
    %cst_51 = arith.constant 1.000000e+00 : f32
    %183 = vector.broadcast %cst_51 : f32 to vector<2x128xf32>
    %184 = arith.addf %183, %182 : vector<2x128xf32>
    %185 = arith.divf %183, %184 : vector<2x128xf32>
    %186 = vector.extract_strided_slice %167 {offsets = [0, 256], sizes = [2, 128], strides = [1, 1]} : vector<2x384xf32> to vector<2x128xf32>
    %187 = vector.extract_strided_slice %169 {offsets = [0, 256], sizes = [2, 128], strides = [1, 1]} : vector<2x384xf32> to vector<2x128xf32>
    %188 = arith.addf %187, %10 : vector<2x128xf32>
    %189 = arith.mulf %177, %188 : vector<2x128xf32>
    %190 = arith.addf %186, %189 : vector<2x128xf32>
    %191 = math.tanh %190 : vector<2x128xf32>
    %cst_52 = arith.constant 1.000000e+00 : f32
    %192 = vector.broadcast %cst_52 : f32 to vector<2x128xf32>
    %193 = arith.subf %192, %185 : vector<2x128xf32>
    %194 = arith.mulf %193, %191 : vector<2x128xf32>
    %195 = arith.mulf %185, %165 : vector<2x128xf32>
    %196 = arith.addf %194, %195 : vector<2x128xf32>
    %c10_53 = arith.constant 10 : index
    %c0_54 = arith.constant 0 : index
    %197 = vector.load %arg13[%c10_53, %c0_54] : memref<16x128xf32, #tpu.memory_space<vmem>>, vector<2x128xf32>
    tpu.vector_store %arg13[%c10_53, %c0_54], %196 {strides = array<i32>} : memref<16x128xf32, #tpu.memory_space<vmem>>, vector<2x128xf32>,
    %c12 = arith.constant 12 : index
    %c0_55 = arith.constant 0 : index
    %198 = vector.load %arg12[%c12, %c0_55] : memref<16x384xf32, #tpu.memory_space<vmem>>, vector<2x384xf32>
    %199 = arith.truncf %196 : vector<2x128xf32> to vector<2x128xbf16>
    %cst_56 = arith.constant dense<0.000000e+00> : vector<2x384xf32>
    %200 = tpu.matmul %199, %7, %cst_56 {dimension_numbers = #tpu.dot_dimension_numbers<[1], [0], [0], [1], [0, 0, 1, 1], [], []>} : vector<2x128xbf16>, vector<128x384xbf16>, vector<2x384xf32> -> vector<2x384xf32>
    %201 = vector.extract_strided_slice %198 {offsets = [0, 0], sizes = [2, 128], strides = [1, 1]} : vector<2x384xf32> to vector<2x128xf32>
    %202 = vector.extract_strided_slice %200 {offsets = [0, 0], sizes = [2, 128], strides = [1, 1]} : vector<2x384xf32> to vector<2x128xf32>
    %203 = arith.addf %201, %202 : vector<2x128xf32>
    %204 = arith.negf %203 : vector<2x128xf32>
    %205 = math.exp %204 : vector<2x128xf32>
    %cst_57 = arith.constant 1.000000e+00 : f32
    %206 = vector.broadcast %cst_57 : f32 to vector<2x128xf32>
    %207 = arith.addf %206, %205 : vector<2x128xf32>
    %208 = arith.divf %206, %207 : vector<2x128xf32>
    %209 = vector.extract_strided_slice %198 {offsets = [0, 128], sizes = [2, 128], strides = [1, 1]} : vector<2x384xf32> to vector<2x128xf32>
    %210 = vector.extract_strided_slice %200 {offsets = [0, 128], sizes = [2, 128], strides = [1, 1]} : vector<2x384xf32> to vector<2x128xf32>
    %211 = arith.addf %209, %210 : vector<2x128xf32>
    %212 = arith.negf %211 : vector<2x128xf32>
    %213 = math.exp %212 : vector<2x128xf32>
    %cst_58 = arith.constant 1.000000e+00 : f32
    %214 = vector.broadcast %cst_58 : f32 to vector<2x128xf32>
    %215 = arith.addf %214, %213 : vector<2x128xf32>
    %216 = arith.divf %214, %215 : vector<2x128xf32>
    %217 = vector.extract_strided_slice %198 {offsets = [0, 256], sizes = [2, 128], strides = [1, 1]} : vector<2x384xf32> to vector<2x128xf32>
    %218 = vector.extract_strided_slice %200 {offsets = [0, 256], sizes = [2, 128], strides = [1, 1]} : vector<2x384xf32> to vector<2x128xf32>
    %219 = arith.addf %218, %10 : vector<2x128xf32>
    %220 = arith.mulf %208, %219 : vector<2x128xf32>
    %221 = arith.addf %217, %220 : vector<2x128xf32>
    %222 = math.tanh %221 : vector<2x128xf32>
    %cst_59 = arith.constant 1.000000e+00 : f32
    %223 = vector.broadcast %cst_59 : f32 to vector<2x128xf32>
    %224 = arith.subf %223, %216 : vector<2x128xf32>
    %225 = arith.mulf %224, %222 : vector<2x128xf32>
    %226 = arith.mulf %216, %196 : vector<2x128xf32>
    %227 = arith.addf %225, %226 : vector<2x128xf32>
    %c12_60 = arith.constant 12 : index
    %c0_61 = arith.constant 0 : index
    %228 = vector.load %arg13[%c12_60, %c0_61] : memref<16x128xf32, #tpu.memory_space<vmem>>, vector<2x128xf32>
    tpu.vector_store %arg13[%c12_60, %c0_61], %227 {strides = array<i32>} : memref<16x128xf32, #tpu.memory_space<vmem>>, vector<2x128xf32>,
    %c14 = arith.constant 14 : index
    %c0_62 = arith.constant 0 : index
    %229 = vector.load %arg12[%c14, %c0_62] : memref<16x384xf32, #tpu.memory_space<vmem>>, vector<2x384xf32>
    %230 = arith.truncf %227 : vector<2x128xf32> to vector<2x128xbf16>
    %cst_63 = arith.constant dense<0.000000e+00> : vector<2x384xf32>
    %231 = tpu.matmul %230, %7, %cst_63 {dimension_numbers = #tpu.dot_dimension_numbers<[1], [0], [0], [1], [0, 0, 1, 1], [], []>} : vector<2x128xbf16>, vector<128x384xbf16>, vector<2x384xf32> -> vector<2x384xf32>
    %232 = vector.extract_strided_slice %229 {offsets = [0, 0], sizes = [2, 128], strides = [1, 1]} : vector<2x384xf32> to vector<2x128xf32>
    %233 = vector.extract_strided_slice %231 {offsets = [0, 0], sizes = [2, 128], strides = [1, 1]} : vector<2x384xf32> to vector<2x128xf32>
    %234 = arith.addf %232, %233 : vector<2x128xf32>
    %235 = arith.negf %234 : vector<2x128xf32>
    %236 = math.exp %235 : vector<2x128xf32>
    %cst_64 = arith.constant 1.000000e+00 : f32
    %237 = vector.broadcast %cst_64 : f32 to vector<2x128xf32>
    %238 = arith.addf %237, %236 : vector<2x128xf32>
    %239 = arith.divf %237, %238 : vector<2x128xf32>
    %240 = vector.extract_strided_slice %229 {offsets = [0, 128], sizes = [2, 128], strides = [1, 1]} : vector<2x384xf32> to vector<2x128xf32>
    %241 = vector.extract_strided_slice %231 {offsets = [0, 128], sizes = [2, 128], strides = [1, 1]} : vector<2x384xf32> to vector<2x128xf32>
    %242 = arith.addf %240, %241 : vector<2x128xf32>
    %243 = arith.negf %242 : vector<2x128xf32>
    %244 = math.exp %243 : vector<2x128xf32>
    %cst_65 = arith.constant 1.000000e+00 : f32
    %245 = vector.broadcast %cst_65 : f32 to vector<2x128xf32>
    %246 = arith.addf %245, %244 : vector<2x128xf32>
    %247 = arith.divf %245, %246 : vector<2x128xf32>
    %248 = vector.extract_strided_slice %229 {offsets = [0, 256], sizes = [2, 128], strides = [1, 1]} : vector<2x384xf32> to vector<2x128xf32>
    %249 = vector.extract_strided_slice %231 {offsets = [0, 256], sizes = [2, 128], strides = [1, 1]} : vector<2x384xf32> to vector<2x128xf32>
    %250 = arith.addf %249, %10 : vector<2x128xf32>
    %251 = arith.mulf %239, %250 : vector<2x128xf32>
    %252 = arith.addf %248, %251 : vector<2x128xf32>
    %253 = math.tanh %252 : vector<2x128xf32>
    %cst_66 = arith.constant 1.000000e+00 : f32
    %254 = vector.broadcast %cst_66 : f32 to vector<2x128xf32>
    %255 = arith.subf %254, %247 : vector<2x128xf32>
    %256 = arith.mulf %255, %253 : vector<2x128xf32>
    %257 = arith.mulf %247, %227 : vector<2x128xf32>
    %258 = arith.addf %256, %257 : vector<2x128xf32>
    %c14_67 = arith.constant 14 : index
    %c0_68 = arith.constant 0 : index
    %259 = vector.load %arg13[%c14_67, %c0_68] : memref<16x128xf32, #tpu.memory_space<vmem>>, vector<2x128xf32>
    tpu.vector_store %arg13[%c14_67, %c0_68], %258 {strides = array<i32>} : memref<16x128xf32, #tpu.memory_space<vmem>>, vector<2x128xf32>,
    %c0_69 = arith.constant 0 : index
    %c0_70 = arith.constant 0 : index
    %260 = vector.load %arg13[%c0_69, %c0_70] : memref<16x128xf32, #tpu.memory_space<vmem>>, vector<16x128xf32>
    %261 = arith.truncf %260 : vector<16x128xf32> to vector<16x128xbf16>
    %c0_71 = arith.constant 0 : index
    %c0_72 = arith.constant 0 : index
    %262 = vector.load %arg5[%c0_71, %c0_72] : memref<128x384xbf16, #tpu.memory_space<vmem>>, vector<128x384xbf16>
    %cst_73 = arith.constant dense<0.000000e+00> : vector<16x384xf32>
    %263 = tpu.matmul %261, %262, %cst_73 {dimension_numbers = #tpu.dot_dimension_numbers<[1], [0], [0], [1], [0, 0, 1, 1], [], []>} : vector<16x128xbf16>, vector<128x384xbf16>, vector<16x384xf32> -> vector<16x384xf32>
    %c0_74 = arith.constant 0 : index
    %c0_75 = arith.constant 0 : index
    %264 = vector.load %arg7[%c0_74, %c0_75] : memref<1x384xf32, #tpu.memory_space<vmem>>, vector<1x384xf32>
    %265 = vector.broadcast %264 : vector<1x384xf32> to vector<16x384xf32>
    %266 = arith.addf %263, %265 : vector<16x384xf32>
    %c0_76 = arith.constant 0 : index
    %c0_77 = arith.constant 0 : index
    %267 = vector.load %arg12[%c0_76, %c0_77] : memref<16x384xf32, #tpu.memory_space<vmem>>, vector<16x384xf32>
    tpu.vector_store %arg12[%c0_76, %c0_77], %266 {strides = array<i32>} : memref<16x384xf32, #tpu.memory_space<vmem>>, vector<16x384xf32>,
    %c0_78 = arith.constant 0 : index
    %c0_79 = arith.constant 0 : index
    %268 = vector.load %arg6[%c0_78, %c0_79] : memref<128x384xbf16, #tpu.memory_space<vmem>>, vector<128x384xbf16>
    %c0_80 = arith.constant 0 : index
    %c0_81 = arith.constant 0 : index
    %269 = vector.load %arg8[%c0_80, %c0_81] : memref<1x128xf32, #tpu.memory_space<vmem>>, vector<1x128xf32>
    %270 = vector.shape_cast %269 : vector<1x128xf32> to vector<1x128xf32>
    %271 = vector.broadcast %270 : vector<1x128xf32> to vector<2x128xf32>
    %cst_82 = arith.constant 0.000000e+00 : f32
    %272 = vector.broadcast %cst_82 : f32 to vector<2x128xf32>
    %c0_83 = arith.constant 0 : index
    %c0_84 = arith.constant 0 : index
    %273 = vector.load %arg12[%c0_83, %c0_84] : memref<16x384xf32, #tpu.memory_space<vmem>>, vector<2x384xf32>
    %274 = arith.truncf %272 : vector<2x128xf32> to vector<2x128xbf16>
    %cst_85 = arith.constant dense<0.000000e+00> : vector<2x384xf32>
    %275 = tpu.matmul %274, %268, %cst_85 {dimension_numbers = #tpu.dot_dimension_numbers<[1], [0], [0], [1], [0, 0, 1, 1], [], []>} : vector<2x128xbf16>, vector<128x384xbf16>, vector<2x384xf32> -> vector<2x384xf32>
    %276 = vector.extract_strided_slice %273 {offsets = [0, 0], sizes = [2, 128], strides = [1, 1]} : vector<2x384xf32> to vector<2x128xf32>
    %277 = vector.extract_strided_slice %275 {offsets = [0, 0], sizes = [2, 128], strides = [1, 1]} : vector<2x384xf32> to vector<2x128xf32>
    %278 = arith.addf %276, %277 : vector<2x128xf32>
    %279 = arith.negf %278 : vector<2x128xf32>
    %280 = math.exp %279 : vector<2x128xf32>
    %cst_86 = arith.constant 1.000000e+00 : f32
    %281 = vector.broadcast %cst_86 : f32 to vector<2x128xf32>
    %282 = arith.addf %281, %280 : vector<2x128xf32>
    %283 = arith.divf %281, %282 : vector<2x128xf32>
    %284 = vector.extract_strided_slice %273 {offsets = [0, 128], sizes = [2, 128], strides = [1, 1]} : vector<2x384xf32> to vector<2x128xf32>
    %285 = vector.extract_strided_slice %275 {offsets = [0, 128], sizes = [2, 128], strides = [1, 1]} : vector<2x384xf32> to vector<2x128xf32>
    %286 = arith.addf %284, %285 : vector<2x128xf32>
    %287 = arith.negf %286 : vector<2x128xf32>
    %288 = math.exp %287 : vector<2x128xf32>
    %cst_87 = arith.constant 1.000000e+00 : f32
    %289 = vector.broadcast %cst_87 : f32 to vector<2x128xf32>
    %290 = arith.addf %289, %288 : vector<2x128xf32>
    %291 = arith.divf %289, %290 : vector<2x128xf32>
    %292 = vector.extract_strided_slice %273 {offsets = [0, 256], sizes = [2, 128], strides = [1, 1]} : vector<2x384xf32> to vector<2x128xf32>
    %293 = vector.extract_strided_slice %275 {offsets = [0, 256], sizes = [2, 128], strides = [1, 1]} : vector<2x384xf32> to vector<2x128xf32>
    %294 = arith.addf %293, %271 : vector<2x128xf32>
    %295 = arith.mulf %283, %294 : vector<2x128xf32>
    %296 = arith.addf %292, %295 : vector<2x128xf32>
    %297 = math.tanh %296 : vector<2x128xf32>
    %cst_88 = arith.constant 1.000000e+00 : f32
    %298 = vector.broadcast %cst_88 : f32 to vector<2x128xf32>
    %299 = arith.subf %298, %291 : vector<2x128xf32>
    %300 = arith.mulf %299, %297 : vector<2x128xf32>
    %301 = arith.mulf %291, %272 : vector<2x128xf32>
    %302 = arith.addf %300, %301 : vector<2x128xf32>
    %c0_89 = arith.constant 0 : index
    %c0_90 = arith.constant 0 : index
    %303 = vector.load %arg13[%c0_89, %c0_90] : memref<16x128xf32, #tpu.memory_space<vmem>>, vector<2x128xf32>
    tpu.vector_store %arg13[%c0_89, %c0_90], %302 {strides = array<i32>} : memref<16x128xf32, #tpu.memory_space<vmem>>, vector<2x128xf32>,
    %c2_91 = arith.constant 2 : index
    %c0_92 = arith.constant 0 : index
    %304 = vector.load %arg12[%c2_91, %c0_92] : memref<16x384xf32, #tpu.memory_space<vmem>>, vector<2x384xf32>
    %305 = arith.truncf %302 : vector<2x128xf32> to vector<2x128xbf16>
    %cst_93 = arith.constant dense<0.000000e+00> : vector<2x384xf32>
    %306 = tpu.matmul %305, %268, %cst_93 {dimension_numbers = #tpu.dot_dimension_numbers<[1], [0], [0], [1], [0, 0, 1, 1], [], []>} : vector<2x128xbf16>, vector<128x384xbf16>, vector<2x384xf32> -> vector<2x384xf32>
    %307 = vector.extract_strided_slice %304 {offsets = [0, 0], sizes = [2, 128], strides = [1, 1]} : vector<2x384xf32> to vector<2x128xf32>
    %308 = vector.extract_strided_slice %306 {offsets = [0, 0], sizes = [2, 128], strides = [1, 1]} : vector<2x384xf32> to vector<2x128xf32>
    %309 = arith.addf %307, %308 : vector<2x128xf32>
    %310 = arith.negf %309 : vector<2x128xf32>
    %311 = math.exp %310 : vector<2x128xf32>
    %cst_94 = arith.constant 1.000000e+00 : f32
    %312 = vector.broadcast %cst_94 : f32 to vector<2x128xf32>
    %313 = arith.addf %312, %311 : vector<2x128xf32>
    %314 = arith.divf %312, %313 : vector<2x128xf32>
    %315 = vector.extract_strided_slice %304 {offsets = [0, 128], sizes = [2, 128], strides = [1, 1]} : vector<2x384xf32> to vector<2x128xf32>
    %316 = vector.extract_strided_slice %306 {offsets = [0, 128], sizes = [2, 128], strides = [1, 1]} : vector<2x384xf32> to vector<2x128xf32>
    %317 = arith.addf %315, %316 : vector<2x128xf32>
    %318 = arith.negf %317 : vector<2x128xf32>
    %319 = math.exp %318 : vector<2x128xf32>
    %cst_95 = arith.constant 1.000000e+00 : f32
    %320 = vector.broadcast %cst_95 : f32 to vector<2x128xf32>
    %321 = arith.addf %320, %319 : vector<2x128xf32>
    %322 = arith.divf %320, %321 : vector<2x128xf32>
    %323 = vector.extract_strided_slice %304 {offsets = [0, 256], sizes = [2, 128], strides = [1, 1]} : vector<2x384xf32> to vector<2x128xf32>
    %324 = vector.extract_strided_slice %306 {offsets = [0, 256], sizes = [2, 128], strides = [1, 1]} : vector<2x384xf32> to vector<2x128xf32>
    %325 = arith.addf %324, %271 : vector<2x128xf32>
    %326 = arith.mulf %314, %325 : vector<2x128xf32>
    %327 = arith.addf %323, %326 : vector<2x128xf32>
    %328 = math.tanh %327 : vector<2x128xf32>
    %cst_96 = arith.constant 1.000000e+00 : f32
    %329 = vector.broadcast %cst_96 : f32 to vector<2x128xf32>
    %330 = arith.subf %329, %322 : vector<2x128xf32>
    %331 = arith.mulf %330, %328 : vector<2x128xf32>
    %332 = arith.mulf %322, %302 : vector<2x128xf32>
    %333 = arith.addf %331, %332 : vector<2x128xf32>
    %c2_97 = arith.constant 2 : index
    %c0_98 = arith.constant 0 : index
    %334 = vector.load %arg13[%c2_97, %c0_98] : memref<16x128xf32, #tpu.memory_space<vmem>>, vector<2x128xf32>
    tpu.vector_store %arg13[%c2_97, %c0_98], %333 {strides = array<i32>} : memref<16x128xf32, #tpu.memory_space<vmem>>, vector<2x128xf32>,
    %c4_99 = arith.constant 4 : index
    %c0_100 = arith.constant 0 : index
    %335 = vector.load %arg12[%c4_99, %c0_100] : memref<16x384xf32, #tpu.memory_space<vmem>>, vector<2x384xf32>
    %336 = arith.truncf %333 : vector<2x128xf32> to vector<2x128xbf16>
    %cst_101 = arith.constant dense<0.000000e+00> : vector<2x384xf32>
    %337 = tpu.matmul %336, %268, %cst_101 {dimension_numbers = #tpu.dot_dimension_numbers<[1], [0], [0], [1], [0, 0, 1, 1], [], []>} : vector<2x128xbf16>, vector<128x384xbf16>, vector<2x384xf32> -> vector<2x384xf32>
    %338 = vector.extract_strided_slice %335 {offsets = [0, 0], sizes = [2, 128], strides = [1, 1]} : vector<2x384xf32> to vector<2x128xf32>
    %339 = vector.extract_strided_slice %337 {offsets = [0, 0], sizes = [2, 128], strides = [1, 1]} : vector<2x384xf32> to vector<2x128xf32>
    %340 = arith.addf %338, %339 : vector<2x128xf32>
    %341 = arith.negf %340 : vector<2x128xf32>
    %342 = math.exp %341 : vector<2x128xf32>
    %cst_102 = arith.constant 1.000000e+00 : f32
    %343 = vector.broadcast %cst_102 : f32 to vector<2x128xf32>
    %344 = arith.addf %343, %342 : vector<2x128xf32>
    %345 = arith.divf %343, %344 : vector<2x128xf32>
    %346 = vector.extract_strided_slice %335 {offsets = [0, 128], sizes = [2, 128], strides = [1, 1]} : vector<2x384xf32> to vector<2x128xf32>
    %347 = vector.extract_strided_slice %337 {offsets = [0, 128], sizes = [2, 128], strides = [1, 1]} : vector<2x384xf32> to vector<2x128xf32>
    %348 = arith.addf %346, %347 : vector<2x128xf32>
    %349 = arith.negf %348 : vector<2x128xf32>
    %350 = math.exp %349 : vector<2x128xf32>
    %cst_103 = arith.constant 1.000000e+00 : f32
    %351 = vector.broadcast %cst_103 : f32 to vector<2x128xf32>
    %352 = arith.addf %351, %350 : vector<2x128xf32>
    %353 = arith.divf %351, %352 : vector<2x128xf32>
    %354 = vector.extract_strided_slice %335 {offsets = [0, 256], sizes = [2, 128], strides = [1, 1]} : vector<2x384xf32> to vector<2x128xf32>
    %355 = vector.extract_strided_slice %337 {offsets = [0, 256], sizes = [2, 128], strides = [1, 1]} : vector<2x384xf32> to vector<2x128xf32>
    %356 = arith.addf %355, %271 : vector<2x128xf32>
    %357 = arith.mulf %345, %356 : vector<2x128xf32>
    %358 = arith.addf %354, %357 : vector<2x128xf32>
    %359 = math.tanh %358 : vector<2x128xf32>
    %cst_104 = arith.constant 1.000000e+00 : f32
    %360 = vector.broadcast %cst_104 : f32 to vector<2x128xf32>
    %361 = arith.subf %360, %353 : vector<2x128xf32>
    %362 = arith.mulf %361, %359 : vector<2x128xf32>
    %363 = arith.mulf %353, %333 : vector<2x128xf32>
    %364 = arith.addf %362, %363 : vector<2x128xf32>
    %c4_105 = arith.constant 4 : index
    %c0_106 = arith.constant 0 : index
    %365 = vector.load %arg13[%c4_105, %c0_106] : memref<16x128xf32, #tpu.memory_space<vmem>>, vector<2x128xf32>
    tpu.vector_store %arg13[%c4_105, %c0_106], %364 {strides = array<i32>} : memref<16x128xf32, #tpu.memory_space<vmem>>, vector<2x128xf32>,
    %c6_107 = arith.constant 6 : index
    %c0_108 = arith.constant 0 : index
    %366 = vector.load %arg12[%c6_107, %c0_108] : memref<16x384xf32, #tpu.memory_space<vmem>>, vector<2x384xf32>
    %367 = arith.truncf %364 : vector<2x128xf32> to vector<2x128xbf16>
    %cst_109 = arith.constant dense<0.000000e+00> : vector<2x384xf32>
    %368 = tpu.matmul %367, %268, %cst_109 {dimension_numbers = #tpu.dot_dimension_numbers<[1], [0], [0], [1], [0, 0, 1, 1], [], []>} : vector<2x128xbf16>, vector<128x384xbf16>, vector<2x384xf32> -> vector<2x384xf32>
    %369 = vector.extract_strided_slice %366 {offsets = [0, 0], sizes = [2, 128], strides = [1, 1]} : vector<2x384xf32> to vector<2x128xf32>
    %370 = vector.extract_strided_slice %368 {offsets = [0, 0], sizes = [2, 128], strides = [1, 1]} : vector<2x384xf32> to vector<2x128xf32>
    %371 = arith.addf %369, %370 : vector<2x128xf32>
    %372 = arith.negf %371 : vector<2x128xf32>
    %373 = math.exp %372 : vector<2x128xf32>
    %cst_110 = arith.constant 1.000000e+00 : f32
    %374 = vector.broadcast %cst_110 : f32 to vector<2x128xf32>
    %375 = arith.addf %374, %373 : vector<2x128xf32>
    %376 = arith.divf %374, %375 : vector<2x128xf32>
    %377 = vector.extract_strided_slice %366 {offsets = [0, 128], sizes = [2, 128], strides = [1, 1]} : vector<2x384xf32> to vector<2x128xf32>
    %378 = vector.extract_strided_slice %368 {offsets = [0, 128], sizes = [2, 128], strides = [1, 1]} : vector<2x384xf32> to vector<2x128xf32>
    %379 = arith.addf %377, %378 : vector<2x128xf32>
    %380 = arith.negf %379 : vector<2x128xf32>
    %381 = math.exp %380 : vector<2x128xf32>
    %cst_111 = arith.constant 1.000000e+00 : f32
    %382 = vector.broadcast %cst_111 : f32 to vector<2x128xf32>
    %383 = arith.addf %382, %381 : vector<2x128xf32>
    %384 = arith.divf %382, %383 : vector<2x128xf32>
    %385 = vector.extract_strided_slice %366 {offsets = [0, 256], sizes = [2, 128], strides = [1, 1]} : vector<2x384xf32> to vector<2x128xf32>
    %386 = vector.extract_strided_slice %368 {offsets = [0, 256], sizes = [2, 128], strides = [1, 1]} : vector<2x384xf32> to vector<2x128xf32>
    %387 = arith.addf %386, %271 : vector<2x128xf32>
    %388 = arith.mulf %376, %387 : vector<2x128xf32>
    %389 = arith.addf %385, %388 : vector<2x128xf32>
    %390 = math.tanh %389 : vector<2x128xf32>
    %cst_112 = arith.constant 1.000000e+00 : f32
    %391 = vector.broadcast %cst_112 : f32 to vector<2x128xf32>
    %392 = arith.subf %391, %384 : vector<2x128xf32>
    %393 = arith.mulf %392, %390 : vector<2x128xf32>
    %394 = arith.mulf %384, %364 : vector<2x128xf32>
    %395 = arith.addf %393, %394 : vector<2x128xf32>
    %c6_113 = arith.constant 6 : index
    %c0_114 = arith.constant 0 : index
    %396 = vector.load %arg13[%c6_113, %c0_114] : memref<16x128xf32, #tpu.memory_space<vmem>>, vector<2x128xf32>
    tpu.vector_store %arg13[%c6_113, %c0_114], %395 {strides = array<i32>} : memref<16x128xf32, #tpu.memory_space<vmem>>, vector<2x128xf32>,
    %c8_115 = arith.constant 8 : index
    %c0_116 = arith.constant 0 : index
    %397 = vector.load %arg12[%c8_115, %c0_116] : memref<16x384xf32, #tpu.memory_space<vmem>>, vector<2x384xf32>
    %398 = arith.truncf %395 : vector<2x128xf32> to vector<2x128xbf16>
    %cst_117 = arith.constant dense<0.000000e+00> : vector<2x384xf32>
    %399 = tpu.matmul %398, %268, %cst_117 {dimension_numbers = #tpu.dot_dimension_numbers<[1], [0], [0], [1], [0, 0, 1, 1], [], []>} : vector<2x128xbf16>, vector<128x384xbf16>, vector<2x384xf32> -> vector<2x384xf32>
    %400 = vector.extract_strided_slice %397 {offsets = [0, 0], sizes = [2, 128], strides = [1, 1]} : vector<2x384xf32> to vector<2x128xf32>
    %401 = vector.extract_strided_slice %399 {offsets = [0, 0], sizes = [2, 128], strides = [1, 1]} : vector<2x384xf32> to vector<2x128xf32>
    %402 = arith.addf %400, %401 : vector<2x128xf32>
    %403 = arith.negf %402 : vector<2x128xf32>
    %404 = math.exp %403 : vector<2x128xf32>
    %cst_118 = arith.constant 1.000000e+00 : f32
    %405 = vector.broadcast %cst_118 : f32 to vector<2x128xf32>
    %406 = arith.addf %405, %404 : vector<2x128xf32>
    %407 = arith.divf %405, %406 : vector<2x128xf32>
    %408 = vector.extract_strided_slice %397 {offsets = [0, 128], sizes = [2, 128], strides = [1, 1]} : vector<2x384xf32> to vector<2x128xf32>
    %409 = vector.extract_strided_slice %399 {offsets = [0, 128], sizes = [2, 128], strides = [1, 1]} : vector<2x384xf32> to vector<2x128xf32>
    %410 = arith.addf %408, %409 : vector<2x128xf32>
    %411 = arith.negf %410 : vector<2x128xf32>
    %412 = math.exp %411 : vector<2x128xf32>
    %cst_119 = arith.constant 1.000000e+00 : f32
    %413 = vector.broadcast %cst_119 : f32 to vector<2x128xf32>
    %414 = arith.addf %413, %412 : vector<2x128xf32>
    %415 = arith.divf %413, %414 : vector<2x128xf32>
    %416 = vector.extract_strided_slice %397 {offsets = [0, 256], sizes = [2, 128], strides = [1, 1]} : vector<2x384xf32> to vector<2x128xf32>
    %417 = vector.extract_strided_slice %399 {offsets = [0, 256], sizes = [2, 128], strides = [1, 1]} : vector<2x384xf32> to vector<2x128xf32>
    %418 = arith.addf %417, %271 : vector<2x128xf32>
    %419 = arith.mulf %407, %418 : vector<2x128xf32>
    %420 = arith.addf %416, %419 : vector<2x128xf32>
    %421 = math.tanh %420 : vector<2x128xf32>
    %cst_120 = arith.constant 1.000000e+00 : f32
    %422 = vector.broadcast %cst_120 : f32 to vector<2x128xf32>
    %423 = arith.subf %422, %415 : vector<2x128xf32>
    %424 = arith.mulf %423, %421 : vector<2x128xf32>
    %425 = arith.mulf %415, %395 : vector<2x128xf32>
    %426 = arith.addf %424, %425 : vector<2x128xf32>
    %c8_121 = arith.constant 8 : index
    %c0_122 = arith.constant 0 : index
    %427 = vector.load %arg13[%c8_121, %c0_122] : memref<16x128xf32, #tpu.memory_space<vmem>>, vector<2x128xf32>
    tpu.vector_store %arg13[%c8_121, %c0_122], %426 {strides = array<i32>} : memref<16x128xf32, #tpu.memory_space<vmem>>, vector<2x128xf32>,
    %c10_123 = arith.constant 10 : index
    %c0_124 = arith.constant 0 : index
    %428 = vector.load %arg12[%c10_123, %c0_124] : memref<16x384xf32, #tpu.memory_space<vmem>>, vector<2x384xf32>
    %429 = arith.truncf %426 : vector<2x128xf32> to vector<2x128xbf16>
    %cst_125 = arith.constant dense<0.000000e+00> : vector<2x384xf32>
    %430 = tpu.matmul %429, %268, %cst_125 {dimension_numbers = #tpu.dot_dimension_numbers<[1], [0], [0], [1], [0, 0, 1, 1], [], []>} : vector<2x128xbf16>, vector<128x384xbf16>, vector<2x384xf32> -> vector<2x384xf32>
    %431 = vector.extract_strided_slice %428 {offsets = [0, 0], sizes = [2, 128], strides = [1, 1]} : vector<2x384xf32> to vector<2x128xf32>
    %432 = vector.extract_strided_slice %430 {offsets = [0, 0], sizes = [2, 128], strides = [1, 1]} : vector<2x384xf32> to vector<2x128xf32>
    %433 = arith.addf %431, %432 : vector<2x128xf32>
    %434 = arith.negf %433 : vector<2x128xf32>
    %435 = math.exp %434 : vector<2x128xf32>
    %cst_126 = arith.constant 1.000000e+00 : f32
    %436 = vector.broadcast %cst_126 : f32 to vector<2x128xf32>
    %437 = arith.addf %436, %435 : vector<2x128xf32>
    %438 = arith.divf %436, %437 : vector<2x128xf32>
    %439 = vector.extract_strided_slice %428 {offsets = [0, 128], sizes = [2, 128], strides = [1, 1]} : vector<2x384xf32> to vector<2x128xf32>
    %440 = vector.extract_strided_slice %430 {offsets = [0, 128], sizes = [2, 128], strides = [1, 1]} : vector<2x384xf32> to vector<2x128xf32>
    %441 = arith.addf %439, %440 : vector<2x128xf32>
    %442 = arith.negf %441 : vector<2x128xf32>
    %443 = math.exp %442 : vector<2x128xf32>
    %cst_127 = arith.constant 1.000000e+00 : f32
    %444 = vector.broadcast %cst_127 : f32 to vector<2x128xf32>
    %445 = arith.addf %444, %443 : vector<2x128xf32>
    %446 = arith.divf %444, %445 : vector<2x128xf32>
    %447 = vector.extract_strided_slice %428 {offsets = [0, 256], sizes = [2, 128], strides = [1, 1]} : vector<2x384xf32> to vector<2x128xf32>
    %448 = vector.extract_strided_slice %430 {offsets = [0, 256], sizes = [2, 128], strides = [1, 1]} : vector<2x384xf32> to vector<2x128xf32>
    %449 = arith.addf %448, %271 : vector<2x128xf32>
    %450 = arith.mulf %438, %449 : vector<2x128xf32>
    %451 = arith.addf %447, %450 : vector<2x128xf32>
    %452 = math.tanh %451 : vector<2x128xf32>
    %cst_128 = arith.constant 1.000000e+00 : f32
    %453 = vector.broadcast %cst_128 : f32 to vector<2x128xf32>
    %454 = arith.subf %453, %446 : vector<2x128xf32>
    %455 = arith.mulf %454, %452 : vector<2x128xf32>
    %456 = arith.mulf %446, %426 : vector<2x128xf32>
    %457 = arith.addf %455, %456 : vector<2x128xf32>
    %c10_129 = arith.constant 10 : index
    %c0_130 = arith.constant 0 : index
    %458 = vector.load %arg13[%c10_129, %c0_130] : memref<16x128xf32, #tpu.memory_space<vmem>>, vector<2x128xf32>
    tpu.vector_store %arg13[%c10_129, %c0_130], %457 {strides = array<i32>} : memref<16x128xf32, #tpu.memory_space<vmem>>, vector<2x128xf32>,
    %c12_131 = arith.constant 12 : index
    %c0_132 = arith.constant 0 : index
    %459 = vector.load %arg12[%c12_131, %c0_132] : memref<16x384xf32, #tpu.memory_space<vmem>>, vector<2x384xf32>
    %460 = arith.truncf %457 : vector<2x128xf32> to vector<2x128xbf16>
    %cst_133 = arith.constant dense<0.000000e+00> : vector<2x384xf32>
    %461 = tpu.matmul %460, %268, %cst_133 {dimension_numbers = #tpu.dot_dimension_numbers<[1], [0], [0], [1], [0, 0, 1, 1], [], []>} : vector<2x128xbf16>, vector<128x384xbf16>, vector<2x384xf32> -> vector<2x384xf32>
    %462 = vector.extract_strided_slice %459 {offsets = [0, 0], sizes = [2, 128], strides = [1, 1]} : vector<2x384xf32> to vector<2x128xf32>
    %463 = vector.extract_strided_slice %461 {offsets = [0, 0], sizes = [2, 128], strides = [1, 1]} : vector<2x384xf32> to vector<2x128xf32>
    %464 = arith.addf %462, %463 : vector<2x128xf32>
    %465 = arith.negf %464 : vector<2x128xf32>
    %466 = math.exp %465 : vector<2x128xf32>
    %cst_134 = arith.constant 1.000000e+00 : f32
    %467 = vector.broadcast %cst_134 : f32 to vector<2x128xf32>
    %468 = arith.addf %467, %466 : vector<2x128xf32>
    %469 = arith.divf %467, %468 : vector<2x128xf32>
    %470 = vector.extract_strided_slice %459 {offsets = [0, 128], sizes = [2, 128], strides = [1, 1]} : vector<2x384xf32> to vector<2x128xf32>
    %471 = vector.extract_strided_slice %461 {offsets = [0, 128], sizes = [2, 128], strides = [1, 1]} : vector<2x384xf32> to vector<2x128xf32>
    %472 = arith.addf %470, %471 : vector<2x128xf32>
    %473 = arith.negf %472 : vector<2x128xf32>
    %474 = math.exp %473 : vector<2x128xf32>
    %cst_135 = arith.constant 1.000000e+00 : f32
    %475 = vector.broadcast %cst_135 : f32 to vector<2x128xf32>
    %476 = arith.addf %475, %474 : vector<2x128xf32>
    %477 = arith.divf %475, %476 : vector<2x128xf32>
    %478 = vector.extract_strided_slice %459 {offsets = [0, 256], sizes = [2, 128], strides = [1, 1]} : vector<2x384xf32> to vector<2x128xf32>
    %479 = vector.extract_strided_slice %461 {offsets = [0, 256], sizes = [2, 128], strides = [1, 1]} : vector<2x384xf32> to vector<2x128xf32>
    %480 = arith.addf %479, %271 : vector<2x128xf32>
    %481 = arith.mulf %469, %480 : vector<2x128xf32>
    %482 = arith.addf %478, %481 : vector<2x128xf32>
    %483 = math.tanh %482 : vector<2x128xf32>
    %cst_136 = arith.constant 1.000000e+00 : f32
    %484 = vector.broadcast %cst_136 : f32 to vector<2x128xf32>
    %485 = arith.subf %484, %477 : vector<2x128xf32>
    %486 = arith.mulf %485, %483 : vector<2x128xf32>
    %487 = arith.mulf %477, %457 : vector<2x128xf32>
    %488 = arith.addf %486, %487 : vector<2x128xf32>
    %c12_137 = arith.constant 12 : index
    %c0_138 = arith.constant 0 : index
    %489 = vector.load %arg13[%c12_137, %c0_138] : memref<16x128xf32, #tpu.memory_space<vmem>>, vector<2x128xf32>
    tpu.vector_store %arg13[%c12_137, %c0_138], %488 {strides = array<i32>} : memref<16x128xf32, #tpu.memory_space<vmem>>, vector<2x128xf32>,
    %c14_139 = arith.constant 14 : index
    %c0_140 = arith.constant 0 : index
    %490 = vector.load %arg12[%c14_139, %c0_140] : memref<16x384xf32, #tpu.memory_space<vmem>>, vector<2x384xf32>
    %491 = arith.truncf %488 : vector<2x128xf32> to vector<2x128xbf16>
    %cst_141 = arith.constant dense<0.000000e+00> : vector<2x384xf32>
    %492 = tpu.matmul %491, %268, %cst_141 {dimension_numbers = #tpu.dot_dimension_numbers<[1], [0], [0], [1], [0, 0, 1, 1], [], []>} : vector<2x128xbf16>, vector<128x384xbf16>, vector<2x384xf32> -> vector<2x384xf32>
    %493 = vector.extract_strided_slice %490 {offsets = [0, 0], sizes = [2, 128], strides = [1, 1]} : vector<2x384xf32> to vector<2x128xf32>
    %494 = vector.extract_strided_slice %492 {offsets = [0, 0], sizes = [2, 128], strides = [1, 1]} : vector<2x384xf32> to vector<2x128xf32>
    %495 = arith.addf %493, %494 : vector<2x128xf32>
    %496 = arith.negf %495 : vector<2x128xf32>
    %497 = math.exp %496 : vector<2x128xf32>
    %cst_142 = arith.constant 1.000000e+00 : f32
    %498 = vector.broadcast %cst_142 : f32 to vector<2x128xf32>
    %499 = arith.addf %498, %497 : vector<2x128xf32>
    %500 = arith.divf %498, %499 : vector<2x128xf32>
    %501 = vector.extract_strided_slice %490 {offsets = [0, 128], sizes = [2, 128], strides = [1, 1]} : vector<2x384xf32> to vector<2x128xf32>
    %502 = vector.extract_strided_slice %492 {offsets = [0, 128], sizes = [2, 128], strides = [1, 1]} : vector<2x384xf32> to vector<2x128xf32>
    %503 = arith.addf %501, %502 : vector<2x128xf32>
    %504 = arith.negf %503 : vector<2x128xf32>
    %505 = math.exp %504 : vector<2x128xf32>
    %cst_143 = arith.constant 1.000000e+00 : f32
    %506 = vector.broadcast %cst_143 : f32 to vector<2x128xf32>
    %507 = arith.addf %506, %505 : vector<2x128xf32>
    %508 = arith.divf %506, %507 : vector<2x128xf32>
    %509 = vector.extract_strided_slice %490 {offsets = [0, 256], sizes = [2, 128], strides = [1, 1]} : vector<2x384xf32> to vector<2x128xf32>
    %510 = vector.extract_strided_slice %492 {offsets = [0, 256], sizes = [2, 128], strides = [1, 1]} : vector<2x384xf32> to vector<2x128xf32>
    %511 = arith.addf %510, %271 : vector<2x128xf32>
    %512 = arith.mulf %500, %511 : vector<2x128xf32>
    %513 = arith.addf %509, %512 : vector<2x128xf32>
    %514 = math.tanh %513 : vector<2x128xf32>
    %cst_144 = arith.constant 1.000000e+00 : f32
    %515 = vector.broadcast %cst_144 : f32 to vector<2x128xf32>
    %516 = arith.subf %515, %508 : vector<2x128xf32>
    %517 = arith.mulf %516, %514 : vector<2x128xf32>
    %518 = arith.mulf %508, %488 : vector<2x128xf32>
    %519 = arith.addf %517, %518 : vector<2x128xf32>
    %c14_145 = arith.constant 14 : index
    %c0_146 = arith.constant 0 : index
    %520 = vector.load %arg13[%c14_145, %c0_146] : memref<16x128xf32, #tpu.memory_space<vmem>>, vector<2x128xf32>
    tpu.vector_store %arg13[%c14_145, %c0_146], %519 {strides = array<i32>} : memref<16x128xf32, #tpu.memory_space<vmem>>, vector<2x128xf32>,
    %c0_147 = arith.constant 0 : index
    %c0_148 = arith.constant 0 : index
    %521 = vector.load %arg13[%c0_147, %c0_148] : memref<16x128xf32, #tpu.memory_space<vmem>>, vector<16x128xf32>
    %c0_149 = arith.constant 0 : index
    %c0_150 = arith.constant 0 : index
    %522 = vector.load %arg9[%c0_149, %c0_150] : memref<1x128xf32, #tpu.memory_space<vmem>>, vector<1x128xf32>
    %523 = tpu.transpose %521, [1, 0] : vector<16x128xf32> -> vector<128x16xf32>
    %cst_151 = arith.constant dense<0.000000e+00> : vector<1x16xf32>
    %524 = tpu.matmul %522, %523, %cst_151 {dimension_numbers = #tpu.dot_dimension_numbers<[1], [0], [0], [1], [0, 0, 1, 1], [], []>} : vector<1x128xf32>, vector<128x16xf32>, vector<1x16xf32> -> vector<1x16xf32>
    %c0_152 = arith.constant 0 : index
    %c0_153 = arith.constant 0 : index
    %525 = vector.load %arg10[%c0_152, %c0_153] : memref<1x1xf32, #tpu.memory_space<vmem>>, vector<1x1xf32>
    %526 = vector.broadcast %525 : vector<1x1xf32> to vector<1x16xf32>
    %527 = arith.addf %524, %526 : vector<1x16xf32>
    %c0_154 = arith.constant 0 : index
    %c0_155 = arith.constant 0 : index
    %528 = vector.load %arg11[%c0_154, %c0_155] : memref<1x16xf32, #tpu.memory_space<vmem>>, vector<1x16xf32>
    tpu.vector_store %arg11[%c0_154, %c0_155], %527 {strides = array<i32>} : memref<1x16xf32, #tpu.memory_space<vmem>>, vector<1x16xf32>,
    return
  }
}

</mosaic_0001>

<bundles_post_ra>
// kernel: posthoc_rnn_predictor.1
= control target key start
LH: loop header
LB: loop body
LE: loop exit
PB: predicated region body
PF: predicated region fallthrough
CT: control target
= control target key end

     0   :  { %v46_v0 = vlaneseq  ;;  %v3719_v1 = vmov 1983009808   ;;  %v3720_v3 = vmov 0   ;;  %v3721_v7 = vmov 0.0   ;;  %s4921_s1 = inlined_call_operand.vmem [shape: bf16[4,384], index: 1, kind: input, shape index: {}]   ;;  %s4922_s0 = inlined_call_operand.vmem [shape: bf16[16,4], index: 0, kind: input, shape index: {}]   ;;  %s4923_s2 = inlined_call_operand.vmem [shape: bf16[128,384], index: 2, kind: input, shape index: {}]   ;;  %s4924_s3 = inlined_call_operand.vmem [shape: f32[1,384], index: 3, kind: input, shape index: {}]   ;;  %s4925_s4 = inlined_call_operand.vmem [shape: f32[1,128], index: 4, kind: input, shape index: {}]   ;;  %s4926_s5 = inlined_call_operand.vmem [shape: bf16[128,384], index: 5, kind: input, shape index: {}]   ;;  %s4927_s6 = inlined_call_operand.vmem [shape: bf16[128,384], index: 6, kind: input, shape index: {}]   ;;  %s4928_s7 = inlined_call_operand.vmem [shape: f32[1,384], index: 7, kind: input, shape index: {}]   ;;  %s4929_s8 = inlined_call_operand.vmem [shape: f32[1,128], index: 8, kind: input, shape index: {}]   ;;  %s4930_s10 = inlined_call_operand.<no memory space> [shape: f32[1,1], index: 10, kind: input, shape index: {}]   ;;  %s4931_s9 = inlined_call_operand.vmem [shape: f32[1,128], index: 9, kind: input, shape index: {}]   ;;  %s4932_s11 = inlined_call_operand.vmem [shape: f32[1,16], index: 11, kind: output, shape index: {}]  }
   0x1   :  { %v69_v2 = vunpack.c.l.s4 %v3719_v1  ;;  %129 = vmatprep.mubr.bf16.mxu0 %v3720_v3  ;;  %3411 = vset.pattern.permute.xlu0 %v3720_v3  ;;  %v43_v4 = vld [vmem:[%s4921_s1] sm:$0x3f]  ;;  %vm3722_vm0 = vmmov 0   ;;  %vm87_vm1 = vcmask 1041408   ;;  %v3797_v14 = vld [vmem:[%s4923_s2 + $0xac] ss:$12 sps:$4 sm:$0xff]  }
   0x2   :  { %v3788_v5 = vshrl.u32 %v46_v0, 7  ;;  %3054 = vmatprep.subr.bf16.mxu1 %v3721_v7  ;;  %v67_v8 = vcombine.high %v43_v4, %v43_v4  ;;  %3056 = vmatprep.mubr.msk.bf16.mxu1 %vm3722_vm0, %v3721_v7  ;;  %v3412_v16 = vld [vmem:[%s4922_s0] sm:$0xff]   ;;  %v3805_v17 = vld [vmem:[%s4923_s2 + $0xa8] ss:$12 sps:$4 sm:$0xff]   ;;  %vm83_vm2 = vcmask 31744   ;;  %vm2780_vm3 = vcmask 122880  }
   0x3   :  { %v70_v6 = vunpack.c.0.s8 %v69_v2  ;;  %v3811_v18 = vld [vmem:[%s4923_s2 + $0xb0] ss:$12 sps:$4 sm:$0xff]   ;;  %v3817_v19 = vld [vmem:[%s4923_s2 + $0x94] ss:$12 sps:$4 sm:$0xff]   ;;  %v3823_v20 = vld [vmem:[%s4923_s2 + $0x98] ss:$12 sps:$4 sm:$0xff]  }
   0x4   :  { %v3832_v21 = vld [vmem:[%s4923_s2 + $0x90] ss:$12 sps:$4 sm:$0xff]   ;;  %v3845_v23 = vld [vmem:[%s4923_s2 + $0x80] ss:$12 sps:$4 sm:$0xff]   ;;  %v3852_v24 = vld [vmem:[%s4923_s2 + $0x78] ss:$12 sps:$4 sm:$0xff]  }
   0x5   :  { %v73_v9 = vsub.s32 %v70_v6, %v3788_v5  ;;  %v3839_v22 = vld [vmem:[%s4923_s2 + $0x7c] ss:$12 sps:$4 sm:$0xff]   ;;  %v3858_v25 = vld [vmem:[%s4923_s2 + $0x64] ss:$12 sps:$4 sm:$0xff]   ;;  %v3871_v27 = vld [vmem:[%s4923_s2 + $0x60] ss:$12 sps:$4 sm:$0xff]  }
   0x6   :  { %v3864_v26 = vld [vmem:[%s4923_s2 + $0x68] ss:$12 sps:$4 sm:$0xff]   ;;  %v3877_v28 = vld [vmem:[%s4923_s2 + $0x4c] ss:$12 sps:$4 sm:$0xff]   ;;  %v3883_v29 = vld [vmem:[%s4923_s2 + $0x50] ss:$12 sps:$4 sm:$0xff]  }
   0x7   :  { %v74_v10 = vrot.slane %v43_v4, %v73_v9  ;;  %v81_v11 = vrot.slane %v67_v8, %v73_v9  ;;  %v3890_v30 = vld [vmem:[%s4923_s2 + $0x48] ss:$12 sps:$4 sm:$0xff]   ;;  %v3902_v32 = vld [vmem:[%s4923_s2 + $0x38] ss:$12 sps:$4 sm:$0xff]   ;;  %v3909_v33 = vld [vmem:[%s4923_s2 + $0x30] ss:$12 sps:$4 sm:$0xff]  }
   0x8   :  { %v3896_v31 = vld [vmem:[%s4923_s2 + $0x34] ss:$12 sps:$4 sm:$0xff]   ;;  %v3915_v34 = vld [vmem:[%s4923_s2 + $0x1c] ss:$12 sps:$4 sm:$0xff]   ;;  %v3928_v36 = vld [vmem:[%s4923_s2 + $0x18] ss:$12 sps:$4 sm:$0xff]  }
   0x9   :  { %v82_v12 = vcombine.high %v74_v10, %v74_v10  ;;  %v89_v13 = vsel %vm87_vm1, %v74_v10, 0  ;;  %v95_v15 = vsel %vm87_vm1, %v81_v11, 0  ;;  %v3921_v35 = vld [vmem:[%s4923_s2 + $0x20] ss:$12 sps:$4 sm:$0xff]   ;;  %v3934_v37 = vld [vmem:[%s4923_s2 + $0x4] ss:$12 sps:$4 sm:$0xff]  }
   0xa   :  { %3055 = vmatpush3.bf16.msra.mxu1 %v95_v15  ;;  %v3940_v38 = vld [vmem:[%s4923_s2 + $0x8] ss:$12 sps:$4 sm:$0xff]   ;;  %v3947_v39 = vld [vmem:[%s4923_s2] ss:$12 sps:$4 sm:$0xff]   ;;  %v56_v40 = vsub.s32 2, %v3788_v5  ;;  %v3993_v41 = vsub.s32 0, %v3788_v5 }
   0xb   :  { %2787 = vmatprep.subr.msk.bf16.mxu0 %vm87_vm1, %v82_v12  ;;  %3060 = vmatprep.subr.bf16.mxu1 %v3721_v7  ;;  %v44_v42 = vld [vmem:[%s4924_s3] sm:$0x7]  ;;  %v52_v43 = vsub.s32 1, %v3788_v5 }
   0xc   :  { %112 = vmatpush1.bf16.msra.mxu0 %v89_v13  ;;  %v57_v44 = vrot.slane %v44_v42, %v56_v40  ;;  %v49_v45 = vrot.slane %v44_v42, %v3993_v41 }
   0xd   :  { %357 = vmatprep.subr.bf16.mxu0 %v3797_v14  ;;  %3057 = vmatmul.mubr.msk.bf16.vlgmr.msra.gmra.mxu1 %vm83_vm2, %v3412_v16  ;;  %v53_v47 = vrot.slane %v44_v42, %v52_v43 }
   0xe   :  { %3061 = vmatpush3.bf16.msra.mxu1 %v3811_v18  ;;  %3076 = vmatprep.mubr.msk.bf16.mxu1 %vm3722_vm0, %v3721_v7 }
   0xf   :  { %2788 = vmatmul.mubr.msk.bf16.vlgmr.msra.gmra.mxu0 %vm83_vm2, %v3412_v16  ;;  %3062 = vmatprep.subr.bf16.mxu1 %v3721_v7 }
  0x10   :  { %358 = vmatpush1.bf16.msra.mxu0 %v3805_v17  ;;  %389 = vmatprep.mubr.bf16.mxu0 %v3720_v3 }
  0x11   :  { %359 = vmatprep.subr.bf16.mxu0 %v3817_v19 }
  0x12   :  { %3063 = vmatpush3.bf16.msra.mxu1 %v3823_v20 }
  0x13   :  { %3064 = vmatprep.subr.bf16.mxu1 %v3721_v7 }
  0x14   :  { %360 = vmatpush1.bf16.msra.mxu0 %v3832_v21 }
  0x15   :  { %361 = vmatprep.subr.bf16.mxu0 %v3839_v22 }
  0x16   :  { %3065 = vmatpush3.bf16.msra.mxu1 %v3845_v23 }
  0x17   :  { %3066 = vmatprep.subr.bf16.mxu1 %v3721_v7 }
  0x18   :  { %362 = vmatpush1.bf16.msra.mxu0 %v3852_v24 }
  0x19   :  { %363 = vmatprep.subr.bf16.mxu0 %v3858_v25 }
  0x1a   :  { %3067 = vmatpush3.bf16.msra.mxu1 %v3864_v26 }
  0x1b   :  { %3068 = vmatprep.subr.bf16.mxu1 %v3721_v7 }
  0x1c   :  { %364 = vmatpush1.bf16.msra.mxu0 %v3871_v27 }
  0x1d   :  { %365 = vmatprep.subr.bf16.mxu0 %v3877_v28 }
  0x1e   :  { %3069 = vmatpush3.bf16.msra.mxu1 %v3883_v29 }
  0x1f   :  { %3070 = vmatprep.subr.bf16.mxu1 %v3721_v7 }
  0x20   :  { %366 = vmatpush1.bf16.msra.mxu0 %v3890_v30 }
  0x21   :  { %367 = vmatprep.subr.bf16.mxu0 %v3896_v31 }
  0x22   :  { %3071 = vmatpush3.bf16.msra.mxu1 %v3902_v32 }
  0x23   :  { %3072 = vmatprep.subr.bf16.mxu1 %v3721_v7 }
  0x24   :  { %368 = vmatpush1.bf16.msra.mxu0 %v3909_v33 }
  0x25   :  { %369 = vmatprep.subr.bf16.mxu0 %v3915_v34 }
  0x26   :  { %3073 = vmatpush3.bf16.msra.mxu1 %v3921_v35 }
  0x27   :  { %3074 = vmatprep.subr.bf16.mxu1 %v3721_v7 }
  0x28   :  { %370 = vmatpush1.bf16.msra.mxu0 %v3928_v36 }
  0x29   :  { %371 = vmatprep.subr.bf16.mxu0 %v3934_v37 }
  0x2a   :  { %3075 = vmatpush3.bf16.msra.mxu1 %v3940_v38 }
  0x2b   :  { %3080 = vmatprep.subr.bf16.mxu1 %v3721_v7 }
  0x2c   :  { %372 = vmatpush1.bf16.msra.mxu0 %v3947_v39 }
  0x2d   :  { %3077 = vmatmul.mubr.bf16.vlgmr.msra.gmra.mxu1 %v3720_v3  ;;  %465 = vmatprep.subr.bf16.mxu0 %v3797_v14 }
  0x2e   :  { %3081 = vmatpush3.bf16.msra.mxu1 %v3811_v18  ;;  %3096 = vmatprep.mubr.msk.bf16.mxu1 %vm3722_vm0, %v3721_v7 }
  0x2f   :  { %390 = vmatmul.mubr.bf16.vlgmr.msra.gmra.mxu0 %v3720_v3  ;;  %3082 = vmatprep.subr.bf16.mxu1 %v3721_v7 }
  0x30   :  { %466 = vmatpush1.bf16.msra.mxu0 %v3805_v17  ;;  %497 = vmatprep.mubr.bf16.mxu0 %v3720_v3 }
  0x31   :  { %467 = vmatprep.subr.bf16.mxu0 %v3817_v19 }
  0x32   :  { %3083 = vmatpush3.bf16.msra.mxu1 %v3823_v20 }
  0x33   :  { %3084 = vmatprep.subr.bf16.mxu1 %v3721_v7 }
  0x34   :  { %468 = vmatpush1.bf16.msra.mxu0 %v3832_v21 }
  0x35   :  { %469 = vmatprep.subr.bf16.mxu0 %v3839_v22 }
  0x36   :  { %3085 = vmatpush3.bf16.msra.mxu1 %v3845_v23 }
  0x37   :  { %3086 = vmatprep.subr.bf16.mxu1 %v3721_v7 }
  0x38   :  { %470 = vmatpush1.bf16.msra.mxu0 %v3852_v24 }
  0x39   :  { %471 = vmatprep.subr.bf16.mxu0 %v3858_v25 }
  0x3a   :  { %3087 = vmatpush3.bf16.msra.mxu1 %v3864_v26 }
  0x3b   :  { %3088 = vmatprep.subr.bf16.mxu1 %v3721_v7 }
  0x3c   :  { %472 = vmatpush1.bf16.msra.mxu0 %v3871_v27 }
  0x3d   :  { %473 = vmatprep.subr.bf16.mxu0 %v3877_v28 }
  0x3e   :  { %3089 = vmatpush3.bf16.msra.mxu1 %v3883_v29 }
  0x3f   :  { %3090 = vmatprep.subr.bf16.mxu1 %v3721_v7 }
  0x40   :  { %474 = vmatpush1.bf16.msra.mxu0 %v3890_v30 }
  0x41   :  { %475 = vmatprep.subr.bf16.mxu0 %v3896_v31 }
  0x42   :  { %3091 = vmatpush3.bf16.msra.mxu1 %v3902_v32 }
  0x43   :  { %3092 = vmatprep.subr.bf16.mxu1 %v3721_v7 }
  0x44   :  { %476 = vmatpush1.bf16.msra.mxu0 %v3909_v33 }
  0x45   :  { %477 = vmatprep.subr.bf16.mxu0 %v3915_v34 }
  0x46   :  { %3093 = vmatpush3.bf16.msra.mxu1 %v3921_v35 }
  0x47   :  { %3094 = vmatprep.subr.bf16.mxu1 %v3721_v7 }
  0x48   :  { %478 = vmatpush1.bf16.msra.mxu0 %v3928_v36 }
  0x49   :  { %479 = vmatprep.subr.bf16.mxu0 %v3934_v37 }
  0x4a   :  { %3095 = vmatpush3.bf16.msra.mxu1 %v3940_v38 }
  0x4b   :  { %3100 = vmatprep.subr.bf16.mxu1 %v3721_v7 }
  0x4c   :  { %480 = vmatpush1.bf16.msra.mxu0 %v3947_v39 }
  0x4d   :  { %588 = vmatprep.subr.bf16.mxu0 %v3797_v14 }
  0xcd   :  { %v174_v46 = vpop.f32.mrf.mxu1 }
  0xce   :  { %v175_v48 = vadd.f32 %v174_v46, %v57_v44 }
  0xcf   :  { %v131_v49 = vpop.f32.mrf.mxu0  ;;  %v3058_v50 = vpop.f32.mrf.mxu1 }
  0xd0   :  { %v132_v51 = vadd.f32 %v131_v49, %v49_v45  ;;  %183 = vst [vmem:[#allocation2 + $0x8] sm:$0xff] %v175_v48 }
  0xd1   :  { %v133_v52 = vpop.f32.mrf.mxu0  ;;  %v177_v53 = vpop.f32.mrf.mxu1 }
  0xd2   :  { %181 = vst [vmem:[#allocation2 + $0x28] sm:$0xff] %v132_v51  ;;  %v134_v54 = vadd.f32 %v133_v52, %v53_v47  ;;  %v178_v55 = vadd.f32 %v177_v53, %v57_v44  ;;  %v4007_v44 = vld [vmem:[%s4925_s4] ss:$0 sm:$0xff] }
  0xd3   :  { %v135_v56 = vpop.f32.mrf.mxu0  ;;  %v3059_v57 = vpop.f32.mrf.mxu1 }
  0xd4   :  { %182 = vst [vmem:[#allocation2 + $0x10] sm:$0xff] %v134_v54  ;;  %v136_v58 = vadd.f32 %v135_v56, %v49_v45  ;;  %186 = vst [vmem:[#allocation2 + $0x20] sm:$0xff] %v178_v55 }
  0xd5   :  { %v137_v59 = vpop.f32.mrf.mxu0 }
  0xd6   :  { %184 = vst [vmem:[#allocation2] sm:$0xff] %v136_v58  ;;  %v138_v60 = vadd.f32 %v137_v59, %v53_v47 }
  0xd7   :  { %v228_v49 = vld [vmem:[#allocation2 + $0x8] sm:$0x3] }
  0xd8   :  { %185 = vst [vmem:[#allocation2 + $0x18] sm:$0xff] %v138_v60 }
  0xd9   :  { %v226_v62 = vld [vmem:[#allocation2 + $0x28] sm:$0x3] }
  0xdb   :  { %v227_v10 = vld [vmem:[#allocation2 + $0x10] sm:$0x3] }
  0xed   :  { %v432_v61 = vpop.f32.mrf.mxu1 }
  0xee   :  { %v452_v46 = vadd.f32 %v4007_v44, %v432_v61  ;;  %v461_v61 = vld [vmem:[#allocation2 + $0x28] sm:$0xc] }
  0xef   :  { %v391_v63 = vpop.f32.mrf.mxu0  ;;  %v3078_v0 = vpop.f32.mrf.mxu1 }
  0xf0   :  { %v438_v1 = vadd.f32 %v391_v63, %v226_v62 }
  0xf1   :  { %v393_v2 = vpop.f32.mrf.mxu0  ;;  %v435_v4 = vpop.f32.mrf.mxu1 }
  0xf2   :  { %v2815_v6 = vmul.f32 -1.442695, %v438_v1  ;;  %v445_v12 = vadd.f32 %v393_v2, %v227_v10  ;;  %v462_v10 = vld [vmem:[#allocation2 + $0x10] sm:$0xc] }
  0xf3   :  { %v395_v8 = vpop.f32.mrf.mxu0  ;;  %v3079_v9 = vpop.f32.mrf.mxu1 }
  0xf4   :  { %3510 = vpow2.f32 %v2815_v6  ;;  %v2816_v13 = vmul.f32 -1.442695, %v445_v12 }
  0xf5   :  { %v396_v11 = vpop.f32.mrf.mxu0 }
  0xf6   :  { %3512 = vpow2.f32 %v2816_v13 }
 0x101   :  { %v3511_v15 = vpop.eup %3510 }
 0x102   :  { %v442_v16 = vadd.f32 1.0, %v3511_v15 }
 0x103   :  { %v3513_v42 = vpop.eup %3512 }
 0x104   :  { %3514 = vrcp.f32 %v442_v16  ;;  %v449_v45 = vadd.f32 1.0, %v3513_v42 }
 0x106   :  { %3516 = vrcp.f32 %v449_v45 }
 0x111   :  { %v3515_v47 = vpop.eup %3514 }
 0x112   :  { %v453_v48 = vmul.f32 %v3515_v47, %v452_v46 }
 0x113   :  { %v3517_v51 = vpop.eup %3516 }
 0x114   :  { %v454_v50 = vadd.f32 %v453_v48, %v228_v49  ;;  %v456_v52 = vsub.f32 1.0, %v3517_v51  ;;  %v458_v55 = vmul.f32 0.0, %v3517_v51  ;;  %v463_v49 = vld [vmem:[#allocation2 + $0x8] sm:$0xc] }
 0x116   :  { %3518 = vtanh.f32 %v454_v50 }
 0x123   :  { %v3519_v53 = vpop.eup %3518 }
 0x124   :  { %v457_v54 = vmul.f32 %v3519_v53, %v456_v52 }
 0x126   :  { %v4010_v56 = vadd.f32 %v458_v55, %v457_v54 }
 0x128   :  { %460 = vst [vmem:[#allocation3] sm:$0x3] %v4010_v56  ;;  %v464_v57 = vpack.c.bf16 %v4010_v56, %v4010_v56  ;;  %v576_v53 = vrot.slane %v4010_v56, 6 }
 0x12a   :  { %498 = vmatmul.mubr.bf16.vlgmr.msra.gmra.mxu0 %v464_v57  ;;  %3097 = vmatmul.mubr.bf16.vlgmr.msra.gmra.mxu1 %v464_v57 }
 0x12b   :  { %589 = vmatpush1.bf16.msra.mxu0 %v3805_v17  ;;  %3101 = vmatpush3.bf16.msra.mxu1 %v3811_v18 }
 0x12c   :  { %590 = vmatprep.subr.bf16.mxu0 %v3817_v19  ;;  %3102 = vmatprep.subr.bf16.mxu1 %v3721_v7 }
 0x12d   :  { %620 = vmatprep.mubr.bf16.mxu0 %v3720_v3  ;;  %3116 = vmatprep.mubr.msk.bf16.mxu1 %vm3722_vm0, %v3721_v7 }
 0x12f   :  { %591 = vmatpush1.bf16.msra.mxu0 %v3832_v21  ;;  %3103 = vmatpush3.bf16.msra.mxu1 %v3823_v20 }
 0x130   :  { %592 = vmatprep.subr.bf16.mxu0 %v3839_v22  ;;  %3104 = vmatprep.subr.bf16.mxu1 %v3721_v7 }
 0x133   :  { %593 = vmatpush1.bf16.msra.mxu0 %v3852_v24  ;;  %3105 = vmatpush3.bf16.msra.mxu1 %v3845_v23 }
 0x134   :  { %594 = vmatprep.subr.bf16.mxu0 %v3858_v25  ;;  %3106 = vmatprep.subr.bf16.mxu1 %v3721_v7 }
 0x137   :  { %595 = vmatpush1.bf16.msra.mxu0 %v3871_v27  ;;  %3107 = vmatpush3.bf16.msra.mxu1 %v3864_v26 }
 0x138   :  { %596 = vmatprep.subr.bf16.mxu0 %v3877_v28  ;;  %3108 = vmatprep.subr.bf16.mxu1 %v3721_v7 }
 0x13b   :  { %597 = vmatpush1.bf16.msra.mxu0 %v3890_v30  ;;  %3109 = vmatpush3.bf16.msra.mxu1 %v3883_v29 }
 0x13c   :  { %598 = vmatprep.subr.bf16.mxu0 %v3896_v31  ;;  %3110 = vmatprep.subr.bf16.mxu1 %v3721_v7 }
 0x13f   :  { %599 = vmatpush1.bf16.msra.mxu0 %v3909_v33  ;;  %3111 = vmatpush3.bf16.msra.mxu1 %v3902_v32 }
 0x140   :  { %600 = vmatprep.subr.bf16.mxu0 %v3915_v34  ;;  %3112 = vmatprep.subr.bf16.mxu1 %v3721_v7 }
 0x143   :  { %601 = vmatpush1.bf16.msra.mxu0 %v3928_v36  ;;  %3113 = vmatpush3.bf16.msra.mxu1 %v3921_v35 }
 0x144   :  { %602 = vmatprep.subr.bf16.mxu0 %v3934_v37  ;;  %3114 = vmatprep.subr.bf16.mxu1 %v3721_v7 }
 0x147   :  { %603 = vmatpush1.bf16.msra.mxu0 %v3947_v39  ;;  %3115 = vmatpush3.bf16.msra.mxu1 %v3940_v38 }
 0x148   :  { %711 = vmatprep.subr.bf16.mxu0 %v3797_v14  ;;  %3120 = vmatprep.subr.bf16.mxu1 %v3721_v7 }
 0x1ea   :  { %v499_v58 = vpop.f32.mrf.mxu0  ;;  %v540_v59 = vpop.f32.mrf.mxu1 }
 0x1eb   :  { %v547_v60 = vrot.slane %v499_v58, 6  ;;  %v566_v42 = vadd.f32 %v4007_v44, %v540_v59 }
 0x1ec   :  { %v501_v62 = vpop.f32.mrf.mxu0  ;;  %v3098_v63 = vpop.f32.mrf.mxu1 }
 0x1ed   :  { %v549_v0 = vadd.f32 %v547_v60, %v461_v61  ;;  %v557_v6 = vrot.slane %v501_v62, 6  ;;  %v568_v46 = vrot.slane %v566_v42, 6  ;;  %v581_v63 = vld [vmem:[#allocation2 + $0x28] sm:$0x30] }
 0x1ee   :  { %v503_v1 = vpop.f32.mrf.mxu0  ;;  %v543_v2 = vpop.f32.mrf.mxu1 }
 0x1ef   :  { %v2817_v4 = vmul.f32 -1.442695, %v549_v0  ;;  %v559_v11 = vadd.f32 %v557_v6, %v462_v10 }
 0x1f0   :  { %v504_v8 = vpop.f32.mrf.mxu0  ;;  %v3099_v9 = vpop.f32.mrf.mxu1 }
 0x1f1   :  { %3520 = vpow2.f32 %v2817_v4  ;;  %v2818_v12 = vmul.f32 -1.442695, %v559_v11 }
 0x1f3   :  { %3522 = vpow2.f32 %v2818_v12  ;;  %v582_v12 = vld [vmem:[#allocation2 + $0x10] sm:$0x30] }
 0x1fe   :  { %v3521_v13 = vpop.eup %3520 }
 0x1ff   :  { %v553_v15 = vadd.f32 1.0, %v3521_v13 }
 0x200   :  { %v3523_v16 = vpop.eup %3522 }
 0x201   :  { %3524 = vrcp.f32 %v553_v15  ;;  %v563_v45 = vadd.f32 1.0, %v3523_v16 }
 0x203   :  { %3526 = vrcp.f32 %v563_v45 }
 0x20e   :  { %v3525_v47 = vpop.eup %3524 }
 0x20f   :  { %v570_v48 = vmul.f32 %v3525_v47, %v568_v46 }
 0x210   :  { %v3527_v51 = vpop.eup %3526 }
 0x211   :  { %v571_v50 = vadd.f32 %v570_v48, %v463_v49  ;;  %v573_v52 = vsub.f32 1.0, %v3527_v51  ;;  %v578_v57 = vmul.f32 %v3527_v51, %v576_v53  ;;  %v583_v51 = vld [vmem:[#allocation2 + $0x8] sm:$0x30] }
 0x213   :  { %3528 = vtanh.f32 %v571_v50 }
 0x220   :  { %v3529_v54 = vpop.eup %3528 }
 0x221   :  { %v574_v55 = vmul.f32 %v3529_v54, %v573_v52 }
 0x223   :  { %v4052_v58 = vadd.f32 %v578_v57, %v574_v55 }
 0x225   :  { %580 = vst [vmem:[#allocation3] sm:$0xc] %v4052_v58  ;;  %v584_v59 = vpack.c.bf16 %v4052_v58, %v4052_v58  ;;  %v699_v55 = vrot.slane %v4052_v58, 6 }
 0x227   :  { %v586_v60 = vrot.slane %v584_v59, 1 }
 0x229   :  { %621 = vmatmul.mubr.bf16.vlgmr.msra.gmra.mxu0 %v586_v60  ;;  %3117 = vmatmul.mubr.bf16.vlgmr.msra.gmra.mxu1 %v586_v60 }
 0x22a   :  { %712 = vmatpush1.bf16.msra.mxu0 %v3805_v17  ;;  %3121 = vmatpush3.bf16.msra.mxu1 %v3811_v18 }
 0x22b   :  { %713 = vmatprep.subr.bf16.mxu0 %v3817_v19  ;;  %3122 = vmatprep.subr.bf16.mxu1 %v3721_v7 }
 0x22c   :  { %743 = vmatprep.mubr.bf16.mxu0 %v3720_v3  ;;  %3136 = vmatprep.mubr.msk.bf16.mxu1 %vm3722_vm0, %v3721_v7 }
 0x22e   :  { %714 = vmatpush1.bf16.msra.mxu0 %v3832_v21  ;;  %3123 = vmatpush3.bf16.msra.mxu1 %v3823_v20 }
 0x22f   :  { %715 = vmatprep.subr.bf16.mxu0 %v3839_v22  ;;  %3124 = vmatprep.subr.bf16.mxu1 %v3721_v7 }
 0x232   :  { %716 = vmatpush1.bf16.msra.mxu0 %v3852_v24  ;;  %3125 = vmatpush3.bf16.msra.mxu1 %v3845_v23 }
 0x233   :  { %717 = vmatprep.subr.bf16.mxu0 %v3858_v25  ;;  %3126 = vmatprep.subr.bf16.mxu1 %v3721_v7 }
 0x236   :  { %718 = vmatpush1.bf16.msra.mxu0 %v3871_v27  ;;  %3127 = vmatpush3.bf16.msra.mxu1 %v3864_v26 }
 0x237   :  { %719 = vmatprep.subr.bf16.mxu0 %v3877_v28  ;;  %3128 = vmatprep.subr.bf16.mxu1 %v3721_v7 }
 0x23a   :  { %720 = vmatpush1.bf16.msra.mxu0 %v3890_v30  ;;  %3129 = vmatpush3.bf16.msra.mxu1 %v3883_v29 }
 0x23b   :  { %721 = vmatprep.subr.bf16.mxu0 %v3896_v31  ;;  %3130 = vmatprep.subr.bf16.mxu1 %v3721_v7 }
 0x23e   :  { %722 = vmatpush1.bf16.msra.mxu0 %v3909_v33  ;;  %3131 = vmatpush3.bf16.msra.mxu1 %v3902_v32 }
 0x23f   :  { %723 = vmatprep.subr.bf16.mxu0 %v3915_v34  ;;  %3132 = vmatprep.subr.bf16.mxu1 %v3721_v7 }
 0x242   :  { %724 = vmatpush1.bf16.msra.mxu0 %v3928_v36  ;;  %3133 = vmatpush3.bf16.msra.mxu1 %v3921_v35 }
 0x243   :  { %725 = vmatprep.subr.bf16.mxu0 %v3934_v37  ;;  %3134 = vmatprep.subr.bf16.mxu1 %v3721_v7 }
 0x246   :  { %726 = vmatpush1.bf16.msra.mxu0 %v3947_v39  ;;  %3135 = vmatpush3.bf16.msra.mxu1 %v3940_v38 }
 0x247   :  { %834 = vmatprep.subr.bf16.mxu0 %v3797_v14  ;;  %3140 = vmatprep.subr.bf16.mxu1 %v3721_v7 }
 0x2e9   :  { %v622_v56 = vpop.f32.mrf.mxu0  ;;  %v663_v61 = vpop.f32.mrf.mxu1 }
 0x2ea   :  { %v670_v62 = vrot.slane %v622_v56, 4  ;;  %v689_v46 = vadd.f32 %v4007_v44, %v663_v61 }
 0x2eb   :  { %v624_v0 = vpop.f32.mrf.mxu0  ;;  %v3118_v1 = vpop.f32.mrf.mxu1 }
 0x2ec   :  { %v672_v2 = vadd.f32 %v670_v62, %v581_v63  ;;  %v680_v9 = vrot.slane %v624_v0, 4  ;;  %v691_v48 = vrot.slane %v689_v46, 4  ;;  %v704_v1 = vld [vmem:[#allocation2 + $0x28] sm:$0xc0] }
 0x2ed   :  { %v626_v4 = vpop.f32.mrf.mxu0  ;;  %v666_v6 = vpop.f32.mrf.mxu1 }
 0x2ee   :  { %v2819_v8 = vmul.f32 -1.442695, %v672_v2  ;;  %v682_v13 = vadd.f32 %v680_v9, %v582_v12 }
 0x2ef   :  { %v627_v10 = vpop.f32.mrf.mxu0  ;;  %v3119_v11 = vpop.f32.mrf.mxu1 }
 0x2f0   :  { %3530 = vpow2.f32 %v2819_v8  ;;  %v2820_v15 = vmul.f32 -1.442695, %v682_v13 }
 0x2f2   :  { %3532 = vpow2.f32 %v2820_v15  ;;  %v705_v15 = vld [vmem:[#allocation2 + $0x10] sm:$0xc0] }
 0x2fd   :  { %v3531_v16 = vpop.eup %3530 }
 0x2fe   :  { %v676_v42 = vadd.f32 1.0, %v3531_v16 }
 0x2ff   :  { %v3533_v45 = vpop.eup %3532 }
 0x300   :  { %3534 = vrcp.f32 %v676_v42  ;;  %v686_v47 = vadd.f32 1.0, %v3533_v45 }
 0x302   :  { %3536 = vrcp.f32 %v686_v47 }
 0x30d   :  { %v3535_v49 = vpop.eup %3534 }
 0x30e   :  { %v693_v50 = vmul.f32 %v3535_v49, %v691_v48 }
 0x30f   :  { %v3537_v53 = vpop.eup %3536 }
 0x310   :  { %v694_v52 = vadd.f32 %v693_v50, %v583_v51  ;;  %v696_v54 = vsub.f32 1.0, %v3537_v53  ;;  %v701_v60 = vmul.f32 %v3537_v53, %v699_v55  ;;  %v706_v53 = vld [vmem:[#allocation2 + $0x8] sm:$0xc0] }
 0x312   :  { %3538 = vtanh.f32 %v694_v52 }
 0x31f   :  { %v3539_v57 = vpop.eup %3538 }
 0x320   :  { %v697_v59 = vmul.f32 %v3539_v57, %v696_v54 }
 0x322   :  { %v4094_v56 = vadd.f32 %v701_v60, %v697_v59 }
 0x324   :  { %703 = vst [vmem:[#allocation3] sm:$0x30] %v4094_v56  ;;  %v707_v61 = vpack.c.bf16 %v4094_v56, %v4094_v56  ;;  %v822_v59 = vrot.slane %v4094_v56, 6  ;;  %v827_v56 = vld [vmem:[#allocation2] sm:$0x3] }
 0x326   :  { %v709_v62 = vrot.slane %v707_v61, 2 }
 0x328   :  { %744 = vmatmul.mubr.bf16.vlgmr.msra.gmra.mxu0 %v709_v62  ;;  %3137 = vmatmul.mubr.bf16.vlgmr.msra.gmra.mxu1 %v709_v62 }
 0x329   :  { %835 = vmatpush1.bf16.msra.mxu0 %v3805_v17  ;;  %3141 = vmatpush3.bf16.msra.mxu1 %v3811_v18 }
 0x32a   :  { %836 = vmatprep.subr.bf16.mxu0 %v3817_v19  ;;  %3142 = vmatprep.subr.bf16.mxu1 %v3721_v7 }
 0x32b   :  { %866 = vmatprep.mubr.bf16.mxu0 %v3720_v3  ;;  %3156 = vmatprep.mubr.msk.bf16.mxu1 %vm3722_vm0, %v3721_v7 }
 0x32d   :  { %837 = vmatpush1.bf16.msra.mxu0 %v3832_v21  ;;  %3143 = vmatpush3.bf16.msra.mxu1 %v3823_v20 }
 0x32e   :  { %838 = vmatprep.subr.bf16.mxu0 %v3839_v22  ;;  %3144 = vmatprep.subr.bf16.mxu1 %v3721_v7 }
 0x331   :  { %839 = vmatpush1.bf16.msra.mxu0 %v3852_v24  ;;  %3145 = vmatpush3.bf16.msra.mxu1 %v3845_v23 }
 0x332   :  { %840 = vmatprep.subr.bf16.mxu0 %v3858_v25  ;;  %3146 = vmatprep.subr.bf16.mxu1 %v3721_v7 }
 0x335   :  { %841 = vmatpush1.bf16.msra.mxu0 %v3871_v27  ;;  %3147 = vmatpush3.bf16.msra.mxu1 %v3864_v26 }
 0x336   :  { %842 = vmatprep.subr.bf16.mxu0 %v3877_v28  ;;  %3148 = vmatprep.subr.bf16.mxu1 %v3721_v7 }
 0x339   :  { %843 = vmatpush1.bf16.msra.mxu0 %v3890_v30  ;;  %3149 = vmatpush3.bf16.msra.mxu1 %v3883_v29 }
 0x33a   :  { %844 = vmatprep.subr.bf16.mxu0 %v3896_v31  ;;  %3150 = vmatprep.subr.bf16.mxu1 %v3721_v7 }
 0x33d   :  { %845 = vmatpush1.bf16.msra.mxu0 %v3909_v33  ;;  %3151 = vmatpush3.bf16.msra.mxu1 %v3902_v32 }
 0x33e   :  { %846 = vmatprep.subr.bf16.mxu0 %v3915_v34  ;;  %3152 = vmatprep.subr.bf16.mxu1 %v3721_v7 }
 0x341   :  { %847 = vmatpush1.bf16.msra.mxu0 %v3928_v36  ;;  %3153 = vmatpush3.bf16.msra.mxu1 %v3921_v35 }
 0x342   :  { %848 = vmatprep.subr.bf16.mxu0 %v3934_v37  ;;  %3154 = vmatprep.subr.bf16.mxu1 %v3721_v7 }
 0x345   :  { %849 = vmatpush1.bf16.msra.mxu0 %v3947_v39  ;;  %3155 = vmatpush3.bf16.msra.mxu1 %v3940_v38 }
 0x346   :  { %945 = vmatprep.subr.bf16.mxu0 %v3797_v14  ;;  %3160 = vmatprep.subr.bf16.mxu1 %v3721_v7 }
 0x3e8   :  { %v745_v58 = vpop.f32.mrf.mxu0  ;;  %v786_v63 = vpop.f32.mrf.mxu1 }
 0x3e9   :  { %v793_v0 = vrot.slane %v745_v58, 2  ;;  %v812_v48 = vadd.f32 %v4007_v44, %v786_v63 }
 0x3ea   :  { %v747_v2 = vpop.f32.mrf.mxu0  ;;  %v3138_v4 = vpop.f32.mrf.mxu1 }
 0x3eb   :  { %v795_v6 = vadd.f32 %v793_v0, %v704_v1  ;;  %v803_v11 = vrot.slane %v747_v2, 2  ;;  %v814_v50 = vrot.slane %v812_v48, 2 }
 0x3ec   :  { %v749_v8 = vpop.f32.mrf.mxu0  ;;  %v789_v9 = vpop.f32.mrf.mxu1 }
 0x3ed   :  { %v2821_v10 = vmul.f32 -1.442695, %v795_v6  ;;  %v805_v16 = vadd.f32 %v803_v11, %v705_v15 }
 0x3ee   :  { %v750_v12 = vpop.f32.mrf.mxu0  ;;  %v3139_v13 = vpop.f32.mrf.mxu1 }
 0x3ef   :  { %3540 = vpow2.f32 %v2821_v10  ;;  %v2822_v42 = vmul.f32 -1.442695, %v805_v16  ;;  %v828_v12 = vld [vmem:[#allocation2 + $0x18] sm:$0x3] }
 0x3f1   :  { %3542 = vpow2.f32 %v2822_v42 }
 0x3fc   :  { %v3541_v45 = vpop.eup %3540 }
 0x3fd   :  { %v799_v46 = vadd.f32 1.0, %v3541_v45 }
 0x3fe   :  { %v3543_v47 = vpop.eup %3542 }
 0x3ff   :  { %3544 = vrcp.f32 %v799_v46  ;;  %v809_v49 = vadd.f32 1.0, %v3543_v47 }
 0x401   :  { %3546 = vrcp.f32 %v809_v49 }
 0x40c   :  { %v3545_v51 = vpop.eup %3544 }
 0x40d   :  { %v816_v52 = vmul.f32 %v3545_v51, %v814_v50  ;;  %v829_v51 = vld [vmem:[#allocation2 + $0x20] sm:$0x3] }
 0x40e   :  { %v3547_v55 = vpop.eup %3546 }
 0x40f   :  { %v817_v54 = vadd.f32 %v816_v52, %v706_v53  ;;  %v819_v57 = vsub.f32 1.0, %v3547_v55  ;;  %v824_v62 = vmul.f32 %v3547_v55, %v822_v59 }
 0x411   :  { %3548 = vtanh.f32 %v817_v54 }
 0x41e   :  { %v3549_v60 = vpop.eup %3548 }
 0x41f   :  { %v820_v61 = vmul.f32 %v3549_v60, %v819_v57 }
 0x421   :  { %v4136_v58 = vadd.f32 %v824_v62, %v820_v61 }
 0x423   :  { %826 = vst [vmem:[#allocation3] sm:$0xc0] %v4136_v58  ;;  %v830_v63 = vpack.c.bf16 %v4136_v58, %v4136_v58  ;;  %v936_v55 = vrot.slane %v4136_v58, 6 }
 0x425   :  { %v832_v0 = vrot.slane %v830_v63, 3 }
 0x427   :  { %867 = vmatmul.mubr.bf16.vlgmr.msra.gmra.mxu0 %v832_v0  ;;  %3157 = vmatmul.mubr.bf16.vlgmr.msra.gmra.mxu1 %v832_v0  ;;  %v943_v0 = vld [vmem:[#allocation2 + $0x20] sm:$0xc] }
 0x428   :  { %946 = vmatpush1.bf16.msra.mxu0 %v3805_v17  ;;  %3161 = vmatpush3.bf16.msra.mxu1 %v3811_v18 }
 0x429   :  { %947 = vmatprep.subr.bf16.mxu0 %v3817_v19  ;;  %3162 = vmatprep.subr.bf16.mxu1 %v3721_v7 }
 0x42a   :  { %977 = vmatprep.mubr.bf16.mxu0 %v3720_v3  ;;  %3176 = vmatprep.mubr.msk.bf16.mxu1 %vm3722_vm0, %v3721_v7 }
 0x42c   :  { %948 = vmatpush1.bf16.msra.mxu0 %v3832_v21  ;;  %3163 = vmatpush3.bf16.msra.mxu1 %v3823_v20 }
 0x42d   :  { %949 = vmatprep.subr.bf16.mxu0 %v3839_v22  ;;  %3164 = vmatprep.subr.bf16.mxu1 %v3721_v7 }
 0x430   :  { %950 = vmatpush1.bf16.msra.mxu0 %v3852_v24  ;;  %3165 = vmatpush3.bf16.msra.mxu1 %v3845_v23 }
 0x431   :  { %951 = vmatprep.subr.bf16.mxu0 %v3858_v25  ;;  %3166 = vmatprep.subr.bf16.mxu1 %v3721_v7 }
 0x434   :  { %952 = vmatpush1.bf16.msra.mxu0 %v3871_v27  ;;  %3167 = vmatpush3.bf16.msra.mxu1 %v3864_v26 }
 0x435   :  { %953 = vmatprep.subr.bf16.mxu0 %v3877_v28  ;;  %3168 = vmatprep.subr.bf16.mxu1 %v3721_v7 }
 0x438   :  { %954 = vmatpush1.bf16.msra.mxu0 %v3890_v30  ;;  %3169 = vmatpush3.bf16.msra.mxu1 %v3883_v29 }
 0x439   :  { %955 = vmatprep.subr.bf16.mxu0 %v3896_v31  ;;  %3170 = vmatprep.subr.bf16.mxu1 %v3721_v7 }
 0x43c   :  { %956 = vmatpush1.bf16.msra.mxu0 %v3909_v33  ;;  %3171 = vmatpush3.bf16.msra.mxu1 %v3902_v32 }
 0x43d   :  { %957 = vmatprep.subr.bf16.mxu0 %v3915_v34  ;;  %3172 = vmatprep.subr.bf16.mxu1 %v3721_v7 }
 0x440   :  { %958 = vmatpush1.bf16.msra.mxu0 %v3928_v36  ;;  %3173 = vmatpush3.bf16.msra.mxu1 %v3921_v35 }
 0x441   :  { %959 = vmatprep.subr.bf16.mxu0 %v3934_v37  ;;  %3174 = vmatprep.subr.bf16.mxu1 %v3721_v7 }
 0x444   :  { %960 = vmatpush1.bf16.msra.mxu0 %v3947_v39  ;;  %3175 = vmatpush3.bf16.msra.mxu1 %v3940_v38 }
 0x445   :  { %1068 = vmatprep.subr.bf16.mxu0 %v3797_v14  ;;  %3180 = vmatprep.subr.bf16.mxu1 %v3721_v7 }
 0x4e7   :  { %v868_v1 = vpop.f32.mrf.mxu0  ;;  %v909_v2 = vpop.f32.mrf.mxu1 }
 0x4e8   :  { %v915_v4 = vadd.f32 %v868_v1, %v827_v56  ;;  %v929_v48 = vadd.f32 %v4007_v44, %v909_v2 }
 0x4e9   :  { %v870_v6 = vpop.f32.mrf.mxu0  ;;  %v3158_v8 = vpop.f32.mrf.mxu1 }
 0x4ea   :  { %v2823_v9 = vmul.f32 -1.442695, %v915_v4  ;;  %v922_v16 = vadd.f32 %v870_v6, %v828_v12 }
 0x4eb   :  { %v872_v10 = vpop.f32.mrf.mxu0  ;;  %v912_v11 = vpop.f32.mrf.mxu1 }
 0x4ec   :  { %3550 = vpow2.f32 %v2823_v9  ;;  %v2824_v42 = vmul.f32 -1.442695, %v922_v16  ;;  %v3673_v16 = vld [vmem:[%s4923_s2 + $0x94] ss:$12 sps:$4 sm:$0xff]  }
 0x4ed   :  { %v873_v13 = vpop.f32.mrf.mxu0  ;;  %v3159_v15 = vpop.f32.mrf.mxu1 }
 0x4ee   :  { %3552 = vpow2.f32 %v2824_v42  ;;  %v3671_v13 = vld [vmem:[%s4923_s2 + $0xa8] ss:$12 sps:$4 sm:$0xff]   ;;  %v3672_v15 = vld [vmem:[%s4923_s2 + $0xb0] ss:$12 sps:$4 sm:$0xff]  }
 0x4ef   :  { %v3674_v42 = vld [vmem:[%s4923_s2 + $0x90] ss:$12 sps:$4 sm:$0xff]  }
 0x4f9   :  { %v3551_v45 = vpop.eup %3550 }
 0x4fa   :  { %v919_v14 = vadd.f32 1.0, %v3551_v45  ;;  %v3675_v45 = vld [vmem:[%s4923_s2 + $0x98] ss:$12 sps:$4 sm:$0xff]  }
 0x4fb   :  { %v3553_v46 = vpop.eup %3552 }
 0x4fc   :  { %3554 = vrcp.f32 %v919_v14  ;;  %v926_v47 = vadd.f32 1.0, %v3553_v46  ;;  %v3676_v14 = vld [vmem:[%s4923_s2 + $0x7c] ss:$12 sps:$4 sm:$0xff]   ;;  %v3677_v46 = vld [vmem:[%s4923_s2 + $0x78] ss:$12 sps:$4 sm:$0xff]  }
 0x4fe   :  { %3556 = vrcp.f32 %v926_v47  ;;  %v3678_v47 = vld [vmem:[%s4923_s2 + $0x80] ss:$12 sps:$4 sm:$0xff]  }
 0x509   :  { %v3555_v49 = vpop.eup %3554 }
 0x50a   :  { %v930_v50 = vmul.f32 %v3555_v49, %v929_v48  ;;  %v3679_v48 = vld [vmem:[%s4923_s2 + $0x64] ss:$12 sps:$4 sm:$0xff]   ;;  %v3680_v49 = vld [vmem:[%s4923_s2 + $0x60] ss:$12 sps:$4 sm:$0xff]  }
 0x50b   :  { %v3557_v53 = vpop.eup %3556 }
 0x50c   :  { %v931_v52 = vadd.f32 %v930_v50, %v829_v51  ;;  %v933_v54 = vsub.f32 1.0, %v3557_v53  ;;  %v938_v60 = vmul.f32 %v3557_v53, %v936_v55  ;;  %v3681_v50 = vld [vmem:[%s4923_s2 + $0x68] ss:$12 sps:$4 sm:$0xff]   ;;  %v3682_v51 = vld [vmem:[%s4923_s2 + $0x4c] ss:$12 sps:$4 sm:$0xff]  }
 0x50d   :  { %v3684_v53 = vld [vmem:[%s4923_s2 + $0x50] ss:$12 sps:$4 sm:$0xff]  }
 0x50e   :  { %3558 = vtanh.f32 %v931_v52  ;;  %v3683_v52 = vld [vmem:[%s4923_s2 + $0x48] ss:$12 sps:$4 sm:$0xff]   ;;  %v3686_v55 = vld [vmem:[%s4923_s2 + $0x30] ss:$12 sps:$4 sm:$0xff]  }
 0x51b   :  { %v3559_v57 = vpop.eup %3558 }
 0x51c   :  { %v934_v59 = vmul.f32 %v3559_v57, %v933_v54  ;;  %v3685_v54 = vld [vmem:[%s4923_s2 + $0x34] ss:$12 sps:$4 sm:$0xff]   ;;  %v3687_v57 = vld [vmem:[%s4923_s2 + $0x38] ss:$12 sps:$4 sm:$0xff]  }
 0x51e   :  { %v4178_v61 = vadd.f32 %v938_v60, %v934_v59  ;;  %v3688_v59 = vld [vmem:[%s4923_s2 + $0x1c] ss:$12 sps:$4 sm:$0xff]   ;;  %v3689_v60 = vld [vmem:[%s4923_s2 + $0x18] ss:$12 sps:$4 sm:$0xff]  }
 0x520   :  { %940 = vst [vmem:[#allocation3 + $0x8] sm:$0x3] %v4178_v61  ;;  %v944_v62 = vpack.c.bf16 %v4178_v61, %v4178_v61  ;;  %v1056_v4 = vrot.slane %v4178_v61, 6  ;;  %v3690_v61 = vld [vmem:[%s4923_s2 + $0x20] ss:$12 sps:$4 sm:$0xff]  }
 0x522   :  { %978 = vmatmul.mubr.bf16.vlgmr.msra.gmra.mxu0 %v944_v62  ;;  %3177 = vmatmul.mubr.bf16.vlgmr.msra.gmra.mxu1 %v944_v62  ;;  %v3691_v62 = vld [vmem:[%s4923_s2 + $0x4] ss:$12 sps:$4 sm:$0xff]  }
 0x523   :  { %1069 = vmatpush1.bf16.msra.mxu0 %v3805_v17  ;;  %3181 = vmatpush3.bf16.msra.mxu1 %v3811_v18  ;;  %v3670_v17 = vld [vmem:[%s4923_s2 + $0xac] ss:$12 sps:$4 sm:$0xff]  }
 0x524   :  { %1070 = vmatprep.subr.bf16.mxu0 %v3817_v19  ;;  %3182 = vmatprep.subr.bf16.mxu1 %v3721_v7 }
 0x525   :  { %1100 = vmatprep.mubr.bf16.mxu0 %v3720_v3  ;;  %3196 = vmatprep.mubr.msk.bf16.mxu1 %vm3722_vm0, %v3721_v7 }
 0x527   :  { %1071 = vmatpush1.bf16.msra.mxu0 %v3832_v21  ;;  %3183 = vmatpush3.bf16.msra.mxu1 %v3823_v20  ;;  %v941_v21 = vld [vmem:[#allocation2] sm:$0xc] }
 0x528   :  { %1072 = vmatprep.subr.bf16.mxu0 %v3839_v22  ;;  %3184 = vmatprep.subr.bf16.mxu1 %v3721_v7 }
 0x52b   :  { %1073 = vmatpush1.bf16.msra.mxu0 %v3852_v24  ;;  %3185 = vmatpush3.bf16.msra.mxu1 %v3845_v23 }
 0x52c   :  { %1074 = vmatprep.subr.bf16.mxu0 %v3858_v25  ;;  %3186 = vmatprep.subr.bf16.mxu1 %v3721_v7 }
 0x52f   :  { %1075 = vmatpush1.bf16.msra.mxu0 %v3871_v27  ;;  %3187 = vmatpush3.bf16.msra.mxu1 %v3864_v26 }
 0x530   :  { %1076 = vmatprep.subr.bf16.mxu0 %v3877_v28  ;;  %3188 = vmatprep.subr.bf16.mxu1 %v3721_v7 }
 0x533   :  { %1077 = vmatpush1.bf16.msra.mxu0 %v3890_v30  ;;  %3189 = vmatpush3.bf16.msra.mxu1 %v3883_v29 }
 0x534   :  { %1078 = vmatprep.subr.bf16.mxu0 %v3896_v31  ;;  %3190 = vmatprep.subr.bf16.mxu1 %v3721_v7  ;;  %v942_v31 = vld [vmem:[#allocation2 + $0x18] sm:$0xc] }
 0x537   :  { %1079 = vmatpush1.bf16.msra.mxu0 %v3909_v33  ;;  %3191 = vmatpush3.bf16.msra.mxu1 %v3902_v32 }
 0x538   :  { %1080 = vmatprep.subr.bf16.mxu0 %v3915_v34  ;;  %3192 = vmatprep.subr.bf16.mxu1 %v3721_v7 }
 0x53b   :  { %1081 = vmatpush1.bf16.msra.mxu0 %v3928_v36  ;;  %3193 = vmatpush3.bf16.msra.mxu1 %v3921_v35 }
 0x53c   :  { %1082 = vmatprep.subr.bf16.mxu0 %v3934_v37  ;;  %3194 = vmatprep.subr.bf16.mxu1 %v3721_v7 }
 0x53f   :  { %1083 = vmatpush1.bf16.msra.mxu0 %v3947_v39  ;;  %3195 = vmatpush3.bf16.msra.mxu1 %v3940_v38 }
 0x540   :  { %1191 = vmatprep.subr.bf16.mxu0 %v3670_v17  ;;  %3200 = vmatprep.subr.bf16.mxu1 %v3721_v7  ;;  %v3692_v17 = vld [vmem:[%s4923_s2] ss:$12 sps:$4 sm:$0xff]  }
 0x5e2   :  { %v979_v18 = vpop.f32.mrf.mxu0  ;;  %v1020_v19 = vpop.f32.mrf.mxu1 }
 0x5e3   :  { %v1027_v20 = vrot.slane %v979_v18, 6  ;;  %v1046_v37 = vadd.f32 %v4007_v44, %v1020_v19  ;;  %v3693_v18 = vld [vmem:[%s4923_s2 + $0x8] ss:$12 sps:$4 sm:$0xff]  }
 0x5e4   :  { %v981_v22 = vpop.f32.mrf.mxu0  ;;  %v3178_v23 = vpop.f32.mrf.mxu1 }
 0x5e5   :  { %v1029_v24 = vadd.f32 %v1027_v20, %v941_v21  ;;  %v1037_v28 = vrot.slane %v981_v22, 6  ;;  %v1048_v39 = vrot.slane %v1046_v37, 6  ;;  %v1061_v22 = vld [vmem:[#allocation2] sm:$0x30] }
 0x5e6   :  { %v983_v25 = vpop.f32.mrf.mxu0  ;;  %v1023_v26 = vpop.f32.mrf.mxu1 }
 0x5e7   :  { %v2825_v27 = vmul.f32 -1.442695, %v1029_v24  ;;  %v1039_v32 = vadd.f32 %v1037_v28, %v942_v31 }
 0x5e8   :  { %v984_v29 = vpop.f32.mrf.mxu0  ;;  %v3179_v30 = vpop.f32.mrf.mxu1 }
 0x5e9   :  { %3560 = vpow2.f32 %v2825_v27  ;;  %v2826_v33 = vmul.f32 -1.442695, %v1039_v32  ;;  %v1062_v32 = vld [vmem:[#allocation2 + $0x18] sm:$0x30] }
 0x5eb   :  { %3562 = vpow2.f32 %v2826_v33 }
 0x5f6   :  { %v3561_v34 = vpop.eup %3560 }
 0x5f7   :  { %v1033_v35 = vadd.f32 1.0, %v3561_v34 }
 0x5f8   :  { %v3563_v36 = vpop.eup %3562 }
 0x5f9   :  { %3564 = vrcp.f32 %v1033_v35  ;;  %v1043_v38 = vadd.f32 1.0, %v3563_v36 }
 0x5fb   :  { %3566 = vrcp.f32 %v1043_v38 }
 0x606   :  { %v3565_v58 = vpop.eup %3564 }
 0x607   :  { %v1050_v63 = vmul.f32 %v3565_v58, %v1048_v39 }
 0x608   :  { %v3567_v1 = vpop.eup %3566 }
 0x609   :  { %v1051_v56 = vadd.f32 %v1050_v63, %v943_v0  ;;  %v1053_v2 = vsub.f32 1.0, %v3567_v1  ;;  %v1058_v9 = vmul.f32 %v3567_v1, %v1056_v4 }
 0x60b   :  { %3568 = vtanh.f32 %v1051_v56  ;;  %v1063_v56 = vld [vmem:[#allocation2 + $0x20] sm:$0x30] }
 0x618   :  { %v3569_v6 = vpop.eup %3568 }
 0x619   :  { %v1054_v8 = vmul.f32 %v3569_v6, %v1053_v2 }
 0x61b   :  { %v4222_v10 = vadd.f32 %v1058_v9, %v1054_v8 }
 0x61d   :  { %1060 = vst [vmem:[#allocation3 + $0x8] sm:$0xc] %v4222_v10  ;;  %v1064_v11 = vpack.c.bf16 %v4222_v10, %v4222_v10  ;;  %v1179_v6 = vrot.slane %v4222_v10, 6  ;;  %v3448_v10 = vld [vmem:[%s4926_s5 + $0xac] ss:$12 sps:$4 sm:$0xff]  }
 0x61f   :  { %v1066_v12 = vrot.slane %v1064_v11, 1 }
 0x621   :  { %1101 = vmatmul.mubr.bf16.vlgmr.msra.gmra.mxu0 %v1066_v12  ;;  %3197 = vmatmul.mubr.bf16.vlgmr.msra.gmra.mxu1 %v1066_v12 }
 0x622   :  { %1192 = vmatpush1.bf16.msra.mxu0 %v3671_v13  ;;  %3201 = vmatpush3.bf16.msra.mxu1 %v3672_v15  ;;  %v3446_v15 = vld [vmem:[%s4926_s5 + $0xa8] ss:$12 sps:$4 sm:$0xff]  }
 0x623   :  { %1193 = vmatprep.subr.bf16.mxu0 %v3673_v16  ;;  %3202 = vmatprep.subr.bf16.mxu1 %v3721_v7  ;;  %v3449_v16 = vld [vmem:[%s4926_s5 + $0xb0] ss:$12 sps:$4 sm:$0xff]  }
 0x624   :  { %1223 = vmatprep.mubr.bf16.mxu0 %v3720_v3  ;;  %3216 = vmatprep.mubr.msk.bf16.mxu1 %vm3722_vm0, %v3721_v7 }
 0x626   :  { %1194 = vmatpush1.bf16.msra.mxu0 %v3674_v42  ;;  %3203 = vmatpush3.bf16.msra.mxu1 %v3675_v45  ;;  %v3452_v42 = vld [vmem:[%s4926_s5 + $0x94] ss:$12 sps:$4 sm:$0xff]   ;;  %v3450_v45 = vld [vmem:[%s4926_s5 + $0x90] ss:$12 sps:$4 sm:$0xff]  }
 0x627   :  { %1195 = vmatprep.subr.bf16.mxu0 %v3676_v14  ;;  %3204 = vmatprep.subr.bf16.mxu1 %v3721_v7  ;;  %v3453_v14 = vld [vmem:[%s4926_s5 + $0x98] ss:$12 sps:$4 sm:$0xff]  }
 0x62a   :  { %1196 = vmatpush1.bf16.msra.mxu0 %v3677_v46  ;;  %3205 = vmatpush3.bf16.msra.mxu1 %v3678_v47  ;;  %v3456_v46 = vld [vmem:[%s4926_s5 + $0x7c] ss:$12 sps:$4 sm:$0xff]   ;;  %v3454_v47 = vld [vmem:[%s4926_s5 + $0x78] ss:$12 sps:$4 sm:$0xff]  }
 0x62b   :  { %1197 = vmatprep.subr.bf16.mxu0 %v3679_v48  ;;  %3206 = vmatprep.subr.bf16.mxu1 %v3721_v7  ;;  %v3457_v48 = vld [vmem:[%s4926_s5 + $0x80] ss:$12 sps:$4 sm:$0xff]  }
 0x62e   :  { %1198 = vmatpush1.bf16.msra.mxu0 %v3680_v49  ;;  %3207 = vmatpush3.bf16.msra.mxu1 %v3681_v50  ;;  %v3460_v49 = vld [vmem:[%s4926_s5 + $0x64] ss:$12 sps:$4 sm:$0xff]   ;;  %v3458_v50 = vld [vmem:[%s4926_s5 + $0x60] ss:$12 sps:$4 sm:$0xff]  }
 0x62f   :  { %1199 = vmatprep.subr.bf16.mxu0 %v3682_v51  ;;  %3208 = vmatprep.subr.bf16.mxu1 %v3721_v7  ;;  %v3461_v51 = vld [vmem:[%s4926_s5 + $0x68] ss:$12 sps:$4 sm:$0xff]  }
 0x632   :  { %1200 = vmatpush1.bf16.msra.mxu0 %v3683_v52  ;;  %3209 = vmatpush3.bf16.msra.mxu1 %v3684_v53  ;;  %v3464_v52 = vld [vmem:[%s4926_s5 + $0x4c] ss:$12 sps:$4 sm:$0xff]   ;;  %v3462_v53 = vld [vmem:[%s4926_s5 + $0x48] ss:$12 sps:$4 sm:$0xff]  }
 0x633   :  { %1201 = vmatprep.subr.bf16.mxu0 %v3685_v54  ;;  %3210 = vmatprep.subr.bf16.mxu1 %v3721_v7  ;;  %v3465_v54 = vld [vmem:[%s4926_s5 + $0x50] ss:$12 sps:$4 sm:$0xff]  }
 0x636   :  { %1202 = vmatpush1.bf16.msra.mxu0 %v3686_v55  ;;  %3211 = vmatpush3.bf16.msra.mxu1 %v3687_v57  ;;  %v3468_v55 = vld [vmem:[%s4926_s5 + $0x34] ss:$12 sps:$4 sm:$0xff]   ;;  %v3466_v57 = vld [vmem:[%s4926_s5 + $0x30] ss:$12 sps:$4 sm:$0xff]  }
 0x637   :  { %1203 = vmatprep.subr.bf16.mxu0 %v3688_v59  ;;  %3212 = vmatprep.subr.bf16.mxu1 %v3721_v7  ;;  %v3469_v59 = vld [vmem:[%s4926_s5 + $0x38] ss:$12 sps:$4 sm:$0xff]  }
 0x63a   :  { %1204 = vmatpush1.bf16.msra.mxu0 %v3689_v60  ;;  %3213 = vmatpush3.bf16.msra.mxu1 %v3690_v61  ;;  %v3470_v60 = vld [vmem:[%s4926_s5 + $0x18] ss:$12 sps:$4 sm:$0xff]   ;;  %v3472_v61 = vld [vmem:[%s4926_s5 + $0x1c] ss:$12 sps:$4 sm:$0xff]  }
 0x63b   :  { %1205 = vmatprep.subr.bf16.mxu0 %v3691_v62  ;;  %3214 = vmatprep.subr.bf16.mxu1 %v3721_v7  ;;  %v3473_v62 = vld [vmem:[%s4926_s5 + $0x20] ss:$12 sps:$4 sm:$0xff]  }
 0x63e   :  { %1206 = vmatpush1.bf16.msra.mxu0 %v3692_v17  ;;  %3215 = vmatpush3.bf16.msra.mxu1 %v3693_v18  ;;  %v3474_v17 = vld [vmem:[%s4926_s5] ss:$12 sps:$4 sm:$0xff]   ;;  %v3476_v18 = vld [vmem:[%s4926_s5 + $0x4] ss:$12 sps:$4 sm:$0xff]  }
 0x63f   :  { %3220 = vmatprep.subr.bf16.mxu1 %v3721_v7  ;;  %1487 = vmatprep.subr.bf16.mxu0 %v3448_v10 }
 0x6e1   :  { %v1102_v19 = vpop.f32.mrf.mxu0  ;;  %v1143_v20 = vpop.f32.mrf.mxu1 }
 0x6e2   :  { %v1150_v21 = vrot.slane %v1102_v19, 4  ;;  %v1169_v38 = vadd.f32 %v4007_v44, %v1143_v20  ;;  %v3477_v19 = vld [vmem:[%s4926_s5 + $0x8] ss:$12 sps:$4 sm:$0xff]   ;;  %v4398_v20 = vld [vmem:[%s4927_s6 + $0xac] ss:$12 sps:$4 sm:$0xff]  }
 0x6e3   :  { %v1104_v23 = vpop.f32.mrf.mxu0  ;;  %v3198_v24 = vpop.f32.mrf.mxu1 }
 0x6e4   :  { %v1152_v25 = vadd.f32 %v1150_v21, %v1061_v22  ;;  %v1160_v29 = vrot.slane %v1104_v23, 4  ;;  %v1171_v58 = vrot.slane %v1169_v38, 4  ;;  %v1184_v24 = vld [vmem:[#allocation2] sm:$0xc0] }
 0x6e5   :  { %v1106_v26 = vpop.f32.mrf.mxu0  ;;  %v1146_v27 = vpop.f32.mrf.mxu1 }
 0x6e6   :  { %v2827_v28 = vmul.f32 -1.442695, %v1152_v25  ;;  %v1162_v33 = vadd.f32 %v1160_v29, %v1062_v32 }
 0x6e7   :  { %v1107_v30 = vpop.f32.mrf.mxu0  ;;  %v3199_v31 = vpop.f32.mrf.mxu1 }
 0x6e8   :  { %3570 = vpow2.f32 %v2827_v28  ;;  %v2828_v34 = vmul.f32 -1.442695, %v1162_v33 }
 0x6ea   :  { %3572 = vpow2.f32 %v2828_v34  ;;  %v1185_v34 = vld [vmem:[#allocation2 + $0x18] sm:$0xc0] }
 0x6f5   :  { %v3571_v35 = vpop.eup %3570 }
 0x6f6   :  { %v1156_v36 = vadd.f32 1.0, %v3571_v35 }
 0x6f7   :  { %v3573_v37 = vpop.eup %3572 }
 0x6f8   :  { %3574 = vrcp.f32 %v1156_v36  ;;  %v1166_v39 = vadd.f32 1.0, %v3573_v37 }
 0x6fa   :  { %3576 = vrcp.f32 %v1166_v39 }
 0x705   :  { %v3575_v63 = vpop.eup %3574 }
 0x706   :  { %v1173_v0 = vmul.f32 %v3575_v63, %v1171_v58  ;;  %v3694_v58 = vld [vmem:[%s4925_s4] ss:$0 sm:$0xff] }
 0x707   :  { %v3577_v2 = vpop.eup %3576 }
 0x708   :  { %v1174_v1 = vadd.f32 %v1173_v0, %v1063_v56  ;;  %v1176_v4 = vsub.f32 1.0, %v3577_v2  ;;  %v1181_v11 = vmul.f32 %v3577_v2, %v1179_v6 }
 0x70a   :  { %3578 = vtanh.f32 %v1174_v1 }
 0x717   :  { %v3579_v8 = vpop.eup %3578 }
 0x718   :  { %v1177_v9 = vmul.f32 %v3579_v8, %v1176_v4  ;;  %v1186_v4 = vld [vmem:[#allocation2 + $0x20] sm:$0xc0] }
 0x71a   :  { %v4309_v12 = vadd.f32 %v1181_v11, %v1177_v9 }
 0x71c   :  { %1183 = vst [vmem:[#allocation3 + $0x8] sm:$0x30] %v4309_v12  ;;  %v1187_v44 = vpack.c.bf16 %v4309_v12, %v4309_v12  ;;  %v1302_v9 = vrot.slane %v4309_v12, 6  ;;  %v4420_v12 = vld [vmem:[%s4927_s6 + $0x94] ss:$12 sps:$4 sm:$0xff]  }
 0x71e   :  { %v1189_v13 = vrot.slane %v1187_v44, 2 }
 0x720   :  { %1224 = vmatmul.mubr.bf16.vlgmr.msra.gmra.mxu0 %v1189_v13  ;;  %3217 = vmatmul.mubr.bf16.vlgmr.msra.gmra.mxu1 %v1189_v13 }
 0x721   :  { %1519 = vmatprep.mubr.bf16.mxu0 %v3720_v3  ;;  %3236 = vmatprep.mubr.msk.bf16.mxu1 %vm3722_vm0, %v3721_v7 }
 0x722   :  { %1488 = vmatpush1.bf16.msra.mxu0 %v3446_v15  ;;  %3221 = vmatpush3.bf16.msra.mxu1 %v3449_v16  ;;  %v1307_v16 = vld [vmem:[#allocation3] sm:$0xff] }
 0x723   :  { %3222 = vmatprep.subr.bf16.mxu1 %v3721_v7  ;;  %1489 = vmatprep.subr.bf16.mxu0 %v3452_v42 }
 0x726   :  { %1490 = vmatpush1.bf16.msra.mxu0 %v3450_v45  ;;  %3223 = vmatpush3.bf16.msra.mxu1 %v3453_v14  ;;  %v4410_v45 = vld [vmem:[%s4927_s6 + $0xa8] ss:$12 sps:$4 sm:$0xff]   ;;  %v4415_v14 = vld [vmem:[%s4927_s6 + $0xb0] ss:$12 sps:$4 sm:$0xff]  }
 0x727   :  { %3224 = vmatprep.subr.bf16.mxu1 %v3721_v7  ;;  %1491 = vmatprep.subr.bf16.mxu0 %v3456_v46 }
 0x72a   :  { %1492 = vmatpush1.bf16.msra.mxu0 %v3454_v47  ;;  %3225 = vmatpush3.bf16.msra.mxu1 %v3457_v48  ;;  %v4426_v47 = vld [vmem:[%s4927_s6 + $0x90] ss:$12 sps:$4 sm:$0xff]   ;;  %v4432_v48 = vld [vmem:[%s4927_s6 + $0x98] ss:$12 sps:$4 sm:$0xff]  }
 0x72b   :  { %3226 = vmatprep.subr.bf16.mxu1 %v3721_v7  ;;  %1493 = vmatprep.subr.bf16.mxu0 %v3460_v49  ;;  %v4438_v49 = vld [vmem:[%s4927_s6 + $0x7c] ss:$12 sps:$4 sm:$0xff]  }
 0x72e   :  { %1494 = vmatpush1.bf16.msra.mxu0 %v3458_v50  ;;  %3227 = vmatpush3.bf16.msra.mxu1 %v3461_v51  ;;  %v4448_v50 = vld [vmem:[%s4927_s6 + $0x78] ss:$12 sps:$4 sm:$0xff]   ;;  %v4454_v51 = vld [vmem:[%s4927_s6 + $0x80] ss:$12 sps:$4 sm:$0xff]  }
 0x72f   :  { %3228 = vmatprep.subr.bf16.mxu1 %v3721_v7  ;;  %1495 = vmatprep.subr.bf16.mxu0 %v3464_v52  ;;  %v4460_v52 = vld [vmem:[%s4927_s6 + $0x64] ss:$12 sps:$4 sm:$0xff]  }
 0x732   :  { %1496 = vmatpush1.bf16.msra.mxu0 %v3462_v53  ;;  %3229 = vmatpush3.bf16.msra.mxu1 %v3465_v54  ;;  %v4467_v53 = vld [vmem:[%s4927_s6 + $0x60] ss:$12 sps:$4 sm:$0xff]   ;;  %v4473_v54 = vld [vmem:[%s4927_s6 + $0x68] ss:$12 sps:$4 sm:$0xff]  }
 0x733   :  { %3230 = vmatprep.subr.bf16.mxu1 %v3721_v7  ;;  %1497 = vmatprep.subr.bf16.mxu0 %v3468_v55  ;;  %v4479_v55 = vld [vmem:[%s4927_s6 + $0x4c] ss:$12 sps:$4 sm:$0xff]  }
 0x736   :  { %1498 = vmatpush1.bf16.msra.mxu0 %v3466_v57  ;;  %3231 = vmatpush3.bf16.msra.mxu1 %v3469_v59  ;;  %v4486_v57 = vld [vmem:[%s4927_s6 + $0x48] ss:$12 sps:$4 sm:$0xff]   ;;  %v4492_v59 = vld [vmem:[%s4927_s6 + $0x50] ss:$12 sps:$4 sm:$0xff]  }
 0x737   :  { %3232 = vmatprep.subr.bf16.mxu1 %v3721_v7  ;;  %1499 = vmatprep.subr.bf16.mxu0 %v3472_v61  ;;  %v4505_v61 = vld [vmem:[%s4927_s6 + $0x30] ss:$12 sps:$4 sm:$0xff]  }
 0x73a   :  { %1500 = vmatpush1.bf16.msra.mxu0 %v3470_v60  ;;  %3233 = vmatpush3.bf16.msra.mxu1 %v3473_v62  ;;  %v4498_v60 = vld [vmem:[%s4927_s6 + $0x34] ss:$12 sps:$4 sm:$0xff]   ;;  %v4511_v62 = vld [vmem:[%s4927_s6 + $0x38] ss:$12 sps:$4 sm:$0xff]  }
 0x73b   :  { %1501 = vmatprep.subr.bf16.mxu0 %v3476_v18  ;;  %3234 = vmatprep.subr.bf16.mxu1 %v3721_v7  ;;  %v4524_v18 = vld [vmem:[%s4927_s6 + $0x18] ss:$12 sps:$4 sm:$0xff]  }
 0x73e   :  { %1502 = vmatpush1.bf16.msra.mxu0 %v3474_v17  ;;  %3235 = vmatpush3.bf16.msra.mxu1 %v3477_v19  ;;  %v4517_v17 = vld [vmem:[%s4927_s6 + $0x1c] ss:$12 sps:$4 sm:$0xff]   ;;  %v4530_v19 = vld [vmem:[%s4927_s6 + $0x20] ss:$12 sps:$4 sm:$0xff]  }
 0x73f   :  { %1747 = vmatprep.subr.bf16.mxu0 %v4398_v20  ;;  %3240 = vmatprep.subr.bf16.mxu1 %v3721_v7 }
 0x7e0   :  { %v1225_v21 = vpop.f32.mrf.mxu0  ;;  %v1266_v22 = vpop.f32.mrf.mxu1 }
 0x7e1   :  { %v1273_v23 = vrot.slane %v1225_v21, 2  ;;  %v1292_v63 = vadd.f32 %v3694_v58, %v1266_v22  ;;  %v4536_v21 = vld [vmem:[%s4927_s6 + $0x4] ss:$12 sps:$4 sm:$0xff]   ;;  %v4543_v22 = vld [vmem:[%s4927_s6] ss:$12 sps:$4 sm:$0xff]  }
 0x7e2   :  { %v1227_v25 = vpop.f32.mrf.mxu0  ;;  %v3218_v26 = vpop.f32.mrf.mxu1 }
 0x7e3   :  { %v1275_v27 = vadd.f32 %v1273_v23, %v1184_v24  ;;  %v1283_v31 = vrot.slane %v1227_v25, 2  ;;  %v1294_v56 = vrot.slane %v1292_v63, 2  ;;  %v4549_v23 = vld [vmem:[%s4927_s6 + $0x8] ss:$12 sps:$4 sm:$0xff]   ;;  %v1342_v24 = vld [vmem:[%s4928_s7] sm:$0x7] }
 0x7e4   :  { %v1229_v28 = vpop.f32.mrf.mxu0  ;;  %v1269_v29 = vpop.f32.mrf.mxu1  ;;  %v1347_v25 = vrot.slane %v1342_v24, %v3993_v41  ;;  %v1355_v26 = vrot.slane %v1342_v24, %v56_v40 }
 0x7e5   :  { %v2829_v30 = vmul.f32 -1.442695, %v1275_v27  ;;  %v1285_v35 = vadd.f32 %v1283_v31, %v1185_v34  ;;  %v1351_v27 = vrot.slane %v1342_v24, %v52_v43 }
 0x7e6   :  { %v1230_v32 = vpop.f32.mrf.mxu0  ;;  %v3219_v33 = vpop.f32.mrf.mxu1 }
 0x7e7   :  { %3580 = vpow2.f32 %v2829_v30  ;;  %v2830_v36 = vmul.f32 -1.442695, %v1285_v35 }
 0x7e9   :  { %3582 = vpow2.f32 %v2830_v36 }
 0x7f4   :  { %v3581_v37 = vpop.eup %3580 }
 0x7f5   :  { %v1279_v38 = vadd.f32 1.0, %v3581_v37 }
 0x7f6   :  { %v3583_v39 = vpop.eup %3582 }
 0x7f7   :  { %3584 = vrcp.f32 %v1279_v38  ;;  %v1289_v0 = vadd.f32 1.0, %v3583_v39 }
 0x7f9   :  { %3586 = vrcp.f32 %v1289_v0 }
 0x804   :  { %v3585_v1 = vpop.eup %3584 }
 0x805   :  { %v1296_v2 = vmul.f32 %v3585_v1, %v1294_v56 }
 0x806   :  { %v3587_v8 = vpop.eup %3586 }
 0x807   :  { %v1297_v6 = vadd.f32 %v1296_v2, %v1186_v4  ;;  %v1299_v11 = vsub.f32 1.0, %v3587_v8  ;;  %v1304_v10 = vmul.f32 %v3587_v8, %v1302_v9 }
 0x809   :  { %3588 = vtanh.f32 %v1297_v6 }
 0x816   :  { %v3589_v44 = vpop.eup %3588 }
 0x817   :  { %v1300_v13 = vmul.f32 %v3589_v44, %v1299_v11 }
 0x819   :  { %v1305_v15 = vadd.f32 %v1304_v10, %v1300_v13 }
 0x81b   :  { %1306 = vst [vmem:[#allocation3 + $0x8] sm:$0xc0] %v1305_v15 }
 0x822   :  { %v1308_v42 = vld [vmem:[#allocation3 + $0x8] sm:$0xff] }
 0x823   :  { %v1309_v46 = vpack.c.bf16 %v1308_v42, %v1307_v16  ;;  %v4605_v42 = vld [vmem:[%s4929_s8] ss:$0 sm:$0xff] }
 0x825   :  { %1520 = vmatmul.mubr.bf16.vlgmr.msra.gmra.mxu0 %v1309_v46  ;;  %3237 = vmatmul.mubr.bf16.vlgmr.msra.gmra.mxu1 %v1309_v46 }
 0x826   :  { %1748 = vmatpush1.bf16.msra.mxu0 %v4410_v45  ;;  %3241 = vmatpush3.bf16.msra.mxu1 %v4415_v14 }
 0x827   :  { %1749 = vmatprep.subr.bf16.mxu0 %v4420_v12  ;;  %3242 = vmatprep.subr.bf16.mxu1 %v3721_v7 }
 0x828   :  { %1779 = vmatprep.mubr.bf16.mxu0 %v3720_v3  ;;  %3256 = vmatprep.mubr.msk.bf16.mxu1 %vm3722_vm0, %v3721_v7 }
 0x82a   :  { %1750 = vmatpush1.bf16.msra.mxu0 %v4426_v47  ;;  %3243 = vmatpush3.bf16.msra.mxu1 %v4432_v48 }
 0x82b   :  { %1751 = vmatprep.subr.bf16.mxu0 %v4438_v49  ;;  %3244 = vmatprep.subr.bf16.mxu1 %v3721_v7 }
 0x82e   :  { %1752 = vmatpush1.bf16.msra.mxu0 %v4448_v50  ;;  %3245 = vmatpush3.bf16.msra.mxu1 %v4454_v51 }
 0x82f   :  { %1753 = vmatprep.subr.bf16.mxu0 %v4460_v52  ;;  %3246 = vmatprep.subr.bf16.mxu1 %v3721_v7 }
 0x832   :  { %1754 = vmatpush1.bf16.msra.mxu0 %v4467_v53  ;;  %3247 = vmatpush3.bf16.msra.mxu1 %v4473_v54 }
 0x833   :  { %1755 = vmatprep.subr.bf16.mxu0 %v4479_v55  ;;  %3248 = vmatprep.subr.bf16.mxu1 %v3721_v7 }
 0x836   :  { %1756 = vmatpush1.bf16.msra.mxu0 %v4486_v57  ;;  %3249 = vmatpush3.bf16.msra.mxu1 %v4492_v59 }
 0x837   :  { %1757 = vmatprep.subr.bf16.mxu0 %v4498_v60  ;;  %3250 = vmatprep.subr.bf16.mxu1 %v3721_v7 }
 0x83a   :  { %1758 = vmatpush1.bf16.msra.mxu0 %v4505_v61  ;;  %3251 = vmatpush3.bf16.msra.mxu1 %v4511_v62 }
 0x83b   :  { %1759 = vmatprep.subr.bf16.mxu0 %v4517_v17  ;;  %3252 = vmatprep.subr.bf16.mxu1 %v3721_v7 }
 0x83e   :  { %1760 = vmatpush1.bf16.msra.mxu0 %v4524_v18  ;;  %3253 = vmatpush3.bf16.msra.mxu1 %v4530_v19 }
 0x83f   :  { %1761 = vmatprep.subr.bf16.mxu0 %v4536_v21  ;;  %3254 = vmatprep.subr.bf16.mxu1 %v3721_v7 }
 0x842   :  { %1762 = vmatpush1.bf16.msra.mxu0 %v4543_v22  ;;  %3255 = vmatpush3.bf16.msra.mxu1 %v4549_v23 }
 0x843   :  { %1855 = vmatprep.subr.bf16.mxu0 %v4398_v20  ;;  %3260 = vmatprep.subr.bf16.mxu1 %v3721_v7 }
 0x845   :  { %1780 = vmatmul.mubr.bf16.vlgmr.msra.gmra.mxu0 %v3720_v3  ;;  %3257 = vmatmul.mubr.bf16.vlgmr.msra.gmra.mxu1 %v3720_v3 }
 0x846   :  { %1856 = vmatpush1.bf16.msra.mxu0 %v4410_v45  ;;  %3261 = vmatpush3.bf16.msra.mxu1 %v4415_v14 }
 0x847   :  { %1857 = vmatprep.subr.bf16.mxu0 %v4420_v12  ;;  %3262 = vmatprep.subr.bf16.mxu1 %v3721_v7 }
 0x848   :  { %1887 = vmatprep.mubr.bf16.mxu0 %v3720_v3  ;;  %3276 = vmatprep.mubr.msk.bf16.mxu1 %vm3722_vm0, %v3721_v7 }
 0x84a   :  { %1858 = vmatpush1.bf16.msra.mxu0 %v4426_v47  ;;  %3263 = vmatpush3.bf16.msra.mxu1 %v4432_v48 }
 0x84b   :  { %1859 = vmatprep.subr.bf16.mxu0 %v4438_v49  ;;  %3264 = vmatprep.subr.bf16.mxu1 %v3721_v7 }
 0x84e   :  { %1860 = vmatpush1.bf16.msra.mxu0 %v4448_v50  ;;  %3265 = vmatpush3.bf16.msra.mxu1 %v4454_v51 }
 0x84f   :  { %1861 = vmatprep.subr.bf16.mxu0 %v4460_v52  ;;  %3266 = vmatprep.subr.bf16.mxu1 %v3721_v7 }
 0x852   :  { %1862 = vmatpush1.bf16.msra.mxu0 %v4467_v53  ;;  %3267 = vmatpush3.bf16.msra.mxu1 %v4473_v54 }
 0x853   :  { %1863 = vmatprep.subr.bf16.mxu0 %v4479_v55  ;;  %3268 = vmatprep.subr.bf16.mxu1 %v3721_v7 }
 0x856   :  { %1864 = vmatpush1.bf16.msra.mxu0 %v4486_v57  ;;  %3269 = vmatpush3.bf16.msra.mxu1 %v4492_v59 }
 0x857   :  { %1865 = vmatprep.subr.bf16.mxu0 %v4498_v60  ;;  %3270 = vmatprep.subr.bf16.mxu1 %v3721_v7 }
 0x85a   :  { %1866 = vmatpush1.bf16.msra.mxu0 %v4505_v61  ;;  %3271 = vmatpush3.bf16.msra.mxu1 %v4511_v62 }
 0x85b   :  { %1867 = vmatprep.subr.bf16.mxu0 %v4517_v17  ;;  %3272 = vmatprep.subr.bf16.mxu1 %v3721_v7 }
 0x85e   :  { %1868 = vmatpush1.bf16.msra.mxu0 %v4524_v18  ;;  %3273 = vmatpush3.bf16.msra.mxu1 %v4530_v19 }
 0x85f   :  { %1869 = vmatprep.subr.bf16.mxu0 %v4536_v21  ;;  %3274 = vmatprep.subr.bf16.mxu1 %v3721_v7 }
 0x862   :  { %1870 = vmatpush1.bf16.msra.mxu0 %v4543_v22  ;;  %3275 = vmatpush3.bf16.msra.mxu1 %v4549_v23 }
 0x863   :  { %1978 = vmatprep.subr.bf16.mxu0 %v4398_v20  ;;  %3280 = vmatprep.subr.bf16.mxu1 %v3721_v7 }
 0x8e5   :  { %v1521_v28 = vpop.f32.mrf.mxu0  ;;  %v1564_v29 = vpop.f32.mrf.mxu1 }
 0x8e6   :  { %v1522_v30 = vadd.f32 %v1521_v28, %v1347_v25  ;;  %v1565_v31 = vadd.f32 %v1564_v29, %v1355_v26 }
 0x8e7   :  { %v1523_v32 = vpop.f32.mrf.mxu0  ;;  %v3238_v33 = vpop.f32.mrf.mxu1 }
 0x8e8   :  { %1571 = vst [vmem:[#allocation2 + $0x28] sm:$0xff] %v1522_v30  ;;  %1573 = vst [vmem:[#allocation2 + $0x8] sm:$0xff] %v1565_v31  ;;  %v1524_v34 = vadd.f32 %v1523_v32, %v1351_v27 }
 0x8e9   :  { %v1525_v35 = vpop.f32.mrf.mxu0  ;;  %v1567_v36 = vpop.f32.mrf.mxu1 }
 0x8ea   :  { %1572 = vst [vmem:[#allocation2 + $0x10] sm:$0xff] %v1524_v34  ;;  %v1526_v37 = vadd.f32 %v1525_v35, %v1347_v25  ;;  %v1568_v38 = vadd.f32 %v1567_v36, %v1355_v26 }
 0x8eb   :  { %v1527_v39 = vpop.f32.mrf.mxu0  ;;  %v3239_v58 = vpop.f32.mrf.mxu1 }
 0x8ec   :  { %1574 = vst [vmem:[#allocation2] sm:$0xff] %v1526_v37  ;;  %1576 = vst [vmem:[#allocation2 + $0x20] sm:$0xff] %v1568_v38  ;;  %v1528_v5 = vadd.f32 %v1527_v39, %v1351_v27 }
 0x8ee   :  { %1575 = vst [vmem:[#allocation2 + $0x18] sm:$0xff] %v1528_v5 }
 0x8ef   :  { %v1616_v40 = vld [vmem:[#allocation2 + $0x28] sm:$0x3]  ;;  %v1851_v39 = vld [vmem:[#allocation2 + $0x28] sm:$0xc] }
 0x8f0   :  { %v1618_v27 = vld [vmem:[#allocation2 + $0x8] sm:$0x3] }
 0x8f1   :  { %v1617_v8 = vld [vmem:[#allocation2 + $0x10] sm:$0x3] }
 0x905   :  { %v1781_v43 = vpop.f32.mrf.mxu0  ;;  %v1822_v63 = vpop.f32.mrf.mxu1 }
 0x906   :  { %v1828_v0 = vadd.f32 %v1781_v43, %v1616_v40  ;;  %v1842_v24 = vadd.f32 %v4605_v42, %v1822_v63 }
 0x907   :  { %v1783_v56 = vpop.f32.mrf.mxu0  ;;  %v3258_v1 = vpop.f32.mrf.mxu1 }
 0x908   :  { %v2880_v2 = vmul.f32 -1.442695, %v1828_v0  ;;  %v1835_v44 = vadd.f32 %v1783_v56, %v1617_v8 }
 0x909   :  { %v1785_v4 = vpop.f32.mrf.mxu0  ;;  %v1825_v6 = vpop.f32.mrf.mxu1 }
 0x90a   :  { %3590 = vpow2.f32 %v2880_v2  ;;  %v2881_v13 = vmul.f32 -1.442695, %v1835_v44  ;;  %v1852_v4 = vld [vmem:[#allocation2 + $0x10] sm:$0xc] }
 0x90b   :  { %v1786_v9 = vpop.f32.mrf.mxu0  ;;  %v3259_v11 = vpop.f32.mrf.mxu1 }
 0x90c   :  { %3592 = vpow2.f32 %v2881_v13 }
 0x917   :  { %v3591_v10 = vpop.eup %3590 }
 0x918   :  { %v1832_v15 = vadd.f32 1.0, %v3591_v10 }
 0x919   :  { %v3593_v16 = vpop.eup %3592 }
 0x91a   :  { %3594 = vrcp.f32 %v1832_v15  ;;  %v1839_v46 = vadd.f32 1.0, %v3593_v16 }
 0x91c   :  { %3596 = vrcp.f32 %v1839_v46 }
 0x927   :  { %v3595_v25 = vpop.eup %3594 }
 0x928   :  { %v1843_v26 = vmul.f32 %v3595_v25, %v1842_v24  ;;  %v1853_v24 = vld [vmem:[#allocation2 + $0x8] sm:$0xc] }
 0x929   :  { %v3597_v29 = vpop.eup %3596 }
 0x92a   :  { %v1844_v28 = vadd.f32 %v1843_v26, %v1618_v27  ;;  %v1846_v30 = vsub.f32 1.0, %v3597_v29  ;;  %v1848_v33 = vmul.f32 0.0, %v3597_v29 }
 0x92c   :  { %3598 = vtanh.f32 %v1844_v28 }
 0x939   :  { %v3599_v31 = vpop.eup %3598 }
 0x93a   :  { %v1847_v32 = vmul.f32 %v3599_v31, %v1846_v30 }
 0x93c   :  { %v4608_v34 = vadd.f32 %v1848_v33, %v1847_v32 }
 0x93e   :  { %1850 = vst [vmem:[#allocation3] sm:$0x3] %v4608_v34  ;;  %v1854_v35 = vpack.c.bf16 %v4608_v34, %v4608_v34  ;;  %v1966_v28 = vrot.slane %v4608_v34, 6 }
 0x940   :  { %1888 = vmatmul.mubr.bf16.vlgmr.msra.gmra.mxu0 %v1854_v35  ;;  %3277 = vmatmul.mubr.bf16.vlgmr.msra.gmra.mxu1 %v1854_v35 }
 0x941   :  { %1979 = vmatpush1.bf16.msra.mxu0 %v4410_v45  ;;  %3281 = vmatpush3.bf16.msra.mxu1 %v4415_v14 }
 0x942   :  { %1980 = vmatprep.subr.bf16.mxu0 %v4420_v12  ;;  %3282 = vmatprep.subr.bf16.mxu1 %v3721_v7 }
 0x943   :  { %2010 = vmatprep.mubr.bf16.mxu0 %v3720_v3  ;;  %3296 = vmatprep.mubr.msk.bf16.mxu1 %vm3722_vm0, %v3721_v7 }
 0x945   :  { %1981 = vmatpush1.bf16.msra.mxu0 %v4426_v47  ;;  %3283 = vmatpush3.bf16.msra.mxu1 %v4432_v48 }
 0x946   :  { %1982 = vmatprep.subr.bf16.mxu0 %v4438_v49  ;;  %3284 = vmatprep.subr.bf16.mxu1 %v3721_v7 }
 0x949   :  { %1983 = vmatpush1.bf16.msra.mxu0 %v4448_v50  ;;  %3285 = vmatpush3.bf16.msra.mxu1 %v4454_v51 }
 0x94a   :  { %1984 = vmatprep.subr.bf16.mxu0 %v4460_v52  ;;  %3286 = vmatprep.subr.bf16.mxu1 %v3721_v7 }
 0x94d   :  { %1985 = vmatpush1.bf16.msra.mxu0 %v4467_v53  ;;  %3287 = vmatpush3.bf16.msra.mxu1 %v4473_v54 }
 0x94e   :  { %1986 = vmatprep.subr.bf16.mxu0 %v4479_v55  ;;  %3288 = vmatprep.subr.bf16.mxu1 %v3721_v7 }
 0x951   :  { %1987 = vmatpush1.bf16.msra.mxu0 %v4486_v57  ;;  %3289 = vmatpush3.bf16.msra.mxu1 %v4492_v59 }
 0x952   :  { %1988 = vmatprep.subr.bf16.mxu0 %v4498_v60  ;;  %3290 = vmatprep.subr.bf16.mxu1 %v3721_v7 }
 0x955   :  { %1989 = vmatpush1.bf16.msra.mxu0 %v4505_v61  ;;  %3291 = vmatpush3.bf16.msra.mxu1 %v4511_v62 }
 0x956   :  { %1990 = vmatprep.subr.bf16.mxu0 %v4517_v17  ;;  %3292 = vmatprep.subr.bf16.mxu1 %v3721_v7 }
 0x959   :  { %1991 = vmatpush1.bf16.msra.mxu0 %v4524_v18  ;;  %3293 = vmatpush3.bf16.msra.mxu1 %v4530_v19 }
 0x95a   :  { %1992 = vmatprep.subr.bf16.mxu0 %v4536_v21  ;;  %3294 = vmatprep.subr.bf16.mxu1 %v3721_v7 }
 0x95d   :  { %1993 = vmatpush1.bf16.msra.mxu0 %v4543_v22  ;;  %3295 = vmatpush3.bf16.msra.mxu1 %v4549_v23 }
 0x95e   :  { %2101 = vmatprep.subr.bf16.mxu0 %v4398_v20  ;;  %3300 = vmatprep.subr.bf16.mxu1 %v3721_v7 }
 0xa00   :  { %v1889_v36 = vpop.f32.mrf.mxu0  ;;  %v1930_v37 = vpop.f32.mrf.mxu1 }
 0xa01   :  { %v1937_v38 = vrot.slane %v1889_v36, 6  ;;  %v1956_v13 = vadd.f32 %v4605_v42, %v1930_v37 }
 0xa02   :  { %v1891_v58 = vpop.f32.mrf.mxu0  ;;  %v3278_v5 = vpop.f32.mrf.mxu1 }
 0xa03   :  { %v1939_v40 = vadd.f32 %v1937_v38, %v1851_v39  ;;  %v1947_v56 = vrot.slane %v1891_v58, 6  ;;  %v1958_v15 = vrot.slane %v1956_v13, 6  ;;  %v1971_v38 = vld [vmem:[#allocation2 + $0x28] sm:$0x30] }
 0xa04   :  { %v1893_v43 = vpop.f32.mrf.mxu0  ;;  %v1933_v63 = vpop.f32.mrf.mxu1 }
 0xa05   :  { %v2882_v0 = vmul.f32 -1.442695, %v1939_v40  ;;  %v1949_v6 = vadd.f32 %v1947_v56, %v1852_v4 }
 0xa06   :  { %v1894_v1 = vpop.f32.mrf.mxu0  ;;  %v3279_v2 = vpop.f32.mrf.mxu1 }
 0xa07   :  { %3600 = vpow2.f32 %v2882_v0  ;;  %v2883_v8 = vmul.f32 -1.442695, %v1949_v6  ;;  %v1972_v2 = vld [vmem:[#allocation2 + $0x10] sm:$0x30] }
 0xa09   :  { %3602 = vpow2.f32 %v2883_v8 }
 0xa14   :  { %v3601_v9 = vpop.eup %3600 }
 0xa15   :  { %v1943_v11 = vadd.f32 1.0, %v3601_v9 }
 0xa16   :  { %v3603_v44 = vpop.eup %3602 }
 0xa17   :  { %3604 = vrcp.f32 %v1943_v11  ;;  %v1953_v10 = vadd.f32 1.0, %v3603_v44 }
 0xa19   :  { %3606 = vrcp.f32 %v1953_v10 }
 0xa24   :  { %v3605_v16 = vpop.eup %3604 }
 0xa25   :  { %v1960_v46 = vmul.f32 %v3605_v16, %v1958_v15 }
 0xa26   :  { %v3607_v26 = vpop.eup %3606 }
 0xa27   :  { %v1961_v25 = vadd.f32 %v1960_v46, %v1853_v24  ;;  %v1963_v27 = vsub.f32 1.0, %v3607_v26  ;;  %v1968_v31 = vmul.f32 %v3607_v26, %v1966_v28  ;;  %v1973_v46 = vld [vmem:[#allocation2 + $0x8] sm:$0x30] }
 0xa29   :  { %3608 = vtanh.f32 %v1961_v25 }
 0xa36   :  { %v3609_v29 = vpop.eup %3608 }
 0xa37   :  { %v1964_v30 = vmul.f32 %v3609_v29, %v1963_v27 }
 0xa39   :  { %v4650_v32 = vadd.f32 %v1968_v31, %v1964_v30 }
 0xa3b   :  { %1970 = vst [vmem:[#allocation3] sm:$0xc] %v4650_v32  ;;  %v1974_v33 = vpack.c.bf16 %v4650_v32, %v4650_v32  ;;  %v2089_v27 = vrot.slane %v4650_v32, 6 }
 0xa3d   :  { %v1976_v35 = vrot.slane %v1974_v33, 1 }
 0xa3f   :  { %2011 = vmatmul.mubr.bf16.vlgmr.msra.gmra.mxu0 %v1976_v35  ;;  %3297 = vmatmul.mubr.bf16.vlgmr.msra.gmra.mxu1 %v1976_v35 }
 0xa40   :  { %2102 = vmatpush1.bf16.msra.mxu0 %v4410_v45  ;;  %3301 = vmatpush3.bf16.msra.mxu1 %v4415_v14 }
 0xa41   :  { %2103 = vmatprep.subr.bf16.mxu0 %v4420_v12  ;;  %3302 = vmatprep.subr.bf16.mxu1 %v3721_v7 }
 0xa42   :  { %2133 = vmatprep.mubr.bf16.mxu0 %v3720_v3  ;;  %3316 = vmatprep.mubr.msk.bf16.mxu1 %vm3722_vm0, %v3721_v7 }
 0xa44   :  { %2104 = vmatpush1.bf16.msra.mxu0 %v4426_v47  ;;  %3303 = vmatpush3.bf16.msra.mxu1 %v4432_v48 }
 0xa45   :  { %2105 = vmatprep.subr.bf16.mxu0 %v4438_v49  ;;  %3304 = vmatprep.subr.bf16.mxu1 %v3721_v7 }
 0xa48   :  { %2106 = vmatpush1.bf16.msra.mxu0 %v4448_v50  ;;  %3305 = vmatpush3.bf16.msra.mxu1 %v4454_v51 }
 0xa49   :  { %2107 = vmatprep.subr.bf16.mxu0 %v4460_v52  ;;  %3306 = vmatprep.subr.bf16.mxu1 %v3721_v7 }
 0xa4c   :  { %2108 = vmatpush1.bf16.msra.mxu0 %v4467_v53  ;;  %3307 = vmatpush3.bf16.msra.mxu1 %v4473_v54 }
 0xa4d   :  { %2109 = vmatprep.subr.bf16.mxu0 %v4479_v55  ;;  %3308 = vmatprep.subr.bf16.mxu1 %v3721_v7 }
 0xa50   :  { %2110 = vmatpush1.bf16.msra.mxu0 %v4486_v57  ;;  %3309 = vmatpush3.bf16.msra.mxu1 %v4492_v59 }
 0xa51   :  { %2111 = vmatprep.subr.bf16.mxu0 %v4498_v60  ;;  %3310 = vmatprep.subr.bf16.mxu1 %v3721_v7 }
 0xa54   :  { %2112 = vmatpush1.bf16.msra.mxu0 %v4505_v61  ;;  %3311 = vmatpush3.bf16.msra.mxu1 %v4511_v62 }
 0xa55   :  { %2113 = vmatprep.subr.bf16.mxu0 %v4517_v17  ;;  %3312 = vmatprep.subr.bf16.mxu1 %v3721_v7 }
 0xa58   :  { %2114 = vmatpush1.bf16.msra.mxu0 %v4524_v18  ;;  %3313 = vmatpush3.bf16.msra.mxu1 %v4530_v19 }
 0xa59   :  { %2115 = vmatprep.subr.bf16.mxu0 %v4536_v21  ;;  %3314 = vmatprep.subr.bf16.mxu1 %v3721_v7 }
 0xa5c   :  { %2116 = vmatpush1.bf16.msra.mxu0 %v4543_v22  ;;  %3315 = vmatpush3.bf16.msra.mxu1 %v4549_v23 }
 0xa5d   :  { %2224 = vmatprep.subr.bf16.mxu0 %v4398_v20  ;;  %3320 = vmatprep.subr.bf16.mxu1 %v3721_v7 }
 0xaff   :  { %v2012_v34 = vpop.f32.mrf.mxu0  ;;  %v2053_v36 = vpop.f32.mrf.mxu1 }
 0xb00   :  { %v2060_v37 = vrot.slane %v2012_v34, 4  ;;  %v2079_v44 = vadd.f32 %v4605_v42, %v2053_v36 }
 0xb01   :  { %v2014_v39 = vpop.f32.mrf.mxu0  ;;  %v3298_v58 = vpop.f32.mrf.mxu1 }
 0xb02   :  { %v2062_v5 = vadd.f32 %v2060_v37, %v1971_v38  ;;  %v2070_v0 = vrot.slane %v2014_v39, 4  ;;  %v2081_v10 = vrot.slane %v2079_v44, 4  ;;  %v2094_v37 = vld [vmem:[#allocation2 + $0x28] sm:$0xc0] }
 0xb03   :  { %v2016_v40 = vpop.f32.mrf.mxu0  ;;  %v2056_v43 = vpop.f32.mrf.mxu1 }
 0xb04   :  { %v2884_v63 = vmul.f32 -1.442695, %v2062_v5  ;;  %v2072_v4 = vadd.f32 %v2070_v0, %v1972_v2 }
 0xb05   :  { %v2017_v56 = vpop.f32.mrf.mxu0  ;;  %v3299_v1 = vpop.f32.mrf.mxu1 }
 0xb06   :  { %3610 = vpow2.f32 %v2884_v63  ;;  %v2885_v6 = vmul.f32 -1.442695, %v2072_v4  ;;  %v2095_v1 = vld [vmem:[#allocation2 + $0x10] sm:$0xc0] }
 0xb08   :  { %3612 = vpow2.f32 %v2885_v6 }
 0xb13   :  { %v3611_v8 = vpop.eup %3610 }
 0xb14   :  { %v2066_v9 = vadd.f32 1.0, %v3611_v8 }
 0xb15   :  { %v3613_v11 = vpop.eup %3612 }
 0xb16   :  { %3614 = vrcp.f32 %v2066_v9  ;;  %v2076_v13 = vadd.f32 1.0, %v3613_v11 }
 0xb18   :  { %3616 = vrcp.f32 %v2076_v13 }
 0xb23   :  { %v3615_v15 = vpop.eup %3614 }
 0xb24   :  { %v2083_v16 = vmul.f32 %v3615_v15, %v2081_v10 }
 0xb25   :  { %v3617_v25 = vpop.eup %3616 }
 0xb26   :  { %v2084_v24 = vadd.f32 %v2083_v16, %v1973_v46  ;;  %v2086_v26 = vsub.f32 1.0, %v3617_v25  ;;  %v2091_v30 = vmul.f32 %v3617_v25, %v2089_v27  ;;  %v2096_v16 = vld [vmem:[#allocation2 + $0x8] sm:$0xc0] }
 0xb28   :  { %3618 = vtanh.f32 %v2084_v24 }
 0xb35   :  { %v3619_v28 = vpop.eup %3618 }
 0xb36   :  { %v2087_v29 = vmul.f32 %v3619_v28, %v2086_v26 }
 0xb38   :  { %v4692_v31 = vadd.f32 %v2091_v30, %v2087_v29 }
 0xb3a   :  { %2093 = vst [vmem:[#allocation3] sm:$0x30] %v4692_v31  ;;  %v2097_v33 = vpack.c.bf16 %v4692_v31, %v4692_v31  ;;  %v2212_v26 = vrot.slane %v4692_v31, 6  ;;  %v2217_v31 = vld [vmem:[#allocation2] sm:$0x3] }
 0xb3c   :  { %v2099_v35 = vrot.slane %v2097_v33, 2 }
 0xb3e   :  { %2134 = vmatmul.mubr.bf16.vlgmr.msra.gmra.mxu0 %v2099_v35  ;;  %3317 = vmatmul.mubr.bf16.vlgmr.msra.gmra.mxu1 %v2099_v35 }
 0xb3f   :  { %2225 = vmatpush1.bf16.msra.mxu0 %v4410_v45  ;;  %3321 = vmatpush3.bf16.msra.mxu1 %v4415_v14 }
 0xb40   :  { %2226 = vmatprep.subr.bf16.mxu0 %v4420_v12  ;;  %3322 = vmatprep.subr.bf16.mxu1 %v3721_v7 }
 0xb41   :  { %2256 = vmatprep.mubr.bf16.mxu0 %v3720_v3  ;;  %3336 = vmatprep.mubr.msk.bf16.mxu1 %vm3722_vm0, %v3721_v7 }
 0xb43   :  { %2227 = vmatpush1.bf16.msra.mxu0 %v4426_v47  ;;  %3323 = vmatpush3.bf16.msra.mxu1 %v4432_v48 }
 0xb44   :  { %2228 = vmatprep.subr.bf16.mxu0 %v4438_v49  ;;  %3324 = vmatprep.subr.bf16.mxu1 %v3721_v7 }
 0xb47   :  { %2229 = vmatpush1.bf16.msra.mxu0 %v4448_v50  ;;  %3325 = vmatpush3.bf16.msra.mxu1 %v4454_v51 }
 0xb48   :  { %2230 = vmatprep.subr.bf16.mxu0 %v4460_v52  ;;  %3326 = vmatprep.subr.bf16.mxu1 %v3721_v7 }
 0xb4b   :  { %2231 = vmatpush1.bf16.msra.mxu0 %v4467_v53  ;;  %3327 = vmatpush3.bf16.msra.mxu1 %v4473_v54 }
 0xb4c   :  { %2232 = vmatprep.subr.bf16.mxu0 %v4479_v55  ;;  %3328 = vmatprep.subr.bf16.mxu1 %v3721_v7 }
 0xb4f   :  { %2233 = vmatpush1.bf16.msra.mxu0 %v4486_v57  ;;  %3329 = vmatpush3.bf16.msra.mxu1 %v4492_v59 }
 0xb50   :  { %2234 = vmatprep.subr.bf16.mxu0 %v4498_v60  ;;  %3330 = vmatprep.subr.bf16.mxu1 %v3721_v7 }
 0xb53   :  { %2235 = vmatpush1.bf16.msra.mxu0 %v4505_v61  ;;  %3331 = vmatpush3.bf16.msra.mxu1 %v4511_v62 }
 0xb54   :  { %2236 = vmatprep.subr.bf16.mxu0 %v4517_v17  ;;  %3332 = vmatprep.subr.bf16.mxu1 %v3721_v7 }
 0xb57   :  { %2237 = vmatpush1.bf16.msra.mxu0 %v4524_v18  ;;  %3333 = vmatpush3.bf16.msra.mxu1 %v4530_v19 }
 0xb58   :  { %2238 = vmatprep.subr.bf16.mxu0 %v4536_v21  ;;  %3334 = vmatprep.subr.bf16.mxu1 %v3721_v7 }
 0xb5b   :  { %2239 = vmatpush1.bf16.msra.mxu0 %v4543_v22  ;;  %3335 = vmatpush3.bf16.msra.mxu1 %v4549_v23 }
 0xb5c   :  { %2335 = vmatprep.subr.bf16.mxu0 %v4398_v20  ;;  %3340 = vmatprep.subr.bf16.mxu1 %v3721_v7 }
 0xbfe   :  { %v2135_v32 = vpop.f32.mrf.mxu0  ;;  %v2176_v34 = vpop.f32.mrf.mxu1 }
 0xbff   :  { %v2183_v36 = vrot.slane %v2135_v32, 2  ;;  %v2202_v11 = vadd.f32 %v4605_v42, %v2176_v34 }
 0xc00   :  { %v2137_v38 = vpop.f32.mrf.mxu0  ;;  %v3318_v39 = vpop.f32.mrf.mxu1 }
 0xc01   :  { %v2185_v58 = vadd.f32 %v2183_v36, %v2094_v37  ;;  %v2193_v63 = vrot.slane %v2137_v38, 2  ;;  %v2204_v13 = vrot.slane %v2202_v11, 2  ;;  %v2219_v11 = vld [vmem:[#allocation2 + $0x20] sm:$0x3] }
 0xc02   :  { %v2139_v5 = vpop.f32.mrf.mxu0  ;;  %v2179_v40 = vpop.f32.mrf.mxu1 }
 0xc03   :  { %v2886_v43 = vmul.f32 -1.442695, %v2185_v58  ;;  %v2195_v2 = vadd.f32 %v2193_v63, %v2095_v1  ;;  %v2218_v40 = vld [vmem:[#allocation2 + $0x18] sm:$0x3] }
 0xc04   :  { %v2140_v0 = vpop.f32.mrf.mxu0  ;;  %v3319_v56 = vpop.f32.mrf.mxu1 }
 0xc05   :  { %3620 = vpow2.f32 %v2886_v43  ;;  %v2887_v4 = vmul.f32 -1.442695, %v2195_v2 }
 0xc07   :  { %3622 = vpow2.f32 %v2887_v4 }
 0xc12   :  { %v3621_v6 = vpop.eup %3620 }
 0xc13   :  { %v2189_v8 = vadd.f32 1.0, %v3621_v6 }
 0xc14   :  { %v3623_v9 = vpop.eup %3622 }
 0xc15   :  { %3624 = vrcp.f32 %v2189_v8  ;;  %v2199_v44 = vadd.f32 1.0, %v3623_v9 }
 0xc17   :  { %3626 = vrcp.f32 %v2199_v44 }
 0xc22   :  { %v3625_v10 = vpop.eup %3624 }
 0xc23   :  { %v2206_v15 = vmul.f32 %v3625_v10, %v2204_v13 }
 0xc24   :  { %v3627_v24 = vpop.eup %3626 }
 0xc25   :  { %v2207_v46 = vadd.f32 %v2206_v15, %v2096_v16  ;;  %v2209_v25 = vsub.f32 1.0, %v3627_v24  ;;  %v2214_v29 = vmul.f32 %v3627_v24, %v2212_v26 }
 0xc27   :  { %3628 = vtanh.f32 %v2207_v46 }
 0xc34   :  { %v3629_v27 = vpop.eup %3628 }
 0xc35   :  { %v2210_v28 = vmul.f32 %v3629_v27, %v2209_v25 }
 0xc37   :  { %v4734_v30 = vadd.f32 %v2214_v29, %v2210_v28  ;;  %v2333_v29 = vld [vmem:[#allocation2 + $0x20] sm:$0xc] }
 0xc39   :  { %2216 = vst [vmem:[#allocation3] sm:$0xc0] %v4734_v30  ;;  %v2220_v33 = vpack.c.bf16 %v4734_v30, %v4734_v30  ;;  %v2326_v15 = vrot.slane %v4734_v30, 6 }
 0xc3b   :  { %v2222_v35 = vrot.slane %v2220_v33, 3 }
 0xc3d   :  { %2257 = vmatmul.mubr.bf16.vlgmr.msra.gmra.mxu0 %v2222_v35  ;;  %3337 = vmatmul.mubr.bf16.vlgmr.msra.gmra.mxu1 %v2222_v35 }
 0xc3e   :  { %2336 = vmatpush1.bf16.msra.mxu0 %v4410_v45  ;;  %3341 = vmatpush3.bf16.msra.mxu1 %v4415_v14 }
 0xc3f   :  { %2337 = vmatprep.subr.bf16.mxu0 %v4420_v12  ;;  %3342 = vmatprep.subr.bf16.mxu1 %v3721_v7 }
 0xc40   :  { %2367 = vmatprep.mubr.bf16.mxu0 %v3720_v3  ;;  %3356 = vmatprep.mubr.msk.bf16.mxu1 %vm3722_vm0, %v3721_v7 }
 0xc42   :  { %2338 = vmatpush1.bf16.msra.mxu0 %v4426_v47  ;;  %3343 = vmatpush3.bf16.msra.mxu1 %v4432_v48 }
 0xc43   :  { %2339 = vmatprep.subr.bf16.mxu0 %v4438_v49  ;;  %3344 = vmatprep.subr.bf16.mxu1 %v3721_v7 }
 0xc46   :  { %2340 = vmatpush1.bf16.msra.mxu0 %v4448_v50  ;;  %3345 = vmatpush3.bf16.msra.mxu1 %v4454_v51 }
 0xc47   :  { %2341 = vmatprep.subr.bf16.mxu0 %v4460_v52  ;;  %3346 = vmatprep.subr.bf16.mxu1 %v3721_v7 }
 0xc4a   :  { %2342 = vmatpush1.bf16.msra.mxu0 %v4467_v53  ;;  %3347 = vmatpush3.bf16.msra.mxu1 %v4473_v54 }
 0xc4b   :  { %2343 = vmatprep.subr.bf16.mxu0 %v4479_v55  ;;  %3348 = vmatprep.subr.bf16.mxu1 %v3721_v7 }
 0xc4e   :  { %2344 = vmatpush1.bf16.msra.mxu0 %v4486_v57  ;;  %3349 = vmatpush3.bf16.msra.mxu1 %v4492_v59 }
 0xc4f   :  { %2345 = vmatprep.subr.bf16.mxu0 %v4498_v60  ;;  %3350 = vmatprep.subr.bf16.mxu1 %v3721_v7 }
 0xc52   :  { %2346 = vmatpush1.bf16.msra.mxu0 %v4505_v61  ;;  %3351 = vmatpush3.bf16.msra.mxu1 %v4511_v62 }
 0xc53   :  { %2347 = vmatprep.subr.bf16.mxu0 %v4517_v17  ;;  %3352 = vmatprep.subr.bf16.mxu1 %v3721_v7 }
 0xc56   :  { %2348 = vmatpush1.bf16.msra.mxu0 %v4524_v18  ;;  %3353 = vmatpush3.bf16.msra.mxu1 %v4530_v19 }
 0xc57   :  { %2349 = vmatprep.subr.bf16.mxu0 %v4536_v21  ;;  %3354 = vmatprep.subr.bf16.mxu1 %v3721_v7 }
 0xc5a   :  { %2350 = vmatpush1.bf16.msra.mxu0 %v4543_v22  ;;  %3355 = vmatpush3.bf16.msra.mxu1 %v4549_v23 }
 0xc5b   :  { %2458 = vmatprep.subr.bf16.mxu0 %v4398_v20  ;;  %3360 = vmatprep.subr.bf16.mxu1 %v3721_v7 }
 0xcfd   :  { %v2258_v32 = vpop.f32.mrf.mxu0  ;;  %v2299_v34 = vpop.f32.mrf.mxu1 }
 0xcfe   :  { %v2305_v36 = vadd.f32 %v2258_v32, %v2217_v31  ;;  %v2319_v6 = vadd.f32 %v4605_v42, %v2299_v34 }
 0xcff   :  { %v2260_v37 = vpop.f32.mrf.mxu0  ;;  %v3338_v38 = vpop.f32.mrf.mxu1 }
 0xd00   :  { %v2888_v39 = vmul.f32 -1.442695, %v2305_v36  ;;  %v2312_v0 = vadd.f32 %v2260_v37, %v2218_v40  ;;  %v3698_v40 = vld [vmem:[%s4927_s6 + $0x94] ss:$12 sps:$4 sm:$0xff]  }
 0xd01   :  { %v2262_v58 = vpop.f32.mrf.mxu0  ;;  %v2302_v5 = vpop.f32.mrf.mxu1 }
 0xd02   :  { %3630 = vpow2.f32 %v2888_v39  ;;  %v2889_v56 = vmul.f32 -1.442695, %v2312_v0  ;;  %v3696_v58 = vld [vmem:[%s4927_s6 + $0xa8] ss:$12 sps:$4 sm:$0xff]   ;;  %v3697_v5 = vld [vmem:[%s4927_s6 + $0xb0] ss:$12 sps:$4 sm:$0xff]  }
 0xd03   :  { %v2263_v43 = vpop.f32.mrf.mxu0  ;;  %v3339_v63 = vpop.f32.mrf.mxu1  ;;  %v3701_v0 = vld [vmem:[%s4927_s6 + $0x7c] ss:$12 sps:$4 sm:$0xff]  }
 0xd04   :  { %3632 = vpow2.f32 %v2889_v56  ;;  %v3699_v43 = vld [vmem:[%s4927_s6 + $0x90] ss:$12 sps:$4 sm:$0xff]   ;;  %v3700_v63 = vld [vmem:[%s4927_s6 + $0x98] ss:$12 sps:$4 sm:$0xff]   ;;  %v3703_v56 = vld [vmem:[%s4927_s6 + $0x80] ss:$12 sps:$4 sm:$0xff]  }
 0xd0f   :  { %v3631_v1 = vpop.eup %3630 }
 0xd10   :  { %v2309_v20 = vadd.f32 1.0, %v3631_v1  ;;  %v3704_v1 = vld [vmem:[%s4927_s6 + $0x64] ss:$12 sps:$4 sm:$0xff]  }
 0xd11   :  { %v3633_v2 = vpop.eup %3632 }
 0xd12   :  { %3634 = vrcp.f32 %v2309_v20  ;;  %v2316_v4 = vadd.f32 1.0, %v3633_v2  ;;  %v3705_v20 = vld [vmem:[%s4927_s6 + $0x60] ss:$12 sps:$4 sm:$0xff]   ;;  %v3706_v2 = vld [vmem:[%s4927_s6 + $0x68] ss:$12 sps:$4 sm:$0xff]  }
 0xd14   :  { %3636 = vrcp.f32 %v2316_v4  ;;  %v3707_v4 = vld [vmem:[%s4927_s6 + $0x4c] ss:$12 sps:$4 sm:$0xff]  }
 0xd1f   :  { %v3635_v8 = vpop.eup %3634 }
 0xd20   :  { %v2320_v9 = vmul.f32 %v3635_v8, %v2319_v6  ;;  %v3708_v6 = vld [vmem:[%s4927_s6 + $0x48] ss:$12 sps:$4 sm:$0xff]   ;;  %v3709_v8 = vld [vmem:[%s4927_s6 + $0x50] ss:$12 sps:$4 sm:$0xff]  }
 0xd21   :  { %v3637_v13 = vpop.eup %3636 }
 0xd22   :  { %v2321_v44 = vadd.f32 %v2320_v9, %v2219_v11  ;;  %v2323_v10 = vsub.f32 1.0, %v3637_v13  ;;  %v2328_v24 = vmul.f32 %v3637_v13, %v2326_v15  ;;  %v3710_v9 = vld [vmem:[%s4927_s6 + $0x34] ss:$12 sps:$4 sm:$0xff]   ;;  %v3711_v11 = vld [vmem:[%s4927_s6 + $0x30] ss:$12 sps:$4 sm:$0xff]  }
 0xd23   :  { %v3713_v13 = vld [vmem:[%s4927_s6 + $0x1c] ss:$12 sps:$4 sm:$0xff]   ;;  %v3715_v15 = vld [vmem:[%s4927_s6 + $0x20] ss:$12 sps:$4 sm:$0xff]  }
 0xd24   :  { %3638 = vtanh.f32 %v2321_v44  ;;  %v3712_v44 = vld [vmem:[%s4927_s6 + $0x38] ss:$12 sps:$4 sm:$0xff]  }
 0xd31   :  { %v3639_v16 = vpop.eup %3638 }
 0xd32   :  { %v2324_v46 = vmul.f32 %v3639_v16, %v2323_v10  ;;  %v3714_v10 = vld [vmem:[%s4927_s6 + $0x18] ss:$12 sps:$4 sm:$0xff]  }
 0xd33   :  { %v3716_v16 = vld [vmem:[%s4927_s6 + $0x4] ss:$12 sps:$4 sm:$0xff]  }
 0xd34   :  { %v4776_v25 = vadd.f32 %v2328_v24, %v2324_v46  ;;  %v3717_v46 = vld [vmem:[%s4927_s6] ss:$12 sps:$4 sm:$0xff]   ;;  %v3718_v24 = vld [vmem:[%s4927_s6 + $0x8] ss:$12 sps:$4 sm:$0xff]  }
 0xd36   :  { %2330 = vst [vmem:[#allocation3 + $0x8] sm:$0x3] %v4776_v25  ;;  %v2334_v26 = vpack.c.bf16 %v4776_v25, %v4776_v25  ;;  %v2446_v31 = vrot.slane %v4776_v25, 6 }
 0xd38   :  { %2368 = vmatmul.mubr.bf16.vlgmr.msra.gmra.mxu0 %v2334_v26  ;;  %3357 = vmatmul.mubr.bf16.vlgmr.msra.gmra.mxu1 %v2334_v26 }
 0xd39   :  { %2459 = vmatpush1.bf16.msra.mxu0 %v4410_v45  ;;  %3361 = vmatpush3.bf16.msra.mxu1 %v4415_v14  ;;  %v3695_v45 = vld [vmem:[%s4927_s6 + $0xac] ss:$12 sps:$4 sm:$0xff]  }
 0xd3a   :  { %2460 = vmatprep.subr.bf16.mxu0 %v4420_v12  ;;  %3362 = vmatprep.subr.bf16.mxu1 %v3721_v7 }
 0xd3b   :  { %2490 = vmatprep.mubr.bf16.mxu0 %v3720_v3  ;;  %3376 = vmatprep.mubr.msk.bf16.mxu1 %vm3722_vm0, %v3721_v7 }
 0xd3d   :  { %2461 = vmatpush1.bf16.msra.mxu0 %v4426_v47  ;;  %3363 = vmatpush3.bf16.msra.mxu1 %v4432_v48  ;;  %v2331_v48 = vld [vmem:[#allocation2] sm:$0xc] }
 0xd3e   :  { %2462 = vmatprep.subr.bf16.mxu0 %v4438_v49  ;;  %3364 = vmatprep.subr.bf16.mxu1 %v3721_v7 }
 0xd41   :  { %2463 = vmatpush1.bf16.msra.mxu0 %v4448_v50  ;;  %3365 = vmatpush3.bf16.msra.mxu1 %v4454_v51 }
 0xd42   :  { %2464 = vmatprep.subr.bf16.mxu0 %v4460_v52  ;;  %3366 = vmatprep.subr.bf16.mxu1 %v3721_v7 }
 0xd45   :  { %2465 = vmatpush1.bf16.msra.mxu0 %v4467_v53  ;;  %3367 = vmatpush3.bf16.msra.mxu1 %v4473_v54 }
 0xd46   :  { %2466 = vmatprep.subr.bf16.mxu0 %v4479_v55  ;;  %3368 = vmatprep.subr.bf16.mxu1 %v3721_v7 }
 0xd49   :  { %2467 = vmatpush1.bf16.msra.mxu0 %v4486_v57  ;;  %3369 = vmatpush3.bf16.msra.mxu1 %v4492_v59 }
 0xd4a   :  { %2468 = vmatprep.subr.bf16.mxu0 %v4498_v60  ;;  %3370 = vmatprep.subr.bf16.mxu1 %v3721_v7  ;;  %v2332_v60 = vld [vmem:[#allocation2 + $0x18] sm:$0xc] }
 0xd4d   :  { %2469 = vmatpush1.bf16.msra.mxu0 %v4505_v61  ;;  %3371 = vmatpush3.bf16.msra.mxu1 %v4511_v62 }
 0xd4e   :  { %2470 = vmatprep.subr.bf16.mxu0 %v4517_v17  ;;  %3372 = vmatprep.subr.bf16.mxu1 %v3721_v7 }
 0xd51   :  { %2471 = vmatpush1.bf16.msra.mxu0 %v4524_v18  ;;  %3373 = vmatpush3.bf16.msra.mxu1 %v4530_v19 }
 0xd52   :  { %2472 = vmatprep.subr.bf16.mxu0 %v4536_v21  ;;  %3374 = vmatprep.subr.bf16.mxu1 %v3721_v7 }
 0xd55   :  { %2473 = vmatpush1.bf16.msra.mxu0 %v4543_v22  ;;  %3375 = vmatpush3.bf16.msra.mxu1 %v4549_v23 }
 0xd56   :  { %2581 = vmatprep.subr.bf16.mxu0 %v3695_v45  ;;  %3380 = vmatprep.subr.bf16.mxu1 %v3721_v7 }
 0xdf8   :  { %v2369_v14 = vpop.f32.mrf.mxu0  ;;  %v2410_v12 = vpop.f32.mrf.mxu1 }
 0xdf9   :  { %v2417_v47 = vrot.slane %v2369_v14, 6  ;;  %v2436_v21 = vadd.f32 %v4605_v42, %v2410_v12  ;;  %v2451_v14 = vld [vmem:[#allocation2] sm:$0x30] }
 0xdfa   :  { %v2371_v49 = vpop.f32.mrf.mxu0  ;;  %v3358_v50 = vpop.f32.mrf.mxu1 }
 0xdfb   :  { %v2419_v51 = vadd.f32 %v2417_v47, %v2331_v48  ;;  %v2427_v55 = vrot.slane %v2371_v49, 6  ;;  %v2438_v23 = vrot.slane %v2436_v21, 6 }
 0xdfc   :  { %v2373_v52 = vpop.f32.mrf.mxu0  ;;  %v2413_v53 = vpop.f32.mrf.mxu1 }
 0xdfd   :  { %v2890_v54 = vmul.f32 -1.442695, %v2419_v51  ;;  %v2429_v61 = vadd.f32 %v2427_v55, %v2332_v60  ;;  %v2452_v55 = vld [vmem:[#allocation2 + $0x18] sm:$0x30] }
 0xdfe   :  { %v2374_v57 = vpop.f32.mrf.mxu0  ;;  %v3359_v59 = vpop.f32.mrf.mxu1 }
 0xdff   :  { %3640 = vpow2.f32 %v2890_v54  ;;  %v2891_v62 = vmul.f32 -1.442695, %v2429_v61 }
 0xe01   :  { %3642 = vpow2.f32 %v2891_v62 }
 0xe0c   :  { %v3641_v17 = vpop.eup %3640 }
 0xe0d   :  { %v2423_v18 = vadd.f32 1.0, %v3641_v17 }
 0xe0e   :  { %v3643_v19 = vpop.eup %3642 }
 0xe0f   :  { %3644 = vrcp.f32 %v2423_v18  ;;  %v2433_v22 = vadd.f32 1.0, %v3643_v19 }
 0xe11   :  { %3646 = vrcp.f32 %v2433_v22 }
 0xe1c   :  { %v3645_v27 = vpop.eup %3644 }
 0xe1d   :  { %v2440_v28 = vmul.f32 %v3645_v27, %v2438_v23  ;;  %v2453_v23 = vld [vmem:[#allocation2 + $0x20] sm:$0x30] }
 0xe1e   :  { %v3647_v33 = vpop.eup %3646 }
 0xe1f   :  { %v2441_v30 = vadd.f32 %v2440_v28, %v2333_v29  ;;  %v2443_v35 = vsub.f32 1.0, %v3647_v33  ;;  %v2448_v36 = vmul.f32 %v3647_v33, %v2446_v31 }
 0xe21   :  { %3648 = vtanh.f32 %v2441_v30 }
 0xe2e   :  { %v3649_v32 = vpop.eup %3648 }
 0xe2f   :  { %v2444_v34 = vmul.f32 %v3649_v32, %v2443_v35 }
 0xe31   :  { %v4820_v37 = vadd.f32 %v2448_v36, %v2444_v34 }
 0xe33   :  { %2450 = vst [vmem:[#allocation3 + $0x8] sm:$0xc] %v4820_v37  ;;  %v2454_v38 = vpack.c.bf16 %v4820_v37, %v4820_v37  ;;  %v2569_v30 = vrot.slane %v4820_v37, 6 }
 0xe35   :  { %v2456_v39 = vrot.slane %v2454_v38, 1  ;;  %v16_v38 = vstv %s4930_s10 }
 0xe36   :  { %17 = vst [vmem:[#allocation4] sm:$0x1] %v16_v38 }
 0xe37   :  { %2491 = vmatmul.mubr.bf16.vlgmr.msra.gmra.mxu0 %v2456_v39  ;;  %3377 = vmatmul.mubr.bf16.vlgmr.msra.gmra.mxu1 %v2456_v39 }
 0xe38   :  { %2582 = vmatpush1.bf16.msra.mxu0 %v3696_v58  ;;  %3381 = vmatpush3.bf16.msra.mxu1 %v3697_v5 }
 0xe39   :  { %2583 = vmatprep.subr.bf16.mxu0 %v3698_v40  ;;  %3382 = vmatprep.subr.bf16.mxu1 %v3721_v7  ;;  %v2574_v40 = vld [vmem:[#allocation2] sm:$0xc0] }
 0xe3a   :  { %2613 = vmatprep.mubr.bf16.mxu0 %v3720_v3  ;;  %3396 = vmatprep.mubr.msk.bf16.mxu1 %vm3722_vm0, %v3721_v7  ;;  %v3702_v3 = vld [vmem:[%s4927_s6 + $0x78] ss:$12 sps:$4 sm:$0xff]  }
 0xe3c   :  { %2584 = vmatpush1.bf16.msra.mxu0 %v3699_v43  ;;  %3383 = vmatpush3.bf16.msra.mxu1 %v3700_v63 }
 0xe3d   :  { %2585 = vmatprep.subr.bf16.mxu0 %v3701_v0  ;;  %3384 = vmatprep.subr.bf16.mxu1 %v3721_v7  ;;  %v2700_v39 = vld [vmem:[#allocation4] sm:$0x1] }
 0xe3e   :  { %2703 = vperm.xlu0 %3411, %v2700_v39  }
 0xe40   :  { %2586 = vmatpush1.bf16.msra.mxu0 %v3702_v3  ;;  %3385 = vmatpush3.bf16.msra.mxu1 %v3703_v56 }
 0xe41   :  { %2587 = vmatprep.subr.bf16.mxu0 %v3704_v1  ;;  %3386 = vmatprep.subr.bf16.mxu1 %v3721_v7 }
 0xe44   :  { %2588 = vmatpush1.bf16.msra.mxu0 %v3705_v20  ;;  %3387 = vmatpush3.bf16.msra.mxu1 %v3706_v2 }
 0xe45   :  { %2589 = vmatprep.subr.bf16.mxu0 %v3707_v4  ;;  %3388 = vmatprep.subr.bf16.mxu1 %v3721_v7 }
 0xe48   :  { %2590 = vmatpush1.bf16.msra.mxu0 %v3708_v6  ;;  %3389 = vmatpush3.bf16.msra.mxu1 %v3709_v8  ;;  %v2575_v6 = vld [vmem:[#allocation2 + $0x18] sm:$0xc0] }
 0xe49   :  { %2591 = vmatprep.subr.bf16.mxu0 %v3710_v9  ;;  %3390 = vmatprep.subr.bf16.mxu1 %v3721_v7 }
 0xe4c   :  { %2592 = vmatpush1.bf16.msra.mxu0 %v3711_v11  ;;  %3391 = vmatpush3.bf16.msra.mxu1 %v3712_v44 }
 0xe4d   :  { %2593 = vmatprep.subr.bf16.mxu0 %v3713_v13  ;;  %3392 = vmatprep.subr.bf16.mxu1 %v3721_v7 }
 0xe50   :  { %2594 = vmatpush1.bf16.msra.mxu0 %v3714_v10  ;;  %3393 = vmatpush3.bf16.msra.mxu1 %v3715_v15 }
 0xe51   :  { %2595 = vmatprep.subr.bf16.mxu0 %v3716_v16  ;;  %3394 = vmatprep.subr.bf16.mxu1 %v3721_v7 }
 0xe54   :  { %2596 = vmatpush1.bf16.msra.mxu0 %v3717_v46  ;;  %3395 = vmatpush3.bf16.msra.mxu1 %v3718_v24 }
 0xe55   :  { %3400 = vmatprep.subr.mxu0 %v3721_v7 }
 0xef7   :  { %v2492_v25 = vpop.f32.mrf.mxu0  ;;  %v2533_v26 = vpop.f32.mrf.mxu1 }
 0xef8   :  { %v2540_v45 = vrot.slane %v2492_v25, 4  ;;  %v2559_v17 = vadd.f32 %v4605_v42, %v2533_v26  ;;  %v2576_v25 = vld [vmem:[#allocation2 + $0x20] sm:$0xc0] }
 0xef9   :  { %v2494_v12 = vpop.f32.mrf.mxu0  ;;  %v3378_v47 = vpop.f32.mrf.mxu1 }
 0xefa   :  { %v2542_v48 = vadd.f32 %v2540_v45, %v2451_v14  ;;  %v2550_v52 = vrot.slane %v2494_v12, 4  ;;  %v2561_v19 = vrot.slane %v2559_v17, 4 }
 0xefb   :  { %v2496_v49 = vpop.f32.mrf.mxu0  ;;  %v2536_v50 = vpop.f32.mrf.mxu1 }
 0xefc   :  { %v2892_v51 = vmul.f32 -1.442695, %v2542_v48  ;;  %v2552_v57 = vadd.f32 %v2550_v52, %v2452_v55  ;;  %v2699_v52 = vld [vmem:[%s4931_s9] sm:$0x1] }
 0xefd   :  { %v2497_v53 = vpop.f32.mrf.mxu0  ;;  %v3379_v54 = vpop.f32.mrf.mxu1 }
 0xefe   :  { %3650 = vpow2.f32 %v2892_v51  ;;  %v2893_v59 = vmul.f32 -1.442695, %v2552_v57  ;;  %v2704_v53 = vpop.permute.xlu0 %2703 }
 0xeff   :  { %v2709_v54 = vrot.slane %v2704_v53, %v3993_v41 }
 0xf00   :  { %3652 = vpow2.f32 %v2893_v59 }
 0xf0b   :  { %v3651_v60 = vpop.eup %3650 }
 0xf0c   :  { %v2546_v61 = vadd.f32 1.0, %v3651_v60 }
 0xf0d   :  { %v3653_v62 = vpop.eup %3652 }
 0xf0e   :  { %3654 = vrcp.f32 %v2546_v61  ;;  %v2556_v18 = vadd.f32 1.0, %v3653_v62 }
 0xf10   :  { %3656 = vrcp.f32 %v2556_v18 }
 0xf1b   :  { %v3655_v21 = vpop.eup %3654 }
 0xf1c   :  { %v2563_v22 = vmul.f32 %v3655_v21, %v2561_v19 }
 0xf1d   :  { %v3657_v28 = vpop.eup %3656 }
 0xf1e   :  { %v2564_v27 = vadd.f32 %v2563_v22, %v2453_v23  ;;  %v2566_v29 = vsub.f32 1.0, %v3657_v28  ;;  %v2571_v31 = vmul.f32 %v3657_v28, %v2569_v30 }
 0xf20   :  { %3658 = vtanh.f32 %v2564_v27 }
 0xf2d   :  { %v3659_v33 = vpop.eup %3658 }
 0xf2e   :  { %v2567_v35 = vmul.f32 %v3659_v33, %v2566_v29 }
 0xf30   :  { %v2572_v32 = vadd.f32 %v2571_v31, %v2567_v35 }
 0xf32   :  { %2573 = vst [vmem:[#allocation3 + $0x8] sm:$0x30] %v2572_v32  ;;  %v2577_v34 = vpack.c.bf16 %v2572_v32, %v2572_v32  ;;  %v2692_v14 = vrot.slane %v2572_v32, 6 }
 0xf34   :  { %v2579_v36 = vrot.slane %v2577_v34, 2 }
 0xf36   :  { %2614 = vmatmul.mubr.bf16.vlgmr.msra.gmra.mxu0 %v2579_v36  ;;  %3397 = vmatmul.mubr.bf16.vlgmr.msra.gmra.mxu1 %v2579_v36 }
 0xf37   :  { %3404 = vmatprep.mubr.msk.f32.mxu0 %vm3722_vm0, %v3721_v7 }
 0xff6   :  { %v2615_v37 = vpop.f32.mrf.mxu0  ;;  %v2656_v58 = vpop.f32.mrf.mxu1 }
 0xff7   :  { %v2663_v5 = vrot.slane %v2615_v37, 2  ;;  %v2682_v10 = vadd.f32 %v4605_v42, %v2656_v58  ;;  %v2697_v42 = vld [vmem:[#allocation3] sm:$0xff] }
 0xff8   :  { %v2617_v43 = vpop.f32.mrf.mxu0  ;;  %v3398_v63 = vpop.f32.mrf.mxu1 }
 0xff9   :  { %v2665_v0 = vadd.f32 %v2663_v5, %v2574_v40  ;;  %v2673_v20 = vrot.slane %v2617_v43, 2  ;;  %v2684_v16 = vrot.slane %v2682_v10, 2 }
 0xffa   :  { %v2619_v3 = vpop.f32.mrf.mxu0  ;;  %v2659_v56 = vpop.f32.mrf.mxu1 }
 0xffb   :  { %v2894_v1 = vmul.f32 -1.442695, %v2665_v0  ;;  %v2675_v8 = vadd.f32 %v2673_v20, %v2575_v6 }
 0xffc   :  { %v2620_v2 = vpop.f32.mrf.mxu0  ;;  %v3399_v4 = vpop.f32.mrf.mxu1 }
 0xffd   :  { %3660 = vpow2.f32 %v2894_v1  ;;  %v2895_v9 = vmul.f32 -1.442695, %v2675_v8 }
 0xfff   :  { %3662 = vpow2.f32 %v2895_v9 }
0x100a   :  { %v3661_v11 = vpop.eup %3660 }
0x100b   :  { %v2669_v44 = vadd.f32 1.0, %v3661_v11 }
0x100c   :  { %v3663_v13 = vpop.eup %3662 }
0x100d   :  { %3664 = vrcp.f32 %v2669_v44  ;;  %v2679_v15 = vadd.f32 1.0, %v3663_v13 }
0x100f   :  { %3666 = vrcp.f32 %v2679_v15 }
0x101a   :  { %v3665_v46 = vpop.eup %3664 }
0x101b   :  { %v2686_v24 = vmul.f32 %v3665_v46, %v2684_v16 }
0x101c   :  { %v3667_v45 = vpop.eup %3666 }
0x101d   :  { %v2687_v26 = vadd.f32 %v2686_v24, %v2576_v25  ;;  %v2689_v12 = vsub.f32 1.0, %v3667_v45  ;;  %v2694_v49 = vmul.f32 %v3667_v45, %v2692_v14 }
0x101f   :  { %3668 = vtanh.f32 %v2687_v26 }
0x102c   :  { %v3669_v47 = vpop.eup %3668 }
0x102d   :  { %v2690_v48 = vmul.f32 %v3669_v47, %v2689_v12 }
0x102f   :  { %v2695_v50 = vadd.f32 %v2694_v49, %v2690_v48 }
0x1031   :  { %2696 = vst [vmem:[#allocation3 + $0x8] sm:$0xc0] %v2695_v50 }
0x1038   :  { %v2698_v51 = vld [vmem:[#allocation3 + $0x8] sm:$0xff] }
0x1039   :  { %3401 = vmatpush3.xpose.msra.mxu0 %v2698_v51 }
0x103a   :  { %3402 = vmatprep.subr.mxu0 %v3721_v7 }
0x103d   :  { %3403 = vmatpush3.xpose.msra.mxu0 %v2697_v42 }
0x1040   :  { %3405 = vmatmul.mubr.f32.vlgmr.msra.gmra.mxu0 %v2699_v52 }
0x1100   :  { %v2776_v55 = vpop.f32.mrf.mxu0 }
0x1101   :  { %v2777_v57 = vadd.f32 %v2776_v55, %v2709_v54 }
0x1102   :  { %v3406_v59 = vpop.f32.mrf.mxu0 }
0x1103   :  { %2781 = vst.msk [vmem:[%s4932_s11] sm:$0x1] %vm2780_vm3, %v2777_v57 }

</bundles_post_ra>
